<compile_context>
chip_gen: v7x
topology: tpu7x:2x2x1
jax: 0.10.0
libtpu: 0.0.40
codegen_flags: <defaults>
</compile_context>

<pallas_src>
import functools
import math

import jax
import jax.numpy as jnp
from jax.experimental import pallas as pl
from jax.experimental.pallas import tpu as pltpu

F32 = jnp.float32
BF16 = jnp.bfloat16
LN_EPS = 1e-5


# --------------------------------------------------------------------------
# Fused decoder-layer kernel: one grid step == one block of batch elements
# --------------------------------------------------------------------------

def _decoder_layer_kernel(
    # activations (row-blocked, flattened over batch)
    tgt_ref, mem_ref, pos_ref, qpos_ref,
    # weights (bf16)
    wqkv_s_ref, wqkv_c_ref, wo_s_ref, wo_c_ref, w1_ref, w2_ref,
    # f32 bias / LayerNorm tables
    b1_ref, hbias_ref, vecs_ref,
    # output
    out_ref,
    *, nhead, bb, q_len, s_len):
  E = out_ref.shape[-1]
  Dh = E // nhead
  scale = 1.0 / math.sqrt(Dh)

  tgt = tgt_ref[...].astype(F32)    # (bb*q_len, E)
  mem = mem_ref[...].astype(F32)    # (bb*s_len, E)
  pos = pos_ref[...].astype(F32)    # (bb*s_len, E)
  qpos = qpos_ref[...].astype(F32)  # (bb*q_len, E)

  def vec(row):
    # (1, E) f32 row of the packed bias / LayerNorm table (static ref slice).
    return vecs_ref[row:row + 1, :]

  def layer_norm(x, g_row, b_row):
    mu = jnp.mean(x, axis=-1, keepdims=True)
    xc = x - mu
    var = jnp.mean(xc * xc, axis=-1, keepdims=True)
    return xc * jax.lax.rsqrt(var + LN_EPS) * vec(g_row) + vec(b_row)

  def mha(xq, xk, xv, w_ref, wo_ref, hb_base, bo_row, sq, sk):
    # xq: (bb*sq, E) f32, xk/xv: (bb*sk, E) f32.
    # w_ref: (E, 3E) bf16 fused [Wq | Wk | Wv]; wo_ref: (E, E) bf16.
    xq_b = xq.astype(BF16)
    xk_b = xk.astype(BF16)
    xv_b = xv.astype(BF16)
    acc = jnp.zeros((bb * sq, E), F32)
    for h in range(nhead):                     # static unroll over heads
      c = h * Dh
      # Per-head weight columns as static VMEM-ref slices (no live-vreg lane
      # slices); projections run at full M = bb*sq / bb*sk rows on the MXU.
      wq_h = w_ref[:, c:c + Dh]                          # (E, Dh) bf16
      wk_h = w_ref[:, E + c:E + c + Dh]
      wv_h = w_ref[:, 2 * E + c:2 * E + c + Dh]
      bq_h = hbias_ref[hb_base + h:hb_base + h + 1, :]   # (1, Dh) f32
      bk_h = hbias_ref[hb_base + nhead + h:hb_base + nhead + h + 1, :]
      bv_h = hbias_ref[hb_base + 2 * nhead + h:hb_base + 2 * nhead + h + 1, :]

      qh = jnp.dot(xq_b, wq_h, preferred_element_type=F32) + bq_h  # (bb*sq, Dh)
      kh = jnp.dot(xk_b, wk_h, preferred_element_type=F32) + bk_h  # (bb*sk, Dh)
      vh = (jnp.dot(xv_b, wv_h, preferred_element_type=F32) + bv_h).astype(BF16)

      # Per-batch-element softmax attention (small static loop; sublane slices
      # at multiples of 8 rows are essentially free).
      parts = []
      for b in range(bb):
        qb = qh[b * sq:(b + 1) * sq].astype(BF16)
        kb = kh[b * sk:(b + 1) * sk].astype(BF16)
        vb = vh[b * sk:(b + 1) * sk]
        s = jax.lax.dot_general(          # q @ k^T without materialized transpose
            qb, kb, (((1,), (1,)), ((), ())),
            preferred_element_type=F32) * scale
        m = jnp.max(s, axis=-1, keepdims=True)
        e = jnp.exp(s - m)
        p = (e * pl.reciprocal(jnp.sum(e, axis=-1, keepdims=True),
                               approx=True)).astype(BF16)
        parts.append(jnp.dot(p, vb, preferred_element_type=F32))   # (sq, Dh)
      o_h = parts[0] if bb == 1 else jnp.concatenate(parts, axis=0)  # (bb*sq, Dh)

      # Per-head output-projection accumulation (no lane-axis concat of heads).
      wo_h = wo_ref[c:c + Dh, :]                         # (Dh, E) bf16
      acc = acc + jnp.dot(o_h.astype(BF16), wo_h, preferred_element_type=F32)
    return acc + vec(bo_row)

  # ---- self-attention: q = k = tgt + query_pos, v = tgt; dropout = identity.
  qk_in = tgt + qpos
  x = layer_norm(
      tgt + mha(qk_in, qk_in, tgt, wqkv_s_ref, wo_s_ref, 0, 0, q_len, q_len),
      3, 4)

  # ---- cross-attention: q = x + query_pos, k = memory + pos, v = memory.
  x = layer_norm(
      x + mha(x + qpos, mem + pos, mem, wqkv_c_ref, wo_c_ref,
              3 * nhead, 1, q_len, s_len),
      5, 6)

  # ---- FFN + add + LN (dropout = identity in eval mode).
  h1 = jnp.maximum(
      jnp.dot(x.astype(BF16), w1_ref[...], preferred_element_type=F32)
      + b1_ref[...], 0.0)
  h2 = jnp.dot(h1.astype(BF16), w2_ref[...], preferred_element_type=F32) + vec(2)
  x = layer_norm(x + h2, 7, 8)

  out_ref[...] = x.astype(out_ref.dtype)


# --------------------------------------------------------------------------
# Parameter packing (fused QKV weights, packed bias / LN tables, bf16 weights)
# --------------------------------------------------------------------------

def _pack_operands(params, nhead):
  E = params["wq_s"].shape[0]
  Dh = E // nhead

  def fuse_qkv(sfx):
    return jnp.concatenate(
        [params[f"wq_{sfx}"], params[f"wk_{sfx}"], params[f"wv_{sfx}"]],
        axis=1).astype(BF16)                              # (E, 3E)

  def head_bias_rows(sfx):
    return jnp.concatenate(
        [params[f"bq_{sfx}"].reshape(nhead, Dh),
         params[f"bk_{sfx}"].reshape(nhead, Dh),
         params[f"bv_{sfx}"].reshape(nhead, Dh)], axis=0)  # (3*nhead, Dh)

  wqkv_s, wqkv_c = fuse_qkv("s"), fuse_qkv("c")
  wo_s = params["wo_s"].astype(BF16)
  wo_c = params["wo_c"].astype(BF16)
  w1 = params["w1"].astype(BF16)
  w2 = params["w2"].astype(BF16)
  b1 = params["b1"].astype(F32)
  hbias = jnp.concatenate(
      [head_bias_rows("s"), head_bias_rows("c")], axis=0).astype(F32)
  # Row layout: 0 bo_s, 1 bo_c, 2 b2, 3 ln1_g, 4 ln1_b, 5 ln2_g, 6 ln2_b,
  #             7 ln3_g, 8 ln3_b
  vecs = jnp.concatenate(
      [params["bo_s"], params["bo_c"], params["b2"],
       params["ln1_g"], params["ln1_b"],
       params["ln2_g"], params["ln2_b"],
       params["ln3_g"], params["ln3_b"]], axis=0).astype(F32)
  return wqkv_s, wqkv_c, wo_s, wo_c, w1, w2, b1, hbias, vecs


# --------------------------------------------------------------------------
# Wrapper: one pallas_call for the whole layer, grid over batch blocks
# --------------------------------------------------------------------------

def transformer_decoder_layer(tgt, memory, pos, query_pos, params, nhead,
                              batch_block=None):
  B, Q, E = tgt.shape
  S = memory.shape[1]
  Fd = params["w1"].shape[1]
  assert E % nhead == 0
  bb = B if batch_block is None else batch_block
  assert B % bb == 0, "batch_block must divide batch"
  nb = B // bb

  ops = _pack_operands(params, nhead)

  # Flatten batch into rows so projections / FFN run at M = bb*Q (or bb*S).
  tgt2 = tgt.reshape(B * Q, E)
  mem2 = memory.reshape(B * S, E)
  pos2 = pos.reshape(B * S, E)
  qpos2 = query_pos.reshape(B * Q, E)

  def rows_spec(rows):
    return pl.BlockSpec((rows, E), lambda i: (i, 0))

  def full_spec(arr):
    n = arr.ndim
    return pl.BlockSpec(arr.shape, lambda i: (0,) * n)

  in_specs = ([rows_spec(bb * Q), rows_spec(bb * S), rows_spec(bb * S),
               rows_spec(bb * Q)] + [full_spec(a) for a in ops])

  flops = 2 * B * (
      3 * Q * E * E + 2 * Q * Q * E + Q * E * E            # self-attention
      + Q * E * E + 2 * S * E * E + 2 * Q * S * E + Q * E * E  # cross-attention
      + 2 * Q * E * Fd)                                    # FFN
  transcendentals = B * nhead * Q * (Q + S)                # softmax exps
  bytes_accessed = (sum(int(a.size) * a.dtype.itemsize
                        for a in (tgt2, mem2, pos2, qpos2, *ops))
                    + B * Q * E * tgt.dtype.itemsize)

  out = pl.pallas_call(
      functools.partial(_decoder_layer_kernel, nhead=nhead, bb=bb,
                        q_len=Q, s_len=S),
      out_shape=jax.ShapeDtypeStruct((B * Q, E), tgt.dtype),
      grid=(nb,),
      in_specs=in_specs,
      out_specs=pl.BlockSpec((bb * Q, E), lambda i: (i, 0)),
      compiler_params=pltpu.CompilerParams(
          dimension_semantics=("parallel",),
          vmem_limit_bytes=32 * 1024 * 1024),
      cost_estimate=pl.CostEstimate(
          flops=flops, transcendentals=transcendentals,
          bytes_accessed=bytes_accessed),
  )(tgt2, mem2, pos2, qpos2, *ops)
  return out.reshape(B, Q, E)


# --------------------------------------------------------------------------
# Pure-JAX reference (f32, PyTorch MultiheadAttention / LayerNorm semantics)
# --------------------------------------------------------------------------

def reference_decoder_layer(tgt, memory, pos, query_pos, p, nhead):
  E = tgt.shape[-1]
  Dh = E // nhead

  def ln(x, g, b):
    mu = jnp.mean(x, axis=-1, keepdims=True)
    var = jnp.mean((x - mu) ** 2, axis=-1, keepdims=True)
    return (x - mu) * jax.lax.rsqrt(var + LN_EPS) * g + b

  def mha(q_in, k_in, v_in, wq, bq, wk, bk, wv, bv, wo, bo):
    B, Sq, _ = q_in.shape
    Sk = k_in.shape[1]
    q = (q_in @ wq + bq).reshape(B, Sq, nhead, Dh)
    k = (k_in @ wk + bk).reshape(B, Sk, nhead, Dh)
    v = (v_in @ wv + bv).reshape(B, Sk, nhead, Dh)
    s = jnp.einsum("bqhd,bkhd->bhqk", q, k) / math.sqrt(Dh)
    a = jax.nn.softmax(s, axis=-1)
    o = jnp.einsum("bhqk,bkhd->bqhd", a, v).reshape(B, Sq, E)
    return o @ wo + bo

  a = mha(tgt + query_pos, tgt + query_pos, tgt,
          p["wq_s"], p["bq_s"], p["wk_s"], p["bk_s"],
          p["wv_s"], p["bv_s"], p["wo_s"], p["bo_s"])
  x = ln(tgt + a, p["ln1_g"], p["ln1_b"])
  a = mha(x + query_pos, memory + pos, memory,
          p["wq_c"], p["bq_c"], p["wk_c"], p["bk_c"],
          p["wv_c"], p["bv_c"], p["wo_c"], p["bo_c"])
  x = ln(x + a, p["ln2_g"], p["ln2_b"])
  h = jax.nn.relu(x @ p["w1"] + p["b1"]) @ p["w2"] + p["b2"]
  return ln(x + h, p["ln3_g"], p["ln3_b"])


# --------------------------------------------------------------------------
# Deterministic parameter / input construction + main
# --------------------------------------------------------------------------

class ParamGen:
  def __init__(self, key):
    self.key = key

  def nrm(self, shape, scale=0.05):
    self.key, sub = jax.random.split(self.key)
    return (scale * jax.random.normal(sub, shape)).astype(F32)


def init_params(gen, E, dim_ff):
  p = {}
  for sfx in ("s", "c"):
    for name in ("q", "k", "v", "o"):
      p[f"w{name}_{sfx}"] = gen.nrm((E, E))
      p[f"b{name}_{sfx}"] = gen.nrm((1, E))
  p["w1"] = gen.nrm((E, dim_ff))
  p["b1"] = gen.nrm((1, dim_ff))
  p["w2"] = gen.nrm((dim_ff, E))
  p["b2"] = gen.nrm((1, E))
  for i in (1, 2, 3):
    p[f"ln{i}_g"] = jnp.ones((1, E), F32)
    p[f"ln{i}_b"] = jnp.zeros((1, E), F32)
  return p


if __name__ == "__main__":
  B, Q, S = 2, 8, 16          # batch, target (query) length, memory length
  E, NHEAD, DIM_FF = 128, 4, 256

  gen = ParamGen(jax.random.PRNGKey(0))
  params = init_params(gen, E, DIM_FF)

  tgt = gen.nrm((B, Q, E), scale=1.0)
  memory = gen.nrm((B, S, E), scale=1.0)
  pos = gen.nrm((B, S, E), scale=0.1)
  query_pos = gen.nrm((B, Q, E), scale=0.1)

  fwd = jax.jit(functools.partial(transformer_decoder_layer, nhead=NHEAD))
  out = fwd(tgt, memory, pos, query_pos, params)
  jax.block_until_ready(out)

  ref = reference_decoder_layer(tgt, memory, pos, query_pos, params, NHEAD)

  assert out.shape == (B, Q, E), out.shape
  assert bool(jnp.all(jnp.isfinite(out)))
  max_err = float(jnp.max(jnp.abs(out - ref)))
  # bf16 MXU operands + approx reciprocal vs a pure-f32 reference.
  assert bool(jnp.allclose(out, ref, atol=3e-2, rtol=3e-2)), max_err
  print("KERNEL_OK")
</pallas_src>

<mosaic_0001>
module attributes {stable_mosaic.version = 11 : i64} {
  func.func @_decoder_layer_kernel(%arg0: i32, %arg1: memref<16x128xf32, #tpu.memory_space<vmem>>, %arg2: memref<32x128xf32, #tpu.memory_space<vmem>>, %arg3: memref<32x128xf32, #tpu.memory_space<vmem>>, %arg4: memref<16x128xf32, #tpu.memory_space<vmem>>, %arg5: memref<128x384xbf16, #tpu.memory_space<vmem>>, %arg6: memref<128x384xbf16, #tpu.memory_space<vmem>>, %arg7: memref<128x128xbf16, #tpu.memory_space<vmem>>, %arg8: memref<128x128xbf16, #tpu.memory_space<vmem>>, %arg9: memref<128x256xbf16, #tpu.memory_space<vmem>>, %arg10: memref<256x128xbf16, #tpu.memory_space<vmem>>, %arg11: memref<1x256xf32, #tpu.memory_space<vmem>>, %arg12: memref<24x32xf32, #tpu.memory_space<vmem>>, %arg13: memref<9x128xf32, #tpu.memory_space<vmem>>, %arg14: memref<16x128xf32, #tpu.memory_space<vmem>>) attributes {dimension_semantics = [#tpu.dimension_semantics<parallel>], iteration_bounds = array<i64: 1>, scalar_prefetch = 0 : i64, scratch_operands = 0 : i64, tpu.core_type = #tpu.core_type<tc>, window_params = [{transform_indices = @transform_0, window_bounds = array<i64: 16, 128>}, {transform_indices = @transform_1, window_bounds = array<i64: 32, 128>}, {transform_indices = @transform_2, window_bounds = array<i64: 32, 128>}, {transform_indices = @transform_3, window_bounds = array<i64: 16, 128>}, {pipeline_mode = #tpu.pipeline_mode<synchronous>, transform_indices = @transform_4, window_bounds = array<i64: 128, 384>}, {pipeline_mode = #tpu.pipeline_mode<synchronous>, transform_indices = @transform_5, window_bounds = array<i64: 128, 384>}, {pipeline_mode = #tpu.pipeline_mode<synchronous>, transform_indices = @transform_6, window_bounds = array<i64: 128, 128>}, {pipeline_mode = #tpu.pipeline_mode<synchronous>, transform_indices = @transform_7, window_bounds = array<i64: 128, 128>}, {pipeline_mode = #tpu.pipeline_mode<synchronous>, transform_indices = @transform_8, window_bounds = array<i64: 128, 256>}, {pipeline_mode = #tpu.pipeline_mode<synchronous>, transform_indices = @transform_9, window_bounds = array<i64: 256, 128>}, {pipeline_mode = #tpu.pipeline_mode<synchronous>, transform_indices = @transform_10, window_bounds = array<i64: 1, 256>}, {pipeline_mode = #tpu.pipeline_mode<synchronous>, transform_indices = @transform_11, window_bounds = array<i64: 24, 32>}, {pipeline_mode = #tpu.pipeline_mode<synchronous>, transform_indices = @transform_12, window_bounds = array<i64: 9, 128>}, {transform_indices = @transform_13, window_bounds = array<i64: 16, 128>}]} {
    %c0 = arith.constant 0 : index
    %c0_0 = arith.constant 0 : index
    %0 = vector.load %arg1[%c0, %c0_0] : memref<16x128xf32, #tpu.memory_space<vmem>>, vector<16x128xf32>
    %c0_1 = arith.constant 0 : index
    %c0_2 = arith.constant 0 : index
    %1 = vector.load %arg2[%c0_1, %c0_2] : memref<32x128xf32, #tpu.memory_space<vmem>>, vector<32x128xf32>
    %c0_3 = arith.constant 0 : index
    %c0_4 = arith.constant 0 : index
    %2 = vector.load %arg3[%c0_3, %c0_4] : memref<32x128xf32, #tpu.memory_space<vmem>>, vector<32x128xf32>
    %c0_5 = arith.constant 0 : index
    %c0_6 = arith.constant 0 : index
    %3 = vector.load %arg4[%c0_5, %c0_6] : memref<16x128xf32, #tpu.memory_space<vmem>>, vector<16x128xf32>
    %4 = arith.addf %0, %3 : vector<16x128xf32>
    %5 = arith.truncf %4 : vector<16x128xf32> to vector<16x128xbf16>
    %6 = arith.truncf %4 : vector<16x128xf32> to vector<16x128xbf16>
    %7 = arith.truncf %0 : vector<16x128xf32> to vector<16x128xbf16>
    %cst = arith.constant 0.000000e+00 : f32
    %8 = vector.broadcast %cst : f32 to vector<16x128xf32>
    %c0_7 = arith.constant 0 : index
    %c0_8 = arith.constant 0 : index
    %9 = vector.load %arg5[%c0_7, %c0_8] : memref<128x384xbf16, #tpu.memory_space<vmem>>, vector<128x32xbf16>
    %c0_9 = arith.constant 0 : index
    %c128 = arith.constant 128 : index
    %10 = vector.load %arg5[%c0_9, %c128] : memref<128x384xbf16, #tpu.memory_space<vmem>>, vector<128x32xbf16>
    %c0_10 = arith.constant 0 : index
    %c256 = arith.constant 256 : index
    %11 = vector.load %arg5[%c0_10, %c256] : memref<128x384xbf16, #tpu.memory_space<vmem>>, vector<128x32xbf16>
    %c0_11 = arith.constant 0 : index
    %c0_12 = arith.constant 0 : index
    %12 = vector.load %arg12[%c0_11, %c0_12] : memref<24x32xf32, #tpu.memory_space<vmem>>, vector<1x32xf32>
    %c4 = arith.constant 4 : index
    %c0_13 = arith.constant 0 : index
    %13 = vector.load %arg12[%c4, %c0_13] : memref<24x32xf32, #tpu.memory_space<vmem>>, vector<1x32xf32>
    %c8 = arith.constant 8 : index
    %c0_14 = arith.constant 0 : index
    %14 = vector.load %arg12[%c8, %c0_14] : memref<24x32xf32, #tpu.memory_space<vmem>>, vector<1x32xf32>
    %cst_15 = arith.constant dense<0.000000e+00> : vector<16x32xf32>
    %15 = tpu.matmul %5, %9, %cst_15 {dimension_numbers = #tpu.dot_dimension_numbers<[1], [0], [0], [1], [0, 0, 1, 1], [], []>} : vector<16x128xbf16>, vector<128x32xbf16>, vector<16x32xf32> -> vector<16x32xf32>
    %16 = vector.broadcast %12 : vector<1x32xf32> to vector<16x32xf32>
    %17 = arith.addf %15, %16 : vector<16x32xf32>
    %cst_16 = arith.constant dense<0.000000e+00> : vector<16x32xf32>
    %18 = tpu.matmul %6, %10, %cst_16 {dimension_numbers = #tpu.dot_dimension_numbers<[1], [0], [0], [1], [0, 0, 1, 1], [], []>} : vector<16x128xbf16>, vector<128x32xbf16>, vector<16x32xf32> -> vector<16x32xf32>
    %19 = vector.broadcast %13 : vector<1x32xf32> to vector<16x32xf32>
    %20 = arith.addf %18, %19 : vector<16x32xf32>
    %cst_17 = arith.constant dense<0.000000e+00> : vector<16x32xf32>
    %21 = tpu.matmul %7, %11, %cst_17 {dimension_numbers = #tpu.dot_dimension_numbers<[1], [0], [0], [1], [0, 0, 1, 1], [], []>} : vector<16x128xbf16>, vector<128x32xbf16>, vector<16x32xf32> -> vector<16x32xf32>
    %22 = vector.broadcast %14 : vector<1x32xf32> to vector<16x32xf32>
    %23 = arith.addf %21, %22 : vector<16x32xf32>
    %24 = arith.truncf %23 : vector<16x32xf32> to vector<16x32xbf16>
    %25 = vector.extract_strided_slice %17 {offsets = [0, 0], sizes = [8, 32], strides = [1, 1]} : vector<16x32xf32> to vector<8x32xf32>
    %26 = arith.truncf %25 : vector<8x32xf32> to vector<8x32xbf16>
    %27 = vector.extract_strided_slice %20 {offsets = [0, 0], sizes = [8, 32], strides = [1, 1]} : vector<16x32xf32> to vector<8x32xf32>
    %28 = arith.truncf %27 : vector<8x32xf32> to vector<8x32xbf16>
    %29 = vector.extract_strided_slice %24 {offsets = [0, 0], sizes = [8, 32], strides = [1, 1]} : vector<16x32xbf16> to vector<8x32xbf16>
    %cst_18 = arith.constant dense<0.000000e+00> : vector<8x8xf32>
    %30 = tpu.matmul %26, %28, %cst_18 {dimension_numbers = #tpu.dot_dimension_numbers<[1], [1], [0], [0], [0, 0, 1, 0], [], []>} : vector<8x32xbf16>, vector<8x32xbf16>, vector<8x8xf32> -> vector<8x8xf32>
    %cst_19 = arith.constant 0.176776692 : f32
    %31 = vector.broadcast %cst_19 : f32 to vector<8x8xf32>
    %32 = arith.mulf %30, %31 : vector<8x8xf32>
    %cst_20 = arith.constant dense<0xFF800000> : vector<8xf32>
    %33 = vector.multi_reduction <maximumf>, %32, %cst_20 [1] : vector<8x8xf32> to vector<8xf32>
    %34 = vector.shape_cast %33 : vector<8xf32> to vector<8x1xf32>
    %35 = vector.broadcast %34 : vector<8x1xf32> to vector<8x8xf32>
    %36 = arith.subf %32, %35 : vector<8x8xf32>
    %37 = math.exp %36 : vector<8x8xf32>
    %cst_21 = arith.constant dense<0.000000e+00> : vector<8xf32>
    %38 = vector.multi_reduction <add>, %37, %cst_21 [1] : vector<8x8xf32> to vector<8xf32>
    %39 = vector.shape_cast %38 : vector<8xf32> to vector<8x1xf32>
    %40 = tpu.reciprocal %39 {approx = true} : vector<8x1xf32> -> vector<8x1xf32>
    %41 = vector.broadcast %40 : vector<8x1xf32> to vector<8x8xf32>
    %42 = arith.mulf %37, %41 : vector<8x8xf32>
    %43 = arith.truncf %42 : vector<8x8xf32> to vector<8x8xbf16>
    %cst_22 = arith.constant dense<0.000000e+00> : vector<8x32xf32>
    %44 = tpu.matmul %43, %29, %cst_22 {dimension_numbers = #tpu.dot_dimension_numbers<[1], [0], [0], [1], [0, 0, 1, 1], [], []>} : vector<8x8xbf16>, vector<8x32xbf16>, vector<8x32xf32> -> vector<8x32xf32>
    %45 = vector.extract_strided_slice %17 {offsets = [8, 0], sizes = [8, 32], strides = [1, 1]} : vector<16x32xf32> to vector<8x32xf32>
    %46 = arith.truncf %45 : vector<8x32xf32> to vector<8x32xbf16>
    %47 = vector.extract_strided_slice %20 {offsets = [8, 0], sizes = [8, 32], strides = [1, 1]} : vector<16x32xf32> to vector<8x32xf32>
    %48 = arith.truncf %47 : vector<8x32xf32> to vector<8x32xbf16>
    %49 = vector.extract_strided_slice %24 {offsets = [8, 0], sizes = [8, 32], strides = [1, 1]} : vector<16x32xbf16> to vector<8x32xbf16>
    %cst_23 = arith.constant dense<0.000000e+00> : vector<8x8xf32>
    %50 = tpu.matmul %46, %48, %cst_23 {dimension_numbers = #tpu.dot_dimension_numbers<[1], [1], [0], [0], [0, 0, 1, 0], [], []>} : vector<8x32xbf16>, vector<8x32xbf16>, vector<8x8xf32> -> vector<8x8xf32>
    %cst_24 = arith.constant 0.176776692 : f32
    %51 = vector.broadcast %cst_24 : f32 to vector<8x8xf32>
    %52 = arith.mulf %50, %51 : vector<8x8xf32>
    %cst_25 = arith.constant dense<0xFF800000> : vector<8xf32>
    %53 = vector.multi_reduction <maximumf>, %52, %cst_25 [1] : vector<8x8xf32> to vector<8xf32>
    %54 = vector.shape_cast %53 : vector<8xf32> to vector<8x1xf32>
    %55 = vector.broadcast %54 : vector<8x1xf32> to vector<8x8xf32>
    %56 = arith.subf %52, %55 : vector<8x8xf32>
    %57 = math.exp %56 : vector<8x8xf32>
    %cst_26 = arith.constant dense<0.000000e+00> : vector<8xf32>
    %58 = vector.multi_reduction <add>, %57, %cst_26 [1] : vector<8x8xf32> to vector<8xf32>
    %59 = vector.shape_cast %58 : vector<8xf32> to vector<8x1xf32>
    %60 = tpu.reciprocal %59 {approx = true} : vector<8x1xf32> -> vector<8x1xf32>
    %61 = vector.broadcast %60 : vector<8x1xf32> to vector<8x8xf32>
    %62 = arith.mulf %57, %61 : vector<8x8xf32>
    %63 = arith.truncf %62 : vector<8x8xf32> to vector<8x8xbf16>
    %cst_27 = arith.constant dense<0.000000e+00> : vector<8x32xf32>
    %64 = tpu.matmul %63, %49, %cst_27 {dimension_numbers = #tpu.dot_dimension_numbers<[1], [0], [0], [1], [0, 0, 1, 1], [], []>} : vector<8x8xbf16>, vector<8x32xbf16>, vector<8x32xf32> -> vector<8x32xf32>
    %65 = tpu.concatenate %44, %64 in 0 : vector<8x32xf32>, vector<8x32xf32> -> vector<16x32xf32>
    %c0_28 = arith.constant 0 : index
    %c0_29 = arith.constant 0 : index
    %66 = vector.load %arg7[%c0_28, %c0_29] : memref<128x128xbf16, #tpu.memory_space<vmem>>, vector<32x128xbf16>
    %67 = arith.truncf %65 : vector<16x32xf32> to vector<16x32xbf16>
    %cst_30 = arith.constant dense<0.000000e+00> : vector<16x128xf32>
    %68 = tpu.matmul %67, %66, %cst_30 {dimension_numbers = #tpu.dot_dimension_numbers<[1], [0], [0], [1], [0, 0, 1, 1], [], []>} : vector<16x32xbf16>, vector<32x128xbf16>, vector<16x128xf32> -> vector<16x128xf32>
    %69 = arith.addf %8, %68 : vector<16x128xf32>
    %c0_31 = arith.constant 0 : index
    %c32 = arith.constant 32 : index
    %70 = vector.load %arg5[%c0_31, %c32] : memref<128x384xbf16, #tpu.memory_space<vmem>>, vector<128x32xbf16>
    %c0_32 = arith.constant 0 : index
    %c160 = arith.constant 160 : index
    %71 = vector.load %arg5[%c0_32, %c160] : memref<128x384xbf16, #tpu.memory_space<vmem>>, vector<128x32xbf16>
    %c0_33 = arith.constant 0 : index
    %c288 = arith.constant 288 : index
    %72 = vector.load %arg5[%c0_33, %c288] : memref<128x384xbf16, #tpu.memory_space<vmem>>, vector<128x32xbf16>
    %c1 = arith.constant 1 : index
    %c0_34 = arith.constant 0 : index
    %73 = vector.load %arg12[%c1, %c0_34] : memref<24x32xf32, #tpu.memory_space<vmem>>, vector<1x32xf32>
    %c5 = arith.constant 5 : index
    %c0_35 = arith.constant 0 : index
    %74 = vector.load %arg12[%c5, %c0_35] : memref<24x32xf32, #tpu.memory_space<vmem>>, vector<1x32xf32>
    %c9 = arith.constant 9 : index
    %c0_36 = arith.constant 0 : index
    %75 = vector.load %arg12[%c9, %c0_36] : memref<24x32xf32, #tpu.memory_space<vmem>>, vector<1x32xf32>
    %cst_37 = arith.constant dense<0.000000e+00> : vector<16x32xf32>
    %76 = tpu.matmul %5, %70, %cst_37 {dimension_numbers = #tpu.dot_dimension_numbers<[1], [0], [0], [1], [0, 0, 1, 1], [], []>} : vector<16x128xbf16>, vector<128x32xbf16>, vector<16x32xf32> -> vector<16x32xf32>
    %77 = vector.broadcast %73 : vector<1x32xf32> to vector<16x32xf32>
    %78 = arith.addf %76, %77 : vector<16x32xf32>
    %cst_38 = arith.constant dense<0.000000e+00> : vector<16x32xf32>
    %79 = tpu.matmul %6, %71, %cst_38 {dimension_numbers = #tpu.dot_dimension_numbers<[1], [0], [0], [1], [0, 0, 1, 1], [], []>} : vector<16x128xbf16>, vector<128x32xbf16>, vector<16x32xf32> -> vector<16x32xf32>
    %80 = vector.broadcast %74 : vector<1x32xf32> to vector<16x32xf32>
    %81 = arith.addf %79, %80 : vector<16x32xf32>
    %cst_39 = arith.constant dense<0.000000e+00> : vector<16x32xf32>
    %82 = tpu.matmul %7, %72, %cst_39 {dimension_numbers = #tpu.dot_dimension_numbers<[1], [0], [0], [1], [0, 0, 1, 1], [], []>} : vector<16x128xbf16>, vector<128x32xbf16>, vector<16x32xf32> -> vector<16x32xf32>
    %83 = vector.broadcast %75 : vector<1x32xf32> to vector<16x32xf32>
    %84 = arith.addf %82, %83 : vector<16x32xf32>
    %85 = arith.truncf %84 : vector<16x32xf32> to vector<16x32xbf16>
    %86 = vector.extract_strided_slice %78 {offsets = [0, 0], sizes = [8, 32], strides = [1, 1]} : vector<16x32xf32> to vector<8x32xf32>
    %87 = arith.truncf %86 : vector<8x32xf32> to vector<8x32xbf16>
    %88 = vector.extract_strided_slice %81 {offsets = [0, 0], sizes = [8, 32], strides = [1, 1]} : vector<16x32xf32> to vector<8x32xf32>
    %89 = arith.truncf %88 : vector<8x32xf32> to vector<8x32xbf16>
    %90 = vector.extract_strided_slice %85 {offsets = [0, 0], sizes = [8, 32], strides = [1, 1]} : vector<16x32xbf16> to vector<8x32xbf16>
    %cst_40 = arith.constant dense<0.000000e+00> : vector<8x8xf32>
    %91 = tpu.matmul %87, %89, %cst_40 {dimension_numbers = #tpu.dot_dimension_numbers<[1], [1], [0], [0], [0, 0, 1, 0], [], []>} : vector<8x32xbf16>, vector<8x32xbf16>, vector<8x8xf32> -> vector<8x8xf32>
    %cst_41 = arith.constant 0.176776692 : f32
    %92 = vector.broadcast %cst_41 : f32 to vector<8x8xf32>
    %93 = arith.mulf %91, %92 : vector<8x8xf32>
    %cst_42 = arith.constant dense<0xFF800000> : vector<8xf32>
    %94 = vector.multi_reduction <maximumf>, %93, %cst_42 [1] : vector<8x8xf32> to vector<8xf32>
    %95 = vector.shape_cast %94 : vector<8xf32> to vector<8x1xf32>
    %96 = vector.broadcast %95 : vector<8x1xf32> to vector<8x8xf32>
    %97 = arith.subf %93, %96 : vector<8x8xf32>
    %98 = math.exp %97 : vector<8x8xf32>
    %cst_43 = arith.constant dense<0.000000e+00> : vector<8xf32>
    %99 = vector.multi_reduction <add>, %98, %cst_43 [1] : vector<8x8xf32> to vector<8xf32>
    %100 = vector.shape_cast %99 : vector<8xf32> to vector<8x1xf32>
    %101 = tpu.reciprocal %100 {approx = true} : vector<8x1xf32> -> vector<8x1xf32>
    %102 = vector.broadcast %101 : vector<8x1xf32> to vector<8x8xf32>
    %103 = arith.mulf %98, %102 : vector<8x8xf32>
    %104 = arith.truncf %103 : vector<8x8xf32> to vector<8x8xbf16>
    %cst_44 = arith.constant dense<0.000000e+00> : vector<8x32xf32>
    %105 = tpu.matmul %104, %90, %cst_44 {dimension_numbers = #tpu.dot_dimension_numbers<[1], [0], [0], [1], [0, 0, 1, 1], [], []>} : vector<8x8xbf16>, vector<8x32xbf16>, vector<8x32xf32> -> vector<8x32xf32>
    %106 = vector.extract_strided_slice %78 {offsets = [8, 0], sizes = [8, 32], strides = [1, 1]} : vector<16x32xf32> to vector<8x32xf32>
    %107 = arith.truncf %106 : vector<8x32xf32> to vector<8x32xbf16>
    %108 = vector.extract_strided_slice %81 {offsets = [8, 0], sizes = [8, 32], strides = [1, 1]} : vector<16x32xf32> to vector<8x32xf32>
    %109 = arith.truncf %108 : vector<8x32xf32> to vector<8x32xbf16>
    %110 = vector.extract_strided_slice %85 {offsets = [8, 0], sizes = [8, 32], strides = [1, 1]} : vector<16x32xbf16> to vector<8x32xbf16>
    %cst_45 = arith.constant dense<0.000000e+00> : vector<8x8xf32>
    %111 = tpu.matmul %107, %109, %cst_45 {dimension_numbers = #tpu.dot_dimension_numbers<[1], [1], [0], [0], [0, 0, 1, 0], [], []>} : vector<8x32xbf16>, vector<8x32xbf16>, vector<8x8xf32> -> vector<8x8xf32>
    %cst_46 = arith.constant 0.176776692 : f32
    %112 = vector.broadcast %cst_46 : f32 to vector<8x8xf32>
    %113 = arith.mulf %111, %112 : vector<8x8xf32>
    %cst_47 = arith.constant dense<0xFF800000> : vector<8xf32>
    %114 = vector.multi_reduction <maximumf>, %113, %cst_47 [1] : vector<8x8xf32> to vector<8xf32>
    %115 = vector.shape_cast %114 : vector<8xf32> to vector<8x1xf32>
    %116 = vector.broadcast %115 : vector<8x1xf32> to vector<8x8xf32>
    %117 = arith.subf %113, %116 : vector<8x8xf32>
    %118 = math.exp %117 : vector<8x8xf32>
    %cst_48 = arith.constant dense<0.000000e+00> : vector<8xf32>
    %119 = vector.multi_reduction <add>, %118, %cst_48 [1] : vector<8x8xf32> to vector<8xf32>
    %120 = vector.shape_cast %119 : vector<8xf32> to vector<8x1xf32>
    %121 = tpu.reciprocal %120 {approx = true} : vector<8x1xf32> -> vector<8x1xf32>
    %122 = vector.broadcast %121 : vector<8x1xf32> to vector<8x8xf32>
    %123 = arith.mulf %118, %122 : vector<8x8xf32>
    %124 = arith.truncf %123 : vector<8x8xf32> to vector<8x8xbf16>
    %cst_49 = arith.constant dense<0.000000e+00> : vector<8x32xf32>
    %125 = tpu.matmul %124, %110, %cst_49 {dimension_numbers = #tpu.dot_dimension_numbers<[1], [0], [0], [1], [0, 0, 1, 1], [], []>} : vector<8x8xbf16>, vector<8x32xbf16>, vector<8x32xf32> -> vector<8x32xf32>
    %126 = tpu.concatenate %105, %125 in 0 : vector<8x32xf32>, vector<8x32xf32> -> vector<16x32xf32>
    %c32_50 = arith.constant 32 : index
    %c0_51 = arith.constant 0 : index
    %127 = vector.load %arg7[%c32_50, %c0_51] : memref<128x128xbf16, #tpu.memory_space<vmem>>, vector<32x128xbf16>
    %128 = arith.truncf %126 : vector<16x32xf32> to vector<16x32xbf16>
    %cst_52 = arith.constant dense<0.000000e+00> : vector<16x128xf32>
    %129 = tpu.matmul %128, %127, %cst_52 {dimension_numbers = #tpu.dot_dimension_numbers<[1], [0], [0], [1], [0, 0, 1, 1], [], []>} : vector<16x32xbf16>, vector<32x128xbf16>, vector<16x128xf32> -> vector<16x128xf32>
    %130 = arith.addf %69, %129 : vector<16x128xf32>
    %c0_53 = arith.constant 0 : index
    %c64 = arith.constant 64 : index
    %131 = vector.load %arg5[%c0_53, %c64] : memref<128x384xbf16, #tpu.memory_space<vmem>>, vector<128x32xbf16>
    %c0_54 = arith.constant 0 : index
    %c192 = arith.constant 192 : index
    %132 = vector.load %arg5[%c0_54, %c192] : memref<128x384xbf16, #tpu.memory_space<vmem>>, vector<128x32xbf16>
    %c0_55 = arith.constant 0 : index
    %c320 = arith.constant 320 : index
    %133 = vector.load %arg5[%c0_55, %c320] : memref<128x384xbf16, #tpu.memory_space<vmem>>, vector<128x32xbf16>
    %c2 = arith.constant 2 : index
    %c0_56 = arith.constant 0 : index
    %134 = vector.load %arg12[%c2, %c0_56] : memref<24x32xf32, #tpu.memory_space<vmem>>, vector<1x32xf32>
    %c6 = arith.constant 6 : index
    %c0_57 = arith.constant 0 : index
    %135 = vector.load %arg12[%c6, %c0_57] : memref<24x32xf32, #tpu.memory_space<vmem>>, vector<1x32xf32>
    %c10 = arith.constant 10 : index
    %c0_58 = arith.constant 0 : index
    %136 = vector.load %arg12[%c10, %c0_58] : memref<24x32xf32, #tpu.memory_space<vmem>>, vector<1x32xf32>
    %cst_59 = arith.constant dense<0.000000e+00> : vector<16x32xf32>
    %137 = tpu.matmul %5, %131, %cst_59 {dimension_numbers = #tpu.dot_dimension_numbers<[1], [0], [0], [1], [0, 0, 1, 1], [], []>} : vector<16x128xbf16>, vector<128x32xbf16>, vector<16x32xf32> -> vector<16x32xf32>
    %138 = vector.broadcast %134 : vector<1x32xf32> to vector<16x32xf32>
    %139 = arith.addf %137, %138 : vector<16x32xf32>
    %cst_60 = arith.constant dense<0.000000e+00> : vector<16x32xf32>
    %140 = tpu.matmul %6, %132, %cst_60 {dimension_numbers = #tpu.dot_dimension_numbers<[1], [0], [0], [1], [0, 0, 1, 1], [], []>} : vector<16x128xbf16>, vector<128x32xbf16>, vector<16x32xf32> -> vector<16x32xf32>
    %141 = vector.broadcast %135 : vector<1x32xf32> to vector<16x32xf32>
    %142 = arith.addf %140, %141 : vector<16x32xf32>
    %cst_61 = arith.constant dense<0.000000e+00> : vector<16x32xf32>
    %143 = tpu.matmul %7, %133, %cst_61 {dimension_numbers = #tpu.dot_dimension_numbers<[1], [0], [0], [1], [0, 0, 1, 1], [], []>} : vector<16x128xbf16>, vector<128x32xbf16>, vector<16x32xf32> -> vector<16x32xf32>
    %144 = vector.broadcast %136 : vector<1x32xf32> to vector<16x32xf32>
    %145 = arith.addf %143, %144 : vector<16x32xf32>
    %146 = arith.truncf %145 : vector<16x32xf32> to vector<16x32xbf16>
    %147 = vector.extract_strided_slice %139 {offsets = [0, 0], sizes = [8, 32], strides = [1, 1]} : vector<16x32xf32> to vector<8x32xf32>
    %148 = arith.truncf %147 : vector<8x32xf32> to vector<8x32xbf16>
    %149 = vector.extract_strided_slice %142 {offsets = [0, 0], sizes = [8, 32], strides = [1, 1]} : vector<16x32xf32> to vector<8x32xf32>
    %150 = arith.truncf %149 : vector<8x32xf32> to vector<8x32xbf16>
    %151 = vector.extract_strided_slice %146 {offsets = [0, 0], sizes = [8, 32], strides = [1, 1]} : vector<16x32xbf16> to vector<8x32xbf16>
    %cst_62 = arith.constant dense<0.000000e+00> : vector<8x8xf32>
    %152 = tpu.matmul %148, %150, %cst_62 {dimension_numbers = #tpu.dot_dimension_numbers<[1], [1], [0], [0], [0, 0, 1, 0], [], []>} : vector<8x32xbf16>, vector<8x32xbf16>, vector<8x8xf32> -> vector<8x8xf32>
    %cst_63 = arith.constant 0.176776692 : f32
    %153 = vector.broadcast %cst_63 : f32 to vector<8x8xf32>
    %154 = arith.mulf %152, %153 : vector<8x8xf32>
    %cst_64 = arith.constant dense<0xFF800000> : vector<8xf32>
    %155 = vector.multi_reduction <maximumf>, %154, %cst_64 [1] : vector<8x8xf32> to vector<8xf32>
    %156 = vector.shape_cast %155 : vector<8xf32> to vector<8x1xf32>
    %157 = vector.broadcast %156 : vector<8x1xf32> to vector<8x8xf32>
    %158 = arith.subf %154, %157 : vector<8x8xf32>
    %159 = math.exp %158 : vector<8x8xf32>
    %cst_65 = arith.constant dense<0.000000e+00> : vector<8xf32>
    %160 = vector.multi_reduction <add>, %159, %cst_65 [1] : vector<8x8xf32> to vector<8xf32>
    %161 = vector.shape_cast %160 : vector<8xf32> to vector<8x1xf32>
    %162 = tpu.reciprocal %161 {approx = true} : vector<8x1xf32> -> vector<8x1xf32>
    %163 = vector.broadcast %162 : vector<8x1xf32> to vector<8x8xf32>
    %164 = arith.mulf %159, %163 : vector<8x8xf32>
    %165 = arith.truncf %164 : vector<8x8xf32> to vector<8x8xbf16>
    %cst_66 = arith.constant dense<0.000000e+00> : vector<8x32xf32>
    %166 = tpu.matmul %165, %151, %cst_66 {dimension_numbers = #tpu.dot_dimension_numbers<[1], [0], [0], [1], [0, 0, 1, 1], [], []>} : vector<8x8xbf16>, vector<8x32xbf16>, vector<8x32xf32> -> vector<8x32xf32>
    %167 = vector.extract_strided_slice %139 {offsets = [8, 0], sizes = [8, 32], strides = [1, 1]} : vector<16x32xf32> to vector<8x32xf32>
    %168 = arith.truncf %167 : vector<8x32xf32> to vector<8x32xbf16>
    %169 = vector.extract_strided_slice %142 {offsets = [8, 0], sizes = [8, 32], strides = [1, 1]} : vector<16x32xf32> to vector<8x32xf32>
    %170 = arith.truncf %169 : vector<8x32xf32> to vector<8x32xbf16>
    %171 = vector.extract_strided_slice %146 {offsets = [8, 0], sizes = [8, 32], strides = [1, 1]} : vector<16x32xbf16> to vector<8x32xbf16>
    %cst_67 = arith.constant dense<0.000000e+00> : vector<8x8xf32>
    %172 = tpu.matmul %168, %170, %cst_67 {dimension_numbers = #tpu.dot_dimension_numbers<[1], [1], [0], [0], [0, 0, 1, 0], [], []>} : vector<8x32xbf16>, vector<8x32xbf16>, vector<8x8xf32> -> vector<8x8xf32>
    %cst_68 = arith.constant 0.176776692 : f32
    %173 = vector.broadcast %cst_68 : f32 to vector<8x8xf32>
    %174 = arith.mulf %172, %173 : vector<8x8xf32>
    %cst_69 = arith.constant dense<0xFF800000> : vector<8xf32>
    %175 = vector.multi_reduction <maximumf>, %174, %cst_69 [1] : vector<8x8xf32> to vector<8xf32>
    %176 = vector.shape_cast %175 : vector<8xf32> to vector<8x1xf32>
    %177 = vector.broadcast %176 : vector<8x1xf32> to vector<8x8xf32>
    %178 = arith.subf %174, %177 : vector<8x8xf32>
    %179 = math.exp %178 : vector<8x8xf32>
    %cst_70 = arith.constant dense<0.000000e+00> : vector<8xf32>
    %180 = vector.multi_reduction <add>, %179, %cst_70 [1] : vector<8x8xf32> to vector<8xf32>
    %181 = vector.shape_cast %180 : vector<8xf32> to vector<8x1xf32>
    %182 = tpu.reciprocal %181 {approx = true} : vector<8x1xf32> -> vector<8x1xf32>
    %183 = vector.broadcast %182 : vector<8x1xf32> to vector<8x8xf32>
    %184 = arith.mulf %179, %183 : vector<8x8xf32>
    %185 = arith.truncf %184 : vector<8x8xf32> to vector<8x8xbf16>
    %cst_71 = arith.constant dense<0.000000e+00> : vector<8x32xf32>
    %186 = tpu.matmul %185, %171, %cst_71 {dimension_numbers = #tpu.dot_dimension_numbers<[1], [0], [0], [1], [0, 0, 1, 1], [], []>} : vector<8x8xbf16>, vector<8x32xbf16>, vector<8x32xf32> -> vector<8x32xf32>
    %187 = tpu.concatenate %166, %186 in 0 : vector<8x32xf32>, vector<8x32xf32> -> vector<16x32xf32>
    %c64_72 = arith.constant 64 : index
    %c0_73 = arith.constant 0 : index
    %188 = vector.load %arg7[%c64_72, %c0_73] : memref<128x128xbf16, #tpu.memory_space<vmem>>, vector<32x128xbf16>
    %189 = arith.truncf %187 : vector<16x32xf32> to vector<16x32xbf16>
    %cst_74 = arith.constant dense<0.000000e+00> : vector<16x128xf32>
    %190 = tpu.matmul %189, %188, %cst_74 {dimension_numbers = #tpu.dot_dimension_numbers<[1], [0], [0], [1], [0, 0, 1, 1], [], []>} : vector<16x32xbf16>, vector<32x128xbf16>, vector<16x128xf32> -> vector<16x128xf32>
    %191 = arith.addf %130, %190 : vector<16x128xf32>
    %c0_75 = arith.constant 0 : index
    %c96 = arith.constant 96 : index
    %192 = vector.load %arg5[%c0_75, %c96] : memref<128x384xbf16, #tpu.memory_space<vmem>>, vector<128x32xbf16>
    %c0_76 = arith.constant 0 : index
    %c224 = arith.constant 224 : index
    %193 = vector.load %arg5[%c0_76, %c224] : memref<128x384xbf16, #tpu.memory_space<vmem>>, vector<128x32xbf16>
    %c0_77 = arith.constant 0 : index
    %c352 = arith.constant 352 : index
    %194 = vector.load %arg5[%c0_77, %c352] : memref<128x384xbf16, #tpu.memory_space<vmem>>, vector<128x32xbf16>
    %c3 = arith.constant 3 : index
    %c0_78 = arith.constant 0 : index
    %195 = vector.load %arg12[%c3, %c0_78] : memref<24x32xf32, #tpu.memory_space<vmem>>, vector<1x32xf32>
    %c7 = arith.constant 7 : index
    %c0_79 = arith.constant 0 : index
    %196 = vector.load %arg12[%c7, %c0_79] : memref<24x32xf32, #tpu.memory_space<vmem>>, vector<1x32xf32>
    %c11 = arith.constant 11 : index
    %c0_80 = arith.constant 0 : index
    %197 = vector.load %arg12[%c11, %c0_80] : memref<24x32xf32, #tpu.memory_space<vmem>>, vector<1x32xf32>
    %cst_81 = arith.constant dense<0.000000e+00> : vector<16x32xf32>
    %198 = tpu.matmul %5, %192, %cst_81 {dimension_numbers = #tpu.dot_dimension_numbers<[1], [0], [0], [1], [0, 0, 1, 1], [], []>} : vector<16x128xbf16>, vector<128x32xbf16>, vector<16x32xf32> -> vector<16x32xf32>
    %199 = vector.broadcast %195 : vector<1x32xf32> to vector<16x32xf32>
    %200 = arith.addf %198, %199 : vector<16x32xf32>
    %cst_82 = arith.constant dense<0.000000e+00> : vector<16x32xf32>
    %201 = tpu.matmul %6, %193, %cst_82 {dimension_numbers = #tpu.dot_dimension_numbers<[1], [0], [0], [1], [0, 0, 1, 1], [], []>} : vector<16x128xbf16>, vector<128x32xbf16>, vector<16x32xf32> -> vector<16x32xf32>
    %202 = vector.broadcast %196 : vector<1x32xf32> to vector<16x32xf32>
    %203 = arith.addf %201, %202 : vector<16x32xf32>
    %cst_83 = arith.constant dense<0.000000e+00> : vector<16x32xf32>
    %204 = tpu.matmul %7, %194, %cst_83 {dimension_numbers = #tpu.dot_dimension_numbers<[1], [0], [0], [1], [0, 0, 1, 1], [], []>} : vector<16x128xbf16>, vector<128x32xbf16>, vector<16x32xf32> -> vector<16x32xf32>
    %205 = vector.broadcast %197 : vector<1x32xf32> to vector<16x32xf32>
    %206 = arith.addf %204, %205 : vector<16x32xf32>
    %207 = arith.truncf %206 : vector<16x32xf32> to vector<16x32xbf16>
    %208 = vector.extract_strided_slice %200 {offsets = [0, 0], sizes = [8, 32], strides = [1, 1]} : vector<16x32xf32> to vector<8x32xf32>
    %209 = arith.truncf %208 : vector<8x32xf32> to vector<8x32xbf16>
    %210 = vector.extract_strided_slice %203 {offsets = [0, 0], sizes = [8, 32], strides = [1, 1]} : vector<16x32xf32> to vector<8x32xf32>
    %211 = arith.truncf %210 : vector<8x32xf32> to vector<8x32xbf16>
    %212 = vector.extract_strided_slice %207 {offsets = [0, 0], sizes = [8, 32], strides = [1, 1]} : vector<16x32xbf16> to vector<8x32xbf16>
    %cst_84 = arith.constant dense<0.000000e+00> : vector<8x8xf32>
    %213 = tpu.matmul %209, %211, %cst_84 {dimension_numbers = #tpu.dot_dimension_numbers<[1], [1], [0], [0], [0, 0, 1, 0], [], []>} : vector<8x32xbf16>, vector<8x32xbf16>, vector<8x8xf32> -> vector<8x8xf32>
    %cst_85 = arith.constant 0.176776692 : f32
    %214 = vector.broadcast %cst_85 : f32 to vector<8x8xf32>
    %215 = arith.mulf %213, %214 : vector<8x8xf32>
    %cst_86 = arith.constant dense<0xFF800000> : vector<8xf32>
    %216 = vector.multi_reduction <maximumf>, %215, %cst_86 [1] : vector<8x8xf32> to vector<8xf32>
    %217 = vector.shape_cast %216 : vector<8xf32> to vector<8x1xf32>
    %218 = vector.broadcast %217 : vector<8x1xf32> to vector<8x8xf32>
    %219 = arith.subf %215, %218 : vector<8x8xf32>
    %220 = math.exp %219 : vector<8x8xf32>
    %cst_87 = arith.constant dense<0.000000e+00> : vector<8xf32>
    %221 = vector.multi_reduction <add>, %220, %cst_87 [1] : vector<8x8xf32> to vector<8xf32>
    %222 = vector.shape_cast %221 : vector<8xf32> to vector<8x1xf32>
    %223 = tpu.reciprocal %222 {approx = true} : vector<8x1xf32> -> vector<8x1xf32>
    %224 = vector.broadcast %223 : vector<8x1xf32> to vector<8x8xf32>
    %225 = arith.mulf %220, %224 : vector<8x8xf32>
    %226 = arith.truncf %225 : vector<8x8xf32> to vector<8x8xbf16>
    %cst_88 = arith.constant dense<0.000000e+00> : vector<8x32xf32>
    %227 = tpu.matmul %226, %212, %cst_88 {dimension_numbers = #tpu.dot_dimension_numbers<[1], [0], [0], [1], [0, 0, 1, 1], [], []>} : vector<8x8xbf16>, vector<8x32xbf16>, vector<8x32xf32> -> vector<8x32xf32>
    %228 = vector.extract_strided_slice %200 {offsets = [8, 0], sizes = [8, 32], strides = [1, 1]} : vector<16x32xf32> to vector<8x32xf32>
    %229 = arith.truncf %228 : vector<8x32xf32> to vector<8x32xbf16>
    %230 = vector.extract_strided_slice %203 {offsets = [8, 0], sizes = [8, 32], strides = [1, 1]} : vector<16x32xf32> to vector<8x32xf32>
    %231 = arith.truncf %230 : vector<8x32xf32> to vector<8x32xbf16>
    %232 = vector.extract_strided_slice %207 {offsets = [8, 0], sizes = [8, 32], strides = [1, 1]} : vector<16x32xbf16> to vector<8x32xbf16>
    %cst_89 = arith.constant dense<0.000000e+00> : vector<8x8xf32>
    %233 = tpu.matmul %229, %231, %cst_89 {dimension_numbers = #tpu.dot_dimension_numbers<[1], [1], [0], [0], [0, 0, 1, 0], [], []>} : vector<8x32xbf16>, vector<8x32xbf16>, vector<8x8xf32> -> vector<8x8xf32>
    %cst_90 = arith.constant 0.176776692 : f32
    %234 = vector.broadcast %cst_90 : f32 to vector<8x8xf32>
    %235 = arith.mulf %233, %234 : vector<8x8xf32>
    %cst_91 = arith.constant dense<0xFF800000> : vector<8xf32>
    %236 = vector.multi_reduction <maximumf>, %235, %cst_91 [1] : vector<8x8xf32> to vector<8xf32>
    %237 = vector.shape_cast %236 : vector<8xf32> to vector<8x1xf32>
    %238 = vector.broadcast %237 : vector<8x1xf32> to vector<8x8xf32>
    %239 = arith.subf %235, %238 : vector<8x8xf32>
    %240 = math.exp %239 : vector<8x8xf32>
    %cst_92 = arith.constant dense<0.000000e+00> : vector<8xf32>
    %241 = vector.multi_reduction <add>, %240, %cst_92 [1] : vector<8x8xf32> to vector<8xf32>
    %242 = vector.shape_cast %241 : vector<8xf32> to vector<8x1xf32>
    %243 = tpu.reciprocal %242 {approx = true} : vector<8x1xf32> -> vector<8x1xf32>
    %244 = vector.broadcast %243 : vector<8x1xf32> to vector<8x8xf32>
    %245 = arith.mulf %240, %244 : vector<8x8xf32>
    %246 = arith.truncf %245 : vector<8x8xf32> to vector<8x8xbf16>
    %cst_93 = arith.constant dense<0.000000e+00> : vector<8x32xf32>
    %247 = tpu.matmul %246, %232, %cst_93 {dimension_numbers = #tpu.dot_dimension_numbers<[1], [0], [0], [1], [0, 0, 1, 1], [], []>} : vector<8x8xbf16>, vector<8x32xbf16>, vector<8x32xf32> -> vector<8x32xf32>
    %248 = tpu.concatenate %227, %247 in 0 : vector<8x32xf32>, vector<8x32xf32> -> vector<16x32xf32>
    %c96_94 = arith.constant 96 : index
    %c0_95 = arith.constant 0 : index
    %249 = vector.load %arg7[%c96_94, %c0_95] : memref<128x128xbf16, #tpu.memory_space<vmem>>, vector<32x128xbf16>
    %250 = arith.truncf %248 : vector<16x32xf32> to vector<16x32xbf16>
    %cst_96 = arith.constant dense<0.000000e+00> : vector<16x128xf32>
    %251 = tpu.matmul %250, %249, %cst_96 {dimension_numbers = #tpu.dot_dimension_numbers<[1], [0], [0], [1], [0, 0, 1, 1], [], []>} : vector<16x32xbf16>, vector<32x128xbf16>, vector<16x128xf32> -> vector<16x128xf32>
    %252 = arith.addf %191, %251 : vector<16x128xf32>
    %c0_97 = arith.constant 0 : index
    %c0_98 = arith.constant 0 : index
    %253 = vector.load %arg13[%c0_97, %c0_98] : memref<9x128xf32, #tpu.memory_space<vmem>>, vector<1x128xf32>
    %254 = vector.broadcast %253 : vector<1x128xf32> to vector<16x128xf32>
    %255 = arith.addf %252, %254 : vector<16x128xf32>
    %256 = arith.addf %0, %255 : vector<16x128xf32>
    %cst_99 = arith.constant dense<0.000000e+00> : vector<16xf32>
    %257 = vector.multi_reduction <add>, %256, %cst_99 [1] : vector<16x128xf32> to vector<16xf32>
    %258 = vector.shape_cast %257 : vector<16xf32> to vector<16x1xf32>
    %cst_100 = arith.constant 1.280000e+02 : f32
    %259 = vector.broadcast %cst_100 : f32 to vector<16x1xf32>
    %260 = arith.divf %258, %259 : vector<16x1xf32>
    %261 = vector.broadcast %260 : vector<16x1xf32> to vector<16x128xf32>
    %262 = arith.subf %256, %261 : vector<16x128xf32>
    %263 = arith.mulf %262, %262 : vector<16x128xf32>
    %cst_101 = arith.constant dense<0.000000e+00> : vector<16xf32>
    %264 = vector.multi_reduction <add>, %263, %cst_101 [1] : vector<16x128xf32> to vector<16xf32>
    %265 = vector.shape_cast %264 : vector<16xf32> to vector<16x1xf32>
    %cst_102 = arith.constant 1.280000e+02 : f32
    %266 = vector.broadcast %cst_102 : f32 to vector<16x1xf32>
    %267 = arith.divf %265, %266 : vector<16x1xf32>
    %cst_103 = arith.constant 9.99999974E-6 : f32
    %268 = vector.broadcast %cst_103 : f32 to vector<16x1xf32>
    %269 = arith.addf %267, %268 : vector<16x1xf32>
    %270 = math.rsqrt %269 : vector<16x1xf32>
    %271 = vector.broadcast %270 : vector<16x1xf32> to vector<16x128xf32>
    %272 = arith.mulf %262, %271 : vector<16x128xf32>
    %c3_104 = arith.constant 3 : index
    %c0_105 = arith.constant 0 : index
    %273 = vector.load %arg13[%c3_104, %c0_105] : memref<9x128xf32, #tpu.memory_space<vmem>>, vector<1x128xf32>
    %274 = vector.broadcast %273 : vector<1x128xf32> to vector<16x128xf32>
    %275 = arith.mulf %272, %274 : vector<16x128xf32>
    %c4_106 = arith.constant 4 : index
    %c0_107 = arith.constant 0 : index
    %276 = vector.load %arg13[%c4_106, %c0_107] : memref<9x128xf32, #tpu.memory_space<vmem>>, vector<1x128xf32>
    %277 = vector.broadcast %276 : vector<1x128xf32> to vector<16x128xf32>
    %278 = arith.addf %275, %277 : vector<16x128xf32>
    %279 = arith.addf %278, %3 : vector<16x128xf32>
    %280 = arith.addf %1, %2 : vector<32x128xf32>
    %281 = arith.truncf %279 : vector<16x128xf32> to vector<16x128xbf16>
    %282 = arith.truncf %280 : vector<32x128xf32> to vector<32x128xbf16>
    %283 = arith.truncf %1 : vector<32x128xf32> to vector<32x128xbf16>
    %cst_108 = arith.constant 0.000000e+00 : f32
    %284 = vector.broadcast %cst_108 : f32 to vector<16x128xf32>
    %c0_109 = arith.constant 0 : index
    %c0_110 = arith.constant 0 : index
    %285 = vector.load %arg6[%c0_109, %c0_110] : memref<128x384xbf16, #tpu.memory_space<vmem>>, vector<128x32xbf16>
    %c0_111 = arith.constant 0 : index
    %c128_112 = arith.constant 128 : index
    %286 = vector.load %arg6[%c0_111, %c128_112] : memref<128x384xbf16, #tpu.memory_space<vmem>>, vector<128x32xbf16>
    %c0_113 = arith.constant 0 : index
    %c256_114 = arith.constant 256 : index
    %287 = vector.load %arg6[%c0_113, %c256_114] : memref<128x384xbf16, #tpu.memory_space<vmem>>, vector<128x32xbf16>
    %c12 = arith.constant 12 : index
    %c0_115 = arith.constant 0 : index
    %288 = vector.load %arg12[%c12, %c0_115] : memref<24x32xf32, #tpu.memory_space<vmem>>, vector<1x32xf32>
    %c16 = arith.constant 16 : index
    %c0_116 = arith.constant 0 : index
    %289 = vector.load %arg12[%c16, %c0_116] : memref<24x32xf32, #tpu.memory_space<vmem>>, vector<1x32xf32>
    %c20 = arith.constant 20 : index
    %c0_117 = arith.constant 0 : index
    %290 = vector.load %arg12[%c20, %c0_117] : memref<24x32xf32, #tpu.memory_space<vmem>>, vector<1x32xf32>
    %cst_118 = arith.constant dense<0.000000e+00> : vector<16x32xf32>
    %291 = tpu.matmul %281, %285, %cst_118 {dimension_numbers = #tpu.dot_dimension_numbers<[1], [0], [0], [1], [0, 0, 1, 1], [], []>} : vector<16x128xbf16>, vector<128x32xbf16>, vector<16x32xf32> -> vector<16x32xf32>
    %292 = vector.broadcast %288 : vector<1x32xf32> to vector<16x32xf32>
    %293 = arith.addf %291, %292 : vector<16x32xf32>
    %cst_119 = arith.constant dense<0.000000e+00> : vector<32x32xf32>
    %294 = tpu.matmul %282, %286, %cst_119 {dimension_numbers = #tpu.dot_dimension_numbers<[1], [0], [0], [1], [0, 0, 1, 1], [], []>} : vector<32x128xbf16>, vector<128x32xbf16>, vector<32x32xf32> -> vector<32x32xf32>
    %295 = vector.broadcast %289 : vector<1x32xf32> to vector<32x32xf32>
    %296 = arith.addf %294, %295 : vector<32x32xf32>
    %cst_120 = arith.constant dense<0.000000e+00> : vector<32x32xf32>
    %297 = tpu.matmul %283, %287, %cst_120 {dimension_numbers = #tpu.dot_dimension_numbers<[1], [0], [0], [1], [0, 0, 1, 1], [], []>} : vector<32x128xbf16>, vector<128x32xbf16>, vector<32x32xf32> -> vector<32x32xf32>
    %298 = vector.broadcast %290 : vector<1x32xf32> to vector<32x32xf32>
    %299 = arith.addf %297, %298 : vector<32x32xf32>
    %300 = arith.truncf %299 : vector<32x32xf32> to vector<32x32xbf16>
    %301 = vector.extract_strided_slice %293 {offsets = [0, 0], sizes = [8, 32], strides = [1, 1]} : vector<16x32xf32> to vector<8x32xf32>
    %302 = arith.truncf %301 : vector<8x32xf32> to vector<8x32xbf16>
    %303 = vector.extract_strided_slice %296 {offsets = [0, 0], sizes = [16, 32], strides = [1, 1]} : vector<32x32xf32> to vector<16x32xf32>
    %304 = arith.truncf %303 : vector<16x32xf32> to vector<16x32xbf16>
    %305 = vector.extract_strided_slice %300 {offsets = [0, 0], sizes = [16, 32], strides = [1, 1]} : vector<32x32xbf16> to vector<16x32xbf16>
    %cst_121 = arith.constant dense<0.000000e+00> : vector<8x16xf32>
    %306 = tpu.matmul %302, %304, %cst_121 {dimension_numbers = #tpu.dot_dimension_numbers<[1], [1], [0], [0], [0, 0, 1, 0], [], []>} : vector<8x32xbf16>, vector<16x32xbf16>, vector<8x16xf32> -> vector<8x16xf32>
    %cst_122 = arith.constant 0.176776692 : f32
    %307 = vector.broadcast %cst_122 : f32 to vector<8x16xf32>
    %308 = arith.mulf %306, %307 : vector<8x16xf32>
    %cst_123 = arith.constant dense<0xFF800000> : vector<8xf32>
    %309 = vector.multi_reduction <maximumf>, %308, %cst_123 [1] : vector<8x16xf32> to vector<8xf32>
    %310 = vector.shape_cast %309 : vector<8xf32> to vector<8x1xf32>
    %311 = vector.broadcast %310 : vector<8x1xf32> to vector<8x16xf32>
    %312 = arith.subf %308, %311 : vector<8x16xf32>
    %313 = math.exp %312 : vector<8x16xf32>
    %cst_124 = arith.constant dense<0.000000e+00> : vector<8xf32>
    %314 = vector.multi_reduction <add>, %313, %cst_124 [1] : vector<8x16xf32> to vector<8xf32>
    %315 = vector.shape_cast %314 : vector<8xf32> to vector<8x1xf32>
    %316 = tpu.reciprocal %315 {approx = true} : vector<8x1xf32> -> vector<8x1xf32>
    %317 = vector.broadcast %316 : vector<8x1xf32> to vector<8x16xf32>
    %318 = arith.mulf %313, %317 : vector<8x16xf32>
    %319 = arith.truncf %318 : vector<8x16xf32> to vector<8x16xbf16>
    %cst_125 = arith.constant dense<0.000000e+00> : vector<8x32xf32>
    %320 = tpu.matmul %319, %305, %cst_125 {dimension_numbers = #tpu.dot_dimension_numbers<[1], [0], [0], [1], [0, 0, 1, 1], [], []>} : vector<8x16xbf16>, vector<16x32xbf16>, vector<8x32xf32> -> vector<8x32xf32>
    %321 = vector.extract_strided_slice %293 {offsets = [8, 0], sizes = [8, 32], strides = [1, 1]} : vector<16x32xf32> to vector<8x32xf32>
    %322 = arith.truncf %321 : vector<8x32xf32> to vector<8x32xbf16>
    %323 = vector.extract_strided_slice %296 {offsets = [16, 0], sizes = [16, 32], strides = [1, 1]} : vector<32x32xf32> to vector<16x32xf32>
    %324 = arith.truncf %323 : vector<16x32xf32> to vector<16x32xbf16>
    %325 = vector.extract_strided_slice %300 {offsets = [16, 0], sizes = [16, 32], strides = [1, 1]} : vector<32x32xbf16> to vector<16x32xbf16>
    %cst_126 = arith.constant dense<0.000000e+00> : vector<8x16xf32>
    %326 = tpu.matmul %322, %324, %cst_126 {dimension_numbers = #tpu.dot_dimension_numbers<[1], [1], [0], [0], [0, 0, 1, 0], [], []>} : vector<8x32xbf16>, vector<16x32xbf16>, vector<8x16xf32> -> vector<8x16xf32>
    %cst_127 = arith.constant 0.176776692 : f32
    %327 = vector.broadcast %cst_127 : f32 to vector<8x16xf32>
    %328 = arith.mulf %326, %327 : vector<8x16xf32>
    %cst_128 = arith.constant dense<0xFF800000> : vector<8xf32>
    %329 = vector.multi_reduction <maximumf>, %328, %cst_128 [1] : vector<8x16xf32> to vector<8xf32>
    %330 = vector.shape_cast %329 : vector<8xf32> to vector<8x1xf32>
    %331 = vector.broadcast %330 : vector<8x1xf32> to vector<8x16xf32>
    %332 = arith.subf %328, %331 : vector<8x16xf32>
    %333 = math.exp %332 : vector<8x16xf32>
    %cst_129 = arith.constant dense<0.000000e+00> : vector<8xf32>
    %334 = vector.multi_reduction <add>, %333, %cst_129 [1] : vector<8x16xf32> to vector<8xf32>
    %335 = vector.shape_cast %334 : vector<8xf32> to vector<8x1xf32>
    %336 = tpu.reciprocal %335 {approx = true} : vector<8x1xf32> -> vector<8x1xf32>
    %337 = vector.broadcast %336 : vector<8x1xf32> to vector<8x16xf32>
    %338 = arith.mulf %333, %337 : vector<8x16xf32>
    %339 = arith.truncf %338 : vector<8x16xf32> to vector<8x16xbf16>
    %cst_130 = arith.constant dense<0.000000e+00> : vector<8x32xf32>
    %340 = tpu.matmul %339, %325, %cst_130 {dimension_numbers = #tpu.dot_dimension_numbers<[1], [0], [0], [1], [0, 0, 1, 1], [], []>} : vector<8x16xbf16>, vector<16x32xbf16>, vector<8x32xf32> -> vector<8x32xf32>
    %341 = tpu.concatenate %320, %340 in 0 : vector<8x32xf32>, vector<8x32xf32> -> vector<16x32xf32>
    %c0_131 = arith.constant 0 : index
    %c0_132 = arith.constant 0 : index
    %342 = vector.load %arg8[%c0_131, %c0_132] : memref<128x128xbf16, #tpu.memory_space<vmem>>, vector<32x128xbf16>
    %343 = arith.truncf %341 : vector<16x32xf32> to vector<16x32xbf16>
    %cst_133 = arith.constant dense<0.000000e+00> : vector<16x128xf32>
    %344 = tpu.matmul %343, %342, %cst_133 {dimension_numbers = #tpu.dot_dimension_numbers<[1], [0], [0], [1], [0, 0, 1, 1], [], []>} : vector<16x32xbf16>, vector<32x128xbf16>, vector<16x128xf32> -> vector<16x128xf32>
    %345 = arith.addf %284, %344 : vector<16x128xf32>
    %c0_134 = arith.constant 0 : index
    %c32_135 = arith.constant 32 : index
    %346 = vector.load %arg6[%c0_134, %c32_135] : memref<128x384xbf16, #tpu.memory_space<vmem>>, vector<128x32xbf16>
    %c0_136 = arith.constant 0 : index
    %c160_137 = arith.constant 160 : index
    %347 = vector.load %arg6[%c0_136, %c160_137] : memref<128x384xbf16, #tpu.memory_space<vmem>>, vector<128x32xbf16>
    %c0_138 = arith.constant 0 : index
    %c288_139 = arith.constant 288 : index
    %348 = vector.load %arg6[%c0_138, %c288_139] : memref<128x384xbf16, #tpu.memory_space<vmem>>, vector<128x32xbf16>
    %c13 = arith.constant 13 : index
    %c0_140 = arith.constant 0 : index
    %349 = vector.load %arg12[%c13, %c0_140] : memref<24x32xf32, #tpu.memory_space<vmem>>, vector<1x32xf32>
    %c17 = arith.constant 17 : index
    %c0_141 = arith.constant 0 : index
    %350 = vector.load %arg12[%c17, %c0_141] : memref<24x32xf32, #tpu.memory_space<vmem>>, vector<1x32xf32>
    %c21 = arith.constant 21 : index
    %c0_142 = arith.constant 0 : index
    %351 = vector.load %arg12[%c21, %c0_142] : memref<24x32xf32, #tpu.memory_space<vmem>>, vector<1x32xf32>
    %cst_143 = arith.constant dense<0.000000e+00> : vector<16x32xf32>
    %352 = tpu.matmul %281, %346, %cst_143 {dimension_numbers = #tpu.dot_dimension_numbers<[1], [0], [0], [1], [0, 0, 1, 1], [], []>} : vector<16x128xbf16>, vector<128x32xbf16>, vector<16x32xf32> -> vector<16x32xf32>
    %353 = vector.broadcast %349 : vector<1x32xf32> to vector<16x32xf32>
    %354 = arith.addf %352, %353 : vector<16x32xf32>
    %cst_144 = arith.constant dense<0.000000e+00> : vector<32x32xf32>
    %355 = tpu.matmul %282, %347, %cst_144 {dimension_numbers = #tpu.dot_dimension_numbers<[1], [0], [0], [1], [0, 0, 1, 1], [], []>} : vector<32x128xbf16>, vector<128x32xbf16>, vector<32x32xf32> -> vector<32x32xf32>
    %356 = vector.broadcast %350 : vector<1x32xf32> to vector<32x32xf32>
    %357 = arith.addf %355, %356 : vector<32x32xf32>
    %cst_145 = arith.constant dense<0.000000e+00> : vector<32x32xf32>
    %358 = tpu.matmul %283, %348, %cst_145 {dimension_numbers = #tpu.dot_dimension_numbers<[1], [0], [0], [1], [0, 0, 1, 1], [], []>} : vector<32x128xbf16>, vector<128x32xbf16>, vector<32x32xf32> -> vector<32x32xf32>
    %359 = vector.broadcast %351 : vector<1x32xf32> to vector<32x32xf32>
    %360 = arith.addf %358, %359 : vector<32x32xf32>
    %361 = arith.truncf %360 : vector<32x32xf32> to vector<32x32xbf16>
    %362 = vector.extract_strided_slice %354 {offsets = [0, 0], sizes = [8, 32], strides = [1, 1]} : vector<16x32xf32> to vector<8x32xf32>
    %363 = arith.truncf %362 : vector<8x32xf32> to vector<8x32xbf16>
    %364 = vector.extract_strided_slice %357 {offsets = [0, 0], sizes = [16, 32], strides = [1, 1]} : vector<32x32xf32> to vector<16x32xf32>
    %365 = arith.truncf %364 : vector<16x32xf32> to vector<16x32xbf16>
    %366 = vector.extract_strided_slice %361 {offsets = [0, 0], sizes = [16, 32], strides = [1, 1]} : vector<32x32xbf16> to vector<16x32xbf16>
    %cst_146 = arith.constant dense<0.000000e+00> : vector<8x16xf32>
    %367 = tpu.matmul %363, %365, %cst_146 {dimension_numbers = #tpu.dot_dimension_numbers<[1], [1], [0], [0], [0, 0, 1, 0], [], []>} : vector<8x32xbf16>, vector<16x32xbf16>, vector<8x16xf32> -> vector<8x16xf32>
    %cst_147 = arith.constant 0.176776692 : f32
    %368 = vector.broadcast %cst_147 : f32 to vector<8x16xf32>
    %369 = arith.mulf %367, %368 : vector<8x16xf32>
    %cst_148 = arith.constant dense<0xFF800000> : vector<8xf32>
    %370 = vector.multi_reduction <maximumf>, %369, %cst_148 [1] : vector<8x16xf32> to vector<8xf32>
    %371 = vector.shape_cast %370 : vector<8xf32> to vector<8x1xf32>
    %372 = vector.broadcast %371 : vector<8x1xf32> to vector<8x16xf32>
    %373 = arith.subf %369, %372 : vector<8x16xf32>
    %374 = math.exp %373 : vector<8x16xf32>
    %cst_149 = arith.constant dense<0.000000e+00> : vector<8xf32>
    %375 = vector.multi_reduction <add>, %374, %cst_149 [1] : vector<8x16xf32> to vector<8xf32>
    %376 = vector.shape_cast %375 : vector<8xf32> to vector<8x1xf32>
    %377 = tpu.reciprocal %376 {approx = true} : vector<8x1xf32> -> vector<8x1xf32>
    %378 = vector.broadcast %377 : vector<8x1xf32> to vector<8x16xf32>
    %379 = arith.mulf %374, %378 : vector<8x16xf32>
    %380 = arith.truncf %379 : vector<8x16xf32> to vector<8x16xbf16>
    %cst_150 = arith.constant dense<0.000000e+00> : vector<8x32xf32>
    %381 = tpu.matmul %380, %366, %cst_150 {dimension_numbers = #tpu.dot_dimension_numbers<[1], [0], [0], [1], [0, 0, 1, 1], [], []>} : vector<8x16xbf16>, vector<16x32xbf16>, vector<8x32xf32> -> vector<8x32xf32>
    %382 = vector.extract_strided_slice %354 {offsets = [8, 0], sizes = [8, 32], strides = [1, 1]} : vector<16x32xf32> to vector<8x32xf32>
    %383 = arith.truncf %382 : vector<8x32xf32> to vector<8x32xbf16>
    %384 = vector.extract_strided_slice %357 {offsets = [16, 0], sizes = [16, 32], strides = [1, 1]} : vector<32x32xf32> to vector<16x32xf32>
    %385 = arith.truncf %384 : vector<16x32xf32> to vector<16x32xbf16>
    %386 = vector.extract_strided_slice %361 {offsets = [16, 0], sizes = [16, 32], strides = [1, 1]} : vector<32x32xbf16> to vector<16x32xbf16>
    %cst_151 = arith.constant dense<0.000000e+00> : vector<8x16xf32>
    %387 = tpu.matmul %383, %385, %cst_151 {dimension_numbers = #tpu.dot_dimension_numbers<[1], [1], [0], [0], [0, 0, 1, 0], [], []>} : vector<8x32xbf16>, vector<16x32xbf16>, vector<8x16xf32> -> vector<8x16xf32>
    %cst_152 = arith.constant 0.176776692 : f32
    %388 = vector.broadcast %cst_152 : f32 to vector<8x16xf32>
    %389 = arith.mulf %387, %388 : vector<8x16xf32>
    %cst_153 = arith.constant dense<0xFF800000> : vector<8xf32>
    %390 = vector.multi_reduction <maximumf>, %389, %cst_153 [1] : vector<8x16xf32> to vector<8xf32>
    %391 = vector.shape_cast %390 : vector<8xf32> to vector<8x1xf32>
    %392 = vector.broadcast %391 : vector<8x1xf32> to vector<8x16xf32>
    %393 = arith.subf %389, %392 : vector<8x16xf32>
    %394 = math.exp %393 : vector<8x16xf32>
    %cst_154 = arith.constant dense<0.000000e+00> : vector<8xf32>
    %395 = vector.multi_reduction <add>, %394, %cst_154 [1] : vector<8x16xf32> to vector<8xf32>
    %396 = vector.shape_cast %395 : vector<8xf32> to vector<8x1xf32>
    %397 = tpu.reciprocal %396 {approx = true} : vector<8x1xf32> -> vector<8x1xf32>
    %398 = vector.broadcast %397 : vector<8x1xf32> to vector<8x16xf32>
    %399 = arith.mulf %394, %398 : vector<8x16xf32>
    %400 = arith.truncf %399 : vector<8x16xf32> to vector<8x16xbf16>
    %cst_155 = arith.constant dense<0.000000e+00> : vector<8x32xf32>
    %401 = tpu.matmul %400, %386, %cst_155 {dimension_numbers = #tpu.dot_dimension_numbers<[1], [0], [0], [1], [0, 0, 1, 1], [], []>} : vector<8x16xbf16>, vector<16x32xbf16>, vector<8x32xf32> -> vector<8x32xf32>
    %402 = tpu.concatenate %381, %401 in 0 : vector<8x32xf32>, vector<8x32xf32> -> vector<16x32xf32>
    %c32_156 = arith.constant 32 : index
    %c0_157 = arith.constant 0 : index
    %403 = vector.load %arg8[%c32_156, %c0_157] : memref<128x128xbf16, #tpu.memory_space<vmem>>, vector<32x128xbf16>
    %404 = arith.truncf %402 : vector<16x32xf32> to vector<16x32xbf16>
    %cst_158 = arith.constant dense<0.000000e+00> : vector<16x128xf32>
    %405 = tpu.matmul %404, %403, %cst_158 {dimension_numbers = #tpu.dot_dimension_numbers<[1], [0], [0], [1], [0, 0, 1, 1], [], []>} : vector<16x32xbf16>, vector<32x128xbf16>, vector<16x128xf32> -> vector<16x128xf32>
    %406 = arith.addf %345, %405 : vector<16x128xf32>
    %c0_159 = arith.constant 0 : index
    %c64_160 = arith.constant 64 : index
    %407 = vector.load %arg6[%c0_159, %c64_160] : memref<128x384xbf16, #tpu.memory_space<vmem>>, vector<128x32xbf16>
    %c0_161 = arith.constant 0 : index
    %c192_162 = arith.constant 192 : index
    %408 = vector.load %arg6[%c0_161, %c192_162] : memref<128x384xbf16, #tpu.memory_space<vmem>>, vector<128x32xbf16>
    %c0_163 = arith.constant 0 : index
    %c320_164 = arith.constant 320 : index
    %409 = vector.load %arg6[%c0_163, %c320_164] : memref<128x384xbf16, #tpu.memory_space<vmem>>, vector<128x32xbf16>
    %c14 = arith.constant 14 : index
    %c0_165 = arith.constant 0 : index
    %410 = vector.load %arg12[%c14, %c0_165] : memref<24x32xf32, #tpu.memory_space<vmem>>, vector<1x32xf32>
    %c18 = arith.constant 18 : index
    %c0_166 = arith.constant 0 : index
    %411 = vector.load %arg12[%c18, %c0_166] : memref<24x32xf32, #tpu.memory_space<vmem>>, vector<1x32xf32>
    %c22 = arith.constant 22 : index
    %c0_167 = arith.constant 0 : index
    %412 = vector.load %arg12[%c22, %c0_167] : memref<24x32xf32, #tpu.memory_space<vmem>>, vector<1x32xf32>
    %cst_168 = arith.constant dense<0.000000e+00> : vector<16x32xf32>
    %413 = tpu.matmul %281, %407, %cst_168 {dimension_numbers = #tpu.dot_dimension_numbers<[1], [0], [0], [1], [0, 0, 1, 1], [], []>} : vector<16x128xbf16>, vector<128x32xbf16>, vector<16x32xf32> -> vector<16x32xf32>
    %414 = vector.broadcast %410 : vector<1x32xf32> to vector<16x32xf32>
    %415 = arith.addf %413, %414 : vector<16x32xf32>
    %cst_169 = arith.constant dense<0.000000e+00> : vector<32x32xf32>
    %416 = tpu.matmul %282, %408, %cst_169 {dimension_numbers = #tpu.dot_dimension_numbers<[1], [0], [0], [1], [0, 0, 1, 1], [], []>} : vector<32x128xbf16>, vector<128x32xbf16>, vector<32x32xf32> -> vector<32x32xf32>
    %417 = vector.broadcast %411 : vector<1x32xf32> to vector<32x32xf32>
    %418 = arith.addf %416, %417 : vector<32x32xf32>
    %cst_170 = arith.constant dense<0.000000e+00> : vector<32x32xf32>
    %419 = tpu.matmul %283, %409, %cst_170 {dimension_numbers = #tpu.dot_dimension_numbers<[1], [0], [0], [1], [0, 0, 1, 1], [], []>} : vector<32x128xbf16>, vector<128x32xbf16>, vector<32x32xf32> -> vector<32x32xf32>
    %420 = vector.broadcast %412 : vector<1x32xf32> to vector<32x32xf32>
    %421 = arith.addf %419, %420 : vector<32x32xf32>
    %422 = arith.truncf %421 : vector<32x32xf32> to vector<32x32xbf16>
    %423 = vector.extract_strided_slice %415 {offsets = [0, 0], sizes = [8, 32], strides = [1, 1]} : vector<16x32xf32> to vector<8x32xf32>
    %424 = arith.truncf %423 : vector<8x32xf32> to vector<8x32xbf16>
    %425 = vector.extract_strided_slice %418 {offsets = [0, 0], sizes = [16, 32], strides = [1, 1]} : vector<32x32xf32> to vector<16x32xf32>
    %426 = arith.truncf %425 : vector<16x32xf32> to vector<16x32xbf16>
    %427 = vector.extract_strided_slice %422 {offsets = [0, 0], sizes = [16, 32], strides = [1, 1]} : vector<32x32xbf16> to vector<16x32xbf16>
    %cst_171 = arith.constant dense<0.000000e+00> : vector<8x16xf32>
    %428 = tpu.matmul %424, %426, %cst_171 {dimension_numbers = #tpu.dot_dimension_numbers<[1], [1], [0], [0], [0, 0, 1, 0], [], []>} : vector<8x32xbf16>, vector<16x32xbf16>, vector<8x16xf32> -> vector<8x16xf32>
    %cst_172 = arith.constant 0.176776692 : f32
    %429 = vector.broadcast %cst_172 : f32 to vector<8x16xf32>
    %430 = arith.mulf %428, %429 : vector<8x16xf32>
    %cst_173 = arith.constant dense<0xFF800000> : vector<8xf32>
    %431 = vector.multi_reduction <maximumf>, %430, %cst_173 [1] : vector<8x16xf32> to vector<8xf32>
    %432 = vector.shape_cast %431 : vector<8xf32> to vector<8x1xf32>
    %433 = vector.broadcast %432 : vector<8x1xf32> to vector<8x16xf32>
    %434 = arith.subf %430, %433 : vector<8x16xf32>
    %435 = math.exp %434 : vector<8x16xf32>
    %cst_174 = arith.constant dense<0.000000e+00> : vector<8xf32>
    %436 = vector.multi_reduction <add>, %435, %cst_174 [1] : vector<8x16xf32> to vector<8xf32>
    %437 = vector.shape_cast %436 : vector<8xf32> to vector<8x1xf32>
    %438 = tpu.reciprocal %437 {approx = true} : vector<8x1xf32> -> vector<8x1xf32>
    %439 = vector.broadcast %438 : vector<8x1xf32> to vector<8x16xf32>
    %440 = arith.mulf %435, %439 : vector<8x16xf32>
    %441 = arith.truncf %440 : vector<8x16xf32> to vector<8x16xbf16>
    %cst_175 = arith.constant dense<0.000000e+00> : vector<8x32xf32>
    %442 = tpu.matmul %441, %427, %cst_175 {dimension_numbers = #tpu.dot_dimension_numbers<[1], [0], [0], [1], [0, 0, 1, 1], [], []>} : vector<8x16xbf16>, vector<16x32xbf16>, vector<8x32xf32> -> vector<8x32xf32>
    %443 = vector.extract_strided_slice %415 {offsets = [8, 0], sizes = [8, 32], strides = [1, 1]} : vector<16x32xf32> to vector<8x32xf32>
    %444 = arith.truncf %443 : vector<8x32xf32> to vector<8x32xbf16>
    %445 = vector.extract_strided_slice %418 {offsets = [16, 0], sizes = [16, 32], strides = [1, 1]} : vector<32x32xf32> to vector<16x32xf32>
    %446 = arith.truncf %445 : vector<16x32xf32> to vector<16x32xbf16>
    %447 = vector.extract_strided_slice %422 {offsets = [16, 0], sizes = [16, 32], strides = [1, 1]} : vector<32x32xbf16> to vector<16x32xbf16>
    %cst_176 = arith.constant dense<0.000000e+00> : vector<8x16xf32>
    %448 = tpu.matmul %444, %446, %cst_176 {dimension_numbers = #tpu.dot_dimension_numbers<[1], [1], [0], [0], [0, 0, 1, 0], [], []>} : vector<8x32xbf16>, vector<16x32xbf16>, vector<8x16xf32> -> vector<8x16xf32>
    %cst_177 = arith.constant 0.176776692 : f32
    %449 = vector.broadcast %cst_177 : f32 to vector<8x16xf32>
    %450 = arith.mulf %448, %449 : vector<8x16xf32>
    %cst_178 = arith.constant dense<0xFF800000> : vector<8xf32>
    %451 = vector.multi_reduction <maximumf>, %450, %cst_178 [1] : vector<8x16xf32> to vector<8xf32>
    %452 = vector.shape_cast %451 : vector<8xf32> to vector<8x1xf32>
    %453 = vector.broadcast %452 : vector<8x1xf32> to vector<8x16xf32>
    %454 = arith.subf %450, %453 : vector<8x16xf32>
    %455 = math.exp %454 : vector<8x16xf32>
    %cst_179 = arith.constant dense<0.000000e+00> : vector<8xf32>
    %456 = vector.multi_reduction <add>, %455, %cst_179 [1] : vector<8x16xf32> to vector<8xf32>
    %457 = vector.shape_cast %456 : vector<8xf32> to vector<8x1xf32>
    %458 = tpu.reciprocal %457 {approx = true} : vector<8x1xf32> -> vector<8x1xf32>
    %459 = vector.broadcast %458 : vector<8x1xf32> to vector<8x16xf32>
    %460 = arith.mulf %455, %459 : vector<8x16xf32>
    %461 = arith.truncf %460 : vector<8x16xf32> to vector<8x16xbf16>
    %cst_180 = arith.constant dense<0.000000e+00> : vector<8x32xf32>
    %462 = tpu.matmul %461, %447, %cst_180 {dimension_numbers = #tpu.dot_dimension_numbers<[1], [0], [0], [1], [0, 0, 1, 1], [], []>} : vector<8x16xbf16>, vector<16x32xbf16>, vector<8x32xf32> -> vector<8x32xf32>
    %463 = tpu.concatenate %442, %462 in 0 : vector<8x32xf32>, vector<8x32xf32> -> vector<16x32xf32>
    %c64_181 = arith.constant 64 : index
    %c0_182 = arith.constant 0 : index
    %464 = vector.load %arg8[%c64_181, %c0_182] : memref<128x128xbf16, #tpu.memory_space<vmem>>, vector<32x128xbf16>
    %465 = arith.truncf %463 : vector<16x32xf32> to vector<16x32xbf16>
    %cst_183 = arith.constant dense<0.000000e+00> : vector<16x128xf32>
    %466 = tpu.matmul %465, %464, %cst_183 {dimension_numbers = #tpu.dot_dimension_numbers<[1], [0], [0], [1], [0, 0, 1, 1], [], []>} : vector<16x32xbf16>, vector<32x128xbf16>, vector<16x128xf32> -> vector<16x128xf32>
    %467 = arith.addf %406, %466 : vector<16x128xf32>
    %c0_184 = arith.constant 0 : index
    %c96_185 = arith.constant 96 : index
    %468 = vector.load %arg6[%c0_184, %c96_185] : memref<128x384xbf16, #tpu.memory_space<vmem>>, vector<128x32xbf16>
    %c0_186 = arith.constant 0 : index
    %c224_187 = arith.constant 224 : index
    %469 = vector.load %arg6[%c0_186, %c224_187] : memref<128x384xbf16, #tpu.memory_space<vmem>>, vector<128x32xbf16>
    %c0_188 = arith.constant 0 : index
    %c352_189 = arith.constant 352 : index
    %470 = vector.load %arg6[%c0_188, %c352_189] : memref<128x384xbf16, #tpu.memory_space<vmem>>, vector<128x32xbf16>
    %c15 = arith.constant 15 : index
    %c0_190 = arith.constant 0 : index
    %471 = vector.load %arg12[%c15, %c0_190] : memref<24x32xf32, #tpu.memory_space<vmem>>, vector<1x32xf32>
    %c19 = arith.constant 19 : index
    %c0_191 = arith.constant 0 : index
    %472 = vector.load %arg12[%c19, %c0_191] : memref<24x32xf32, #tpu.memory_space<vmem>>, vector<1x32xf32>
    %c23 = arith.constant 23 : index
    %c0_192 = arith.constant 0 : index
    %473 = vector.load %arg12[%c23, %c0_192] : memref<24x32xf32, #tpu.memory_space<vmem>>, vector<1x32xf32>
    %cst_193 = arith.constant dense<0.000000e+00> : vector<16x32xf32>
    %474 = tpu.matmul %281, %468, %cst_193 {dimension_numbers = #tpu.dot_dimension_numbers<[1], [0], [0], [1], [0, 0, 1, 1], [], []>} : vector<16x128xbf16>, vector<128x32xbf16>, vector<16x32xf32> -> vector<16x32xf32>
    %475 = vector.broadcast %471 : vector<1x32xf32> to vector<16x32xf32>
    %476 = arith.addf %474, %475 : vector<16x32xf32>
    %cst_194 = arith.constant dense<0.000000e+00> : vector<32x32xf32>
    %477 = tpu.matmul %282, %469, %cst_194 {dimension_numbers = #tpu.dot_dimension_numbers<[1], [0], [0], [1], [0, 0, 1, 1], [], []>} : vector<32x128xbf16>, vector<128x32xbf16>, vector<32x32xf32> -> vector<32x32xf32>
    %478 = vector.broadcast %472 : vector<1x32xf32> to vector<32x32xf32>
    %479 = arith.addf %477, %478 : vector<32x32xf32>
    %cst_195 = arith.constant dense<0.000000e+00> : vector<32x32xf32>
    %480 = tpu.matmul %283, %470, %cst_195 {dimension_numbers = #tpu.dot_dimension_numbers<[1], [0], [0], [1], [0, 0, 1, 1], [], []>} : vector<32x128xbf16>, vector<128x32xbf16>, vector<32x32xf32> -> vector<32x32xf32>
    %481 = vector.broadcast %473 : vector<1x32xf32> to vector<32x32xf32>
    %482 = arith.addf %480, %481 : vector<32x32xf32>
    %483 = arith.truncf %482 : vector<32x32xf32> to vector<32x32xbf16>
    %484 = vector.extract_strided_slice %476 {offsets = [0, 0], sizes = [8, 32], strides = [1, 1]} : vector<16x32xf32> to vector<8x32xf32>
    %485 = arith.truncf %484 : vector<8x32xf32> to vector<8x32xbf16>
    %486 = vector.extract_strided_slice %479 {offsets = [0, 0], sizes = [16, 32], strides = [1, 1]} : vector<32x32xf32> to vector<16x32xf32>
    %487 = arith.truncf %486 : vector<16x32xf32> to vector<16x32xbf16>
    %488 = vector.extract_strided_slice %483 {offsets = [0, 0], sizes = [16, 32], strides = [1, 1]} : vector<32x32xbf16> to vector<16x32xbf16>
    %cst_196 = arith.constant dense<0.000000e+00> : vector<8x16xf32>
    %489 = tpu.matmul %485, %487, %cst_196 {dimension_numbers = #tpu.dot_dimension_numbers<[1], [1], [0], [0], [0, 0, 1, 0], [], []>} : vector<8x32xbf16>, vector<16x32xbf16>, vector<8x16xf32> -> vector<8x16xf32>
    %cst_197 = arith.constant 0.176776692 : f32
    %490 = vector.broadcast %cst_197 : f32 to vector<8x16xf32>
    %491 = arith.mulf %489, %490 : vector<8x16xf32>
    %cst_198 = arith.constant dense<0xFF800000> : vector<8xf32>
    %492 = vector.multi_reduction <maximumf>, %491, %cst_198 [1] : vector<8x16xf32> to vector<8xf32>
    %493 = vector.shape_cast %492 : vector<8xf32> to vector<8x1xf32>
    %494 = vector.broadcast %493 : vector<8x1xf32> to vector<8x16xf32>
    %495 = arith.subf %491, %494 : vector<8x16xf32>
    %496 = math.exp %495 : vector<8x16xf32>
    %cst_199 = arith.constant dense<0.000000e+00> : vector<8xf32>
    %497 = vector.multi_reduction <add>, %496, %cst_199 [1] : vector<8x16xf32> to vector<8xf32>
    %498 = vector.shape_cast %497 : vector<8xf32> to vector<8x1xf32>
    %499 = tpu.reciprocal %498 {approx = true} : vector<8x1xf32> -> vector<8x1xf32>
    %500 = vector.broadcast %499 : vector<8x1xf32> to vector<8x16xf32>
    %501 = arith.mulf %496, %500 : vector<8x16xf32>
    %502 = arith.truncf %501 : vector<8x16xf32> to vector<8x16xbf16>
    %cst_200 = arith.constant dense<0.000000e+00> : vector<8x32xf32>
    %503 = tpu.matmul %502, %488, %cst_200 {dimension_numbers = #tpu.dot_dimension_numbers<[1], [0], [0], [1], [0, 0, 1, 1], [], []>} : vector<8x16xbf16>, vector<16x32xbf16>, vector<8x32xf32> -> vector<8x32xf32>
    %504 = vector.extract_strided_slice %476 {offsets = [8, 0], sizes = [8, 32], strides = [1, 1]} : vector<16x32xf32> to vector<8x32xf32>
    %505 = arith.truncf %504 : vector<8x32xf32> to vector<8x32xbf16>
    %506 = vector.extract_strided_slice %479 {offsets = [16, 0], sizes = [16, 32], strides = [1, 1]} : vector<32x32xf32> to vector<16x32xf32>
    %507 = arith.truncf %506 : vector<16x32xf32> to vector<16x32xbf16>
    %508 = vector.extract_strided_slice %483 {offsets = [16, 0], sizes = [16, 32], strides = [1, 1]} : vector<32x32xbf16> to vector<16x32xbf16>
    %cst_201 = arith.constant dense<0.000000e+00> : vector<8x16xf32>
    %509 = tpu.matmul %505, %507, %cst_201 {dimension_numbers = #tpu.dot_dimension_numbers<[1], [1], [0], [0], [0, 0, 1, 0], [], []>} : vector<8x32xbf16>, vector<16x32xbf16>, vector<8x16xf32> -> vector<8x16xf32>
    %cst_202 = arith.constant 0.176776692 : f32
    %510 = vector.broadcast %cst_202 : f32 to vector<8x16xf32>
    %511 = arith.mulf %509, %510 : vector<8x16xf32>
    %cst_203 = arith.constant dense<0xFF800000> : vector<8xf32>
    %512 = vector.multi_reduction <maximumf>, %511, %cst_203 [1] : vector<8x16xf32> to vector<8xf32>
    %513 = vector.shape_cast %512 : vector<8xf32> to vector<8x1xf32>
    %514 = vector.broadcast %513 : vector<8x1xf32> to vector<8x16xf32>
    %515 = arith.subf %511, %514 : vector<8x16xf32>
    %516 = math.exp %515 : vector<8x16xf32>
    %cst_204 = arith.constant dense<0.000000e+00> : vector<8xf32>
    %517 = vector.multi_reduction <add>, %516, %cst_204 [1] : vector<8x16xf32> to vector<8xf32>
    %518 = vector.shape_cast %517 : vector<8xf32> to vector<8x1xf32>
    %519 = tpu.reciprocal %518 {approx = true} : vector<8x1xf32> -> vector<8x1xf32>
    %520 = vector.broadcast %519 : vector<8x1xf32> to vector<8x16xf32>
    %521 = arith.mulf %516, %520 : vector<8x16xf32>
    %522 = arith.truncf %521 : vector<8x16xf32> to vector<8x16xbf16>
    %cst_205 = arith.constant dense<0.000000e+00> : vector<8x32xf32>
    %523 = tpu.matmul %522, %508, %cst_205 {dimension_numbers = #tpu.dot_dimension_numbers<[1], [0], [0], [1], [0, 0, 1, 1], [], []>} : vector<8x16xbf16>, vector<16x32xbf16>, vector<8x32xf32> -> vector<8x32xf32>
    %524 = tpu.concatenate %503, %523 in 0 : vector<8x32xf32>, vector<8x32xf32> -> vector<16x32xf32>
    %c96_206 = arith.constant 96 : index
    %c0_207 = arith.constant 0 : index
    %525 = vector.load %arg8[%c96_206, %c0_207] : memref<128x128xbf16, #tpu.memory_space<vmem>>, vector<32x128xbf16>
    %526 = arith.truncf %524 : vector<16x32xf32> to vector<16x32xbf16>
    %cst_208 = arith.constant dense<0.000000e+00> : vector<16x128xf32>
    %527 = tpu.matmul %526, %525, %cst_208 {dimension_numbers = #tpu.dot_dimension_numbers<[1], [0], [0], [1], [0, 0, 1, 1], [], []>} : vector<16x32xbf16>, vector<32x128xbf16>, vector<16x128xf32> -> vector<16x128xf32>
    %528 = arith.addf %467, %527 : vector<16x128xf32>
    %c1_209 = arith.constant 1 : index
    %c0_210 = arith.constant 0 : index
    %529 = vector.load %arg13[%c1_209, %c0_210] : memref<9x128xf32, #tpu.memory_space<vmem>>, vector<1x128xf32>
    %530 = vector.broadcast %529 : vector<1x128xf32> to vector<16x128xf32>
    %531 = arith.addf %528, %530 : vector<16x128xf32>
    %532 = arith.addf %278, %531 : vector<16x128xf32>
    %cst_211 = arith.constant dense<0.000000e+00> : vector<16xf32>
    %533 = vector.multi_reduction <add>, %532, %cst_211 [1] : vector<16x128xf32> to vector<16xf32>
    %534 = vector.shape_cast %533 : vector<16xf32> to vector<16x1xf32>
    %cst_212 = arith.constant 1.280000e+02 : f32
    %535 = vector.broadcast %cst_212 : f32 to vector<16x1xf32>
    %536 = arith.divf %534, %535 : vector<16x1xf32>
    %537 = vector.broadcast %536 : vector<16x1xf32> to vector<16x128xf32>
    %538 = arith.subf %532, %537 : vector<16x128xf32>
    %539 = arith.mulf %538, %538 : vector<16x128xf32>
    %cst_213 = arith.constant dense<0.000000e+00> : vector<16xf32>
    %540 = vector.multi_reduction <add>, %539, %cst_213 [1] : vector<16x128xf32> to vector<16xf32>
    %541 = vector.shape_cast %540 : vector<16xf32> to vector<16x1xf32>
    %cst_214 = arith.constant 1.280000e+02 : f32
    %542 = vector.broadcast %cst_214 : f32 to vector<16x1xf32>
    %543 = arith.divf %541, %542 : vector<16x1xf32>
    %cst_215 = arith.constant 9.99999974E-6 : f32
    %544 = vector.broadcast %cst_215 : f32 to vector<16x1xf32>
    %545 = arith.addf %543, %544 : vector<16x1xf32>
    %546 = math.rsqrt %545 : vector<16x1xf32>
    %547 = vector.broadcast %546 : vector<16x1xf32> to vector<16x128xf32>
    %548 = arith.mulf %538, %547 : vector<16x128xf32>
    %c5_216 = arith.constant 5 : index
    %c0_217 = arith.constant 0 : index
    %549 = vector.load %arg13[%c5_216, %c0_217] : memref<9x128xf32, #tpu.memory_space<vmem>>, vector<1x128xf32>
    %550 = vector.broadcast %549 : vector<1x128xf32> to vector<16x128xf32>
    %551 = arith.mulf %548, %550 : vector<16x128xf32>
    %c6_218 = arith.constant 6 : index
    %c0_219 = arith.constant 0 : index
    %552 = vector.load %arg13[%c6_218, %c0_219] : memref<9x128xf32, #tpu.memory_space<vmem>>, vector<1x128xf32>
    %553 = vector.broadcast %552 : vector<1x128xf32> to vector<16x128xf32>
    %554 = arith.addf %551, %553 : vector<16x128xf32>
    %555 = arith.truncf %554 : vector<16x128xf32> to vector<16x128xbf16>
    %c0_220 = arith.constant 0 : index
    %c0_221 = arith.constant 0 : index
    %556 = vector.load %arg9[%c0_220, %c0_221] : memref<128x256xbf16, #tpu.memory_space<vmem>>, vector<128x256xbf16>
    %cst_222 = arith.constant dense<0.000000e+00> : vector<16x256xf32>
    %557 = tpu.matmul %555, %556, %cst_222 {dimension_numbers = #tpu.dot_dimension_numbers<[1], [0], [0], [1], [0, 0, 1, 1], [], []>} : vector<16x128xbf16>, vector<128x256xbf16>, vector<16x256xf32> -> vector<16x256xf32>
    %c0_223 = arith.constant 0 : index
    %c0_224 = arith.constant 0 : index
    %558 = vector.load %arg11[%c0_223, %c0_224] : memref<1x256xf32, #tpu.memory_space<vmem>>, vector<1x256xf32>
    %559 = vector.broadcast %558 : vector<1x256xf32> to vector<16x256xf32>
    %560 = arith.addf %557, %559 : vector<16x256xf32>
    %cst_225 = arith.constant 0.000000e+00 : f32
    %561 = vector.broadcast %cst_225 : f32 to vector<16x256xf32>
    %562 = arith.maximumf %560, %561 : vector<16x256xf32>
    %563 = arith.truncf %562 : vector<16x256xf32> to vector<16x256xbf16>
    %c0_226 = arith.constant 0 : index
    %c0_227 = arith.constant 0 : index
    %564 = vector.load %arg10[%c0_226, %c0_227] : memref<256x128xbf16, #tpu.memory_space<vmem>>, vector<256x128xbf16>
    %cst_228 = arith.constant dense<0.000000e+00> : vector<16x128xf32>
    %565 = tpu.matmul %563, %564, %cst_228 {dimension_numbers = #tpu.dot_dimension_numbers<[1], [0], [0], [1], [0, 0, 1, 1], [], []>} : vector<16x256xbf16>, vector<256x128xbf16>, vector<16x128xf32> -> vector<16x128xf32>
    %c2_229 = arith.constant 2 : index
    %c0_230 = arith.constant 0 : index
    %566 = vector.load %arg13[%c2_229, %c0_230] : memref<9x128xf32, #tpu.memory_space<vmem>>, vector<1x128xf32>
    %567 = vector.broadcast %566 : vector<1x128xf32> to vector<16x128xf32>
    %568 = arith.addf %565, %567 : vector<16x128xf32>
    %569 = arith.addf %554, %568 : vector<16x128xf32>
    %cst_231 = arith.constant dense<0.000000e+00> : vector<16xf32>
    %570 = vector.multi_reduction <add>, %569, %cst_231 [1] : vector<16x128xf32> to vector<16xf32>
    %571 = vector.shape_cast %570 : vector<16xf32> to vector<16x1xf32>
    %cst_232 = arith.constant 1.280000e+02 : f32
    %572 = vector.broadcast %cst_232 : f32 to vector<16x1xf32>
    %573 = arith.divf %571, %572 : vector<16x1xf32>
    %574 = vector.broadcast %573 : vector<16x1xf32> to vector<16x128xf32>
    %575 = arith.subf %569, %574 : vector<16x128xf32>
    %576 = arith.mulf %575, %575 : vector<16x128xf32>
    %cst_233 = arith.constant dense<0.000000e+00> : vector<16xf32>
    %577 = vector.multi_reduction <add>, %576, %cst_233 [1] : vector<16x128xf32> to vector<16xf32>
    %578 = vector.shape_cast %577 : vector<16xf32> to vector<16x1xf32>
    %cst_234 = arith.constant 1.280000e+02 : f32
    %579 = vector.broadcast %cst_234 : f32 to vector<16x1xf32>
    %580 = arith.divf %578, %579 : vector<16x1xf32>
    %cst_235 = arith.constant 9.99999974E-6 : f32
    %581 = vector.broadcast %cst_235 : f32 to vector<16x1xf32>
    %582 = arith.addf %580, %581 : vector<16x1xf32>
    %583 = math.rsqrt %582 : vector<16x1xf32>
    %584 = vector.broadcast %583 : vector<16x1xf32> to vector<16x128xf32>
    %585 = arith.mulf %575, %584 : vector<16x128xf32>
    %c7_236 = arith.constant 7 : index
    %c0_237 = arith.constant 0 : index
    %586 = vector.load %arg13[%c7_236, %c0_237] : memref<9x128xf32, #tpu.memory_space<vmem>>, vector<1x128xf32>
    %587 = vector.broadcast %586 : vector<1x128xf32> to vector<16x128xf32>
    %588 = arith.mulf %585, %587 : vector<16x128xf32>
    %c8_238 = arith.constant 8 : index
    %c0_239 = arith.constant 0 : index
    %589 = vector.load %arg13[%c8_238, %c0_239] : memref<9x128xf32, #tpu.memory_space<vmem>>, vector<1x128xf32>
    %590 = vector.broadcast %589 : vector<1x128xf32> to vector<16x128xf32>
    %591 = arith.addf %588, %590 : vector<16x128xf32>
    %c0_240 = arith.constant 0 : index
    %c0_241 = arith.constant 0 : index
    %592 = vector.load %arg14[%c0_240, %c0_241] : memref<16x128xf32, #tpu.memory_space<vmem>>, vector<16x128xf32>
    tpu.vector_store %arg14[%c0_240, %c0_241], %591 {strides = array<i32>} : memref<16x128xf32, #tpu.memory_space<vmem>>, vector<16x128xf32>,
    return
  }
  func.func @transform_0(%arg0: i32) -> (i32, i32) {
    %c0_i32 = arith.constant 0 : i32
    %c0_i32_0 = arith.constant 0 : i32
    return %arg0, %c0_i32 : i32, i32
  }
  func.func @transform_1(%arg0: i32) -> (i32, i32) {
    %c0_i32 = arith.constant 0 : i32
    %c0_i32_0 = arith.constant 0 : i32
    return %arg0, %c0_i32 : i32, i32
  }
  func.func @transform_2(%arg0: i32) -> (i32, i32) {
    %c0_i32 = arith.constant 0 : i32
    %c0_i32_0 = arith.constant 0 : i32
    return %arg0, %c0_i32 : i32, i32
  }
  func.func @transform_3(%arg0: i32) -> (i32, i32) {
    %c0_i32 = arith.constant 0 : i32
    %c0_i32_0 = arith.constant 0 : i32
    return %arg0, %c0_i32 : i32, i32
  }
  func.func @transform_4(%arg0: i32) -> (i32, i32) {
    %c0_i32 = arith.constant 0 : i32
    %c0_i32_0 = arith.constant 0 : i32
    %c0_i32_1 = arith.constant 0 : i32
    return %c0_i32, %c0_i32_0 : i32, i32
  }
  func.func @transform_5(%arg0: i32) -> (i32, i32) {
    %c0_i32 = arith.constant 0 : i32
    %c0_i32_0 = arith.constant 0 : i32
    %c0_i32_1 = arith.constant 0 : i32
    return %c0_i32, %c0_i32_0 : i32, i32
  }
  func.func @transform_6(%arg0: i32) -> (i32, i32) {
    %c0_i32 = arith.constant 0 : i32
    %c0_i32_0 = arith.constant 0 : i32
    %c0_i32_1 = arith.constant 0 : i32
    return %c0_i32, %c0_i32_0 : i32, i32
  }
  func.func @transform_7(%arg0: i32) -> (i32, i32) {
    %c0_i32 = arith.constant 0 : i32
    %c0_i32_0 = arith.constant 0 : i32
    %c0_i32_1 = arith.constant 0 : i32
    return %c0_i32, %c0_i32_0 : i32, i32
  }
  func.func @transform_8(%arg0: i32) -> (i32, i32) {
    %c0_i32 = arith.constant 0 : i32
    %c0_i32_0 = arith.constant 0 : i32
    %c0_i32_1 = arith.constant 0 : i32
    return %c0_i32, %c0_i32_0 : i32, i32
  }
  func.func @transform_9(%arg0: i32) -> (i32, i32) {
    %c0_i32 = arith.constant 0 : i32
    %c0_i32_0 = arith.constant 0 : i32
    %c0_i32_1 = arith.constant 0 : i32
    return %c0_i32, %c0_i32_0 : i32, i32
  }
  func.func @transform_10(%arg0: i32) -> (i32, i32) {
    %c0_i32 = arith.constant 0 : i32
    %c0_i32_0 = arith.constant 0 : i32
    %c0_i32_1 = arith.constant 0 : i32
    return %c0_i32, %c0_i32_0 : i32, i32
  }
  func.func @transform_11(%arg0: i32) -> (i32, i32) {
    %c0_i32 = arith.constant 0 : i32
    %c0_i32_0 = arith.constant 0 : i32
    %c0_i32_1 = arith.constant 0 : i32
    return %c0_i32, %c0_i32_0 : i32, i32
  }
  func.func @transform_12(%arg0: i32) -> (i32, i32) {
    %c0_i32 = arith.constant 0 : i32
    %c0_i32_0 = arith.constant 0 : i32
    %c0_i32_1 = arith.constant 0 : i32
    return %c0_i32, %c0_i32_0 : i32, i32
  }
  func.func @transform_13(%arg0: i32) -> (i32, i32) {
    %c0_i32 = arith.constant 0 : i32
    %c0_i32_0 = arith.constant 0 : i32
    return %arg0, %c0_i32 : i32, i32
  }
}

</mosaic_0001>

<bundles_post_ra>
// kernel: transformer_decoder_layer.1
= control target key start
LH: loop header
LB: loop body
LE: loop exit
PB: predicated region body
PF: predicated region fallthrough
CT: control target
= control target key end

     0   :  { %v6244_v0 = vmov 0.0   ;;  %vm6245_vm0 = vmmov 0   ;;  %s7953_s0 = inlined_call_operand.vmem [shape: f32[16,128], index: 0, kind: input, shape index: {}]   ;;  %s7954_s1 = inlined_call_operand.vmem [shape: f32[32,128], index: 1, kind: input, shape index: {}]   ;;  %s7955_s2 = inlined_call_operand.vmem [shape: f32[32,128], index: 2, kind: input, shape index: {}]   ;;  %s7956_s3 = inlined_call_operand.vmem [shape: f32[16,128], index: 3, kind: input, shape index: {}]   ;;  %s7957_s4 = inlined_call_operand.vmem [shape: bf16[128,384], index: 4, kind: input, shape index: {}]   ;;  %s7958_s5 = inlined_call_operand.vmem [shape: bf16[128,384], index: 5, kind: input, shape index: {}]   ;;  %s7959_s6 = inlined_call_operand.vmem [shape: bf16[128,128], index: 6, kind: input, shape index: {}]   ;;  %s7960_s7 = inlined_call_operand.vmem [shape: bf16[128,128], index: 7, kind: input, shape index: {}]   ;;  %s7961_s8 = inlined_call_operand.vmem [shape: bf16[128,256], index: 8, kind: input, shape index: {}]   ;;  %s7962_s9 = inlined_call_operand.vmem [shape: bf16[256,128], index: 9, kind: input, shape index: {}]   ;;  %s7963_s10 = inlined_call_operand.vmem [shape: f32[1,256], index: 10, kind: input, shape index: {}]   ;;  %s7964_s11 = inlined_call_operand.vmem [shape: f32[24,32], index: 11, kind: input, shape index: {}]   ;;  %s7965_s12 = inlined_call_operand.vmem [shape: f32[9,128], index: 12, kind: input, shape index: {}]   ;;  %s7966_s13 = inlined_call_operand.hbm [shape: f32[16,128], index: 13, kind: output, shape index: {}]  }
   0x1   :  { %5267 = vmatprep.subr.bf16.mxu1 %v6244_v0  ;;  %v6327_v1 = vld [vmem:[%s7957_s4 + $0x4] ss:$12 sps:$4 sm:$0xff]   ;;  %5247 = vmatprep.subr.bf16.mxu0 %v6244_v0  ;;  %v6333_v2 = vld [vmem:[%s7957_s4 + $0x1c] ss:$12 sps:$4 sm:$0xff]   ;;  %v6343_v3 = vld [vmem:[%s7957_s4] ss:$12 sps:$4 sm:$0xff]  }
   0x2   :  { %5283 = vmatprep.mubr.msk.bf16.mxu1 %vm6245_vm0, %v6244_v0  ;;  %5263 = vmatprep.mubr.msk.bf16.mxu0 %vm6245_vm0, %v6244_v0  ;;  %v6350_v4 = vld [vmem:[%s7957_s4 + $0x18] ss:$12 sps:$4 sm:$0xff]   ;;  %v6357_v5 = vld [vmem:[%s7957_s4 + $0x34] ss:$12 sps:$4 sm:$0xff]   ;;  %v6364_v6 = vld [vmem:[%s7957_s4 + $0x30] ss:$12 sps:$4 sm:$0xff]  }
   0x3   :  { %5268 = vmatpush3.bf16.msra.mxu1 %v6327_v1  ;;  %5248 = vmatpush3.bf16.msra.mxu0 %v6343_v3  ;;  %v6371_v7 = vld [vmem:[%s7957_s4 + $0x4c] ss:$12 sps:$4 sm:$0xff]   ;;  %v6378_v8 = vld [vmem:[%s7957_s4 + $0x48] ss:$12 sps:$4 sm:$0xff]   ;;  %v6385_v9 = vld [vmem:[%s7957_s4 + $0x64] ss:$12 sps:$4 sm:$0xff]  }
   0x4   :  { %5269 = vmatprep.subr.bf16.mxu1 %v6244_v0  ;;  %5249 = vmatprep.subr.bf16.mxu0 %v6244_v0  ;;  %v6392_v10 = vld [vmem:[%s7957_s4 + $0x7c] ss:$12 sps:$4 sm:$0xff]   ;;  %v6397_v11 = vld [vmem:[%s7957_s4 + $0x60] ss:$12 sps:$4 sm:$0xff]   ;;  %v6404_v12 = vld [vmem:[%s7957_s4 + $0x78] ss:$12 sps:$4 sm:$0xff]  }
   0x5   :  { %v6411_v13 = vld [vmem:[%s7957_s4 + $0x94] ss:$12 sps:$4 sm:$0xff]   ;;  %v6421_v15 = vld [vmem:[%s7953_s0 + $0x8] sm:$0xff]  ;;  %v6434_v18 = vld [vmem:[%s7957_s4 + $0x90] ss:$12 sps:$4 sm:$0xff]  }
   0x6   :  { %v6416_v14 = vld [vmem:[%s7953_s0] sm:$0xff]  ;;  %v57_v17 = vld [vmem:[%s7956_s3 + $0x8] sm:$0xff] }
   0x7   :  { %5270 = vmatpush3.bf16.msra.mxu1 %v6333_v2  ;;  %5250 = vmatpush3.bf16.msra.mxu0 %v6350_v4  ;;  %v56_v16 = vld [vmem:[%s7956_s3] sm:$0xff]  ;;  %v6441_v19 = vld [vmem:[%s7957_s4 + $0xac] ss:$12 sps:$4 sm:$0xff]   ;;  %v59_v21 = vadd.f32 %v57_v17, %v6421_v15  ;;  %v6450_v22 = vld [vmem:[%s7957_s4 + $0xa8] ss:$12 sps:$4 sm:$0xff]  }
   0x8   :  { %5271 = vmatprep.subr.bf16.mxu1 %v6244_v0  ;;  %5251 = vmatprep.subr.bf16.mxu0 %v6244_v0  ;;  %v58_v20 = vadd.f32 %v56_v16, %v6416_v14 }
   0xa   :  { %v6454_v23 = vpack.c.bf16 %v59_v21, %v58_v20 }
   0xb   :  { %5272 = vmatpush3.bf16.msra.mxu1 %v6357_v5  ;;  %5252 = vmatpush3.bf16.msra.mxu0 %v6364_v6 }
   0xc   :  { %5273 = vmatprep.subr.bf16.mxu1 %v6244_v0  ;;  %5253 = vmatprep.subr.bf16.mxu0 %v6244_v0 }
   0xf   :  { %5274 = vmatpush3.bf16.msra.mxu1 %v6371_v7  ;;  %5254 = vmatpush3.bf16.msra.mxu0 %v6378_v8 }
  0x10   :  { %5275 = vmatprep.subr.bf16.mxu1 %v6244_v0  ;;  %5255 = vmatprep.subr.bf16.mxu0 %v6244_v0 }
  0x13   :  { %5276 = vmatpush3.bf16.msra.mxu1 %v6385_v9  ;;  %5256 = vmatpush3.bf16.msra.mxu0 %v6397_v11 }
  0x14   :  { %5277 = vmatprep.subr.bf16.mxu1 %v6244_v0  ;;  %5257 = vmatprep.subr.bf16.mxu0 %v6244_v0 }
  0x17   :  { %5278 = vmatpush3.bf16.msra.mxu1 %v6392_v10  ;;  %5258 = vmatpush3.bf16.msra.mxu0 %v6404_v12 }
  0x18   :  { %5279 = vmatprep.subr.bf16.mxu1 %v6244_v0  ;;  %5259 = vmatprep.subr.bf16.mxu0 %v6244_v0 }
  0x1b   :  { %5280 = vmatpush3.bf16.msra.mxu1 %v6411_v13  ;;  %5260 = vmatpush3.bf16.msra.mxu0 %v6434_v18 }
  0x1c   :  { %5281 = vmatprep.subr.bf16.mxu1 %v6244_v0  ;;  %5261 = vmatprep.subr.bf16.mxu0 %v6244_v0 }
  0x1f   :  { %5282 = vmatpush3.bf16.msra.mxu1 %v6441_v19  ;;  %5262 = vmatpush3.bf16.msra.mxu0 %v6450_v22 }
  0x20   :  { %5307 = vmatprep.subr.bf16.mxu1 %v6244_v0  ;;  %5287 = vmatprep.subr.bf16.mxu0 %v6244_v0 }
  0x22   :  { %5284 = vmatmul.mubr.bf16.vlgmr.msra.gmra.mrb[0].mxu1 %v6454_v23  ;;  %5264 = vmatmul.mubr.bf16.vlgmr.msra.gmra.mrb[0].mxu0 %v6454_v23 }
  0x23   :  { %5309 = vmatprep.mubr.msk.bf16.mxu1 %vm6245_vm0, %v6244_v0  ;;  %5303 = vmatprep.mubr.msk.bf16.mxu0 %vm6245_vm0, %v6244_v0 }
  0x24   :  { %18 = vsyncpa [#allocation3], 0  ;;  %v4753_v24 = vld [vmem:[%s7964_s11 + $0x4] ss:$0 sm:$0xff]  ;;  %vm395_vm1 = vcmask 261120   ;;  %v6538_v49 = vpack.c.bf16 %v6421_v15, %v6416_v14  ;;  %vm443_vm2 = vcmask 64512  }
  0x25   :  { %v4744_v29 = vld [vmem:[%s7964_s11] ss:$0 sm:$0xff]  ;;  %v6485_v41 = vld [vmem:[%s7957_s4 + $0x8] ss:$12 sps:$4 sm:$0xff]   ;;  %v6498_v43 = vld [vmem:[%s7957_s4 + $0x38] ss:$12 sps:$4 sm:$0xff]  }
  0x26   :  { %5288 = vmatpush3.bf16.msra.mxu0 %v6485_v41  ;;  %v6491_v42 = vld [vmem:[%s7957_s4 + $0x20] ss:$12 sps:$4 sm:$0xff]   ;;  %v6505_v44 = vld [vmem:[%s7957_s4 + $0x50] ss:$12 sps:$4 sm:$0xff]   ;;  %v6512_v45 = vld [vmem:[%s7957_s4 + $0x68] ss:$12 sps:$4 sm:$0xff]  }
  0x27   :  { %5289 = vmatprep.subr.bf16.mxu0 %v6244_v0  ;;  %v6519_v46 = vld [vmem:[%s7957_s4 + $0x80] ss:$12 sps:$4 sm:$0xff]   ;;  %v6526_v47 = vld [vmem:[%s7957_s4 + $0x98] ss:$12 sps:$4 sm:$0xff]   ;;  %v6533_v48 = vld [vmem:[%s7957_s4 + $0xb0] ss:$12 sps:$4 sm:$0xff]  }
  0x28   :  { %v4762_v56 = vld [vmem:[%s7964_s11 + $0x8] ss:$0 sm:$0xff]  ;;  %vm459_vm3 = vcmask 1043456   ;;  %s6246_s19 = smov 96   ;;  %s6247_s28 = smov 64   ;;  %vm2595_vm4 = vcmask 130048  }
  0x29   :  { %s6248_s29 = smov 32  }
  0x2a   :  { %5290 = vmatpush3.bf16.msra.mxu0 %v6491_v42 }
  0x2b   :  { %5291 = vmatprep.subr.bf16.mxu0 %v6244_v0 }
  0x2e   :  { %5292 = vmatpush3.bf16.msra.mxu0 %v6498_v43 }
  0x2f   :  { %5293 = vmatprep.subr.bf16.mxu0 %v6244_v0 }
  0x32   :  { %5294 = vmatpush3.bf16.msra.mxu0 %v6505_v44 }
  0x33   :  { %5295 = vmatprep.subr.bf16.mxu0 %v6244_v0 }
  0x36   :  { %5296 = vmatpush3.bf16.msra.mxu0 %v6512_v45 }
  0x37   :  { %5297 = vmatprep.subr.bf16.mxu0 %v6244_v0 }
  0x3a   :  { %5298 = vmatpush3.bf16.msra.mxu0 %v6519_v46 }
  0x3b   :  { %5299 = vmatprep.subr.bf16.mxu0 %v6244_v0 }
  0x3e   :  { %5300 = vmatpush3.bf16.msra.mxu0 %v6526_v47 }
  0x3f   :  { %5301 = vmatprep.subr.bf16.mxu0 %v6244_v0 }
  0x42   :  { %5302 = vmatpush3.bf16.msra.mxu0 %v6533_v48 }
  0x43   :  { %5331 = vmatprep.subr.bf16.mxu0 %v6244_v0 }
  0x45   :  { %5304 = vmatmul.mubr.bf16.vlgmr.msra.gmra.mrb[4].mxu0 %v6538_v49 }
  0x46   :  { %5347 = vmatprep.mubr.msk.bf16.mxu0 %vm6245_vm0, %v6244_v0 }
  0xf5   :  { %v292_v25 = vpop.f32.mrb[0].mxu1  ;;  %v199_v30 = vpop.f32.mrb[0].mxu0 }
  0xf6   :  { %v293_v26 = vadd.f32 %v4753_v24, %v292_v25  ;;  %v5285_v27 = vpop.f32.mrb[1].mxu1  ;;  %v5265_v34 = vpop.f32.mrb[1].mxu0  ;;  %v200_v37 = vadd.f32 %v4744_v29, %v199_v30 }
  0xf7   :  { %v295_v28 = vpop.f32.mrb[2].mxu1  ;;  %v202_v35 = vpop.f32.mrb[2].mxu0 }
  0xf8   :  { %v394_v31 = vpack.c.bf16 %v293_v26, %v293_v26  ;;  %v6473_v32 = vadd.f32 %v4753_v24, %v295_v28  ;;  %v5286_v33 = vpop.f32.mrb[3].mxu1  ;;  %v6476_v38 = vadd.f32 %v4744_v29, %v202_v35  ;;  %v5266_v39 = vpop.f32.mrb[3].mxu0  ;;  %v393_v40 = vpack.c.bf16 %v200_v37, %v200_v37 }
  0xfa   :  { %v400_v36 = vsel %vm395_vm1, %v394_v31, 0  ;;  %v504_v26 = vpack.c.bf16 %v6473_v32, %v6473_v32  ;;  %v503_v31 = vpack.c.bf16 %v6476_v38, %v6476_v38 }
  0xfb   :  { %5308 = vmatpush3.bf16.xpose.msra.mxu1 %v400_v36 }
  0xfc   :  { %5313 = vmatprep.subr.bf16.mxu1 %v6244_v0  ;;  %v509_v29 = vsel %vm395_vm1, %v504_v26, 0 }
 0x102   :  { %5310 = vmatmul.mubr.msk.bf16.vlgmr.msra.gmra.mrb[4].mxu1 %vm395_vm1, %v393_v40 }
 0x103   :  { %5315 = vmatprep.mubr.msk.bf16.mxu1 %vm6245_vm0, %v6244_v0 }
 0x118   :  { %v385_v57 = vpop.f32.mrb[4].mxu0 }
 0x119   :  { %v386_v58 = vadd.f32 %v4762_v56, %v385_v57  ;;  %v5305_v59 = vpop.f32.mrb[5].mxu0 }
 0x11a   :  { %v388_v60 = vpop.f32.mrb[6].mxu0 }
 0x11b   :  { %v389_v61 = vadd.f32 %v4762_v56, %v388_v60  ;;  %v5306_v62 = vpop.f32.mrb[7].mxu0 }
 0x11d   :  { %v392_v63 = vpack.c.bf16 %v389_v61, %v386_v58 }
 0x11f   :  { %v461_v21 = vsel %vm459_vm3, %v392_v63, 0  ;;  %v565_v30 = vrot.slane %v392_v63, 4 }
 0x120   :  { %5314 = vmatpush3.bf16.msra.mxu1 %v461_v21 }
 0x121   :  { %5319 = vmatprep.subr.bf16.mxu1 %v6244_v0  ;;  %v570_v32 = vsel %vm459_vm3, %v565_v30, 0 }
 0x1d5   :  { %v436_v50 = vpop.f32.mrb[4].mxu1 }
 0x1d6   :  { %v442_v51 = vmul.f32 0.17677669, %v436_v50  ;;  %v5311_v52 = vpop.f32.mrb[5].mxu1 }
 0x1d7   :  { %v439_v53 = vpop.f32.mrb[6].mxu1 }
 0x1d8   :  { %v5312_v54 = vpop.f32.mrb[7].mxu1  ;;  %v444_v55 = vsel %vm443_vm2, %v442_v51, -inf }
 0x1d9   :  { %445 = vmax.xlane.f32.xlu0 %v444_v55 }
 0x266   :  { %v446_v14 = vpop.xlane.xlu0 %445 }
 0x267   :  { %v447_v15 = vsub.f32 %v442_v51, %v446_v14 }
 0x269   :  { %v448_v16 = vmul.f32 1.442695, %v447_v15 }
 0x26b   :  { %6096 = vpow2.f32 %v448_v16 }
 0x275   :  { %v6097_v17 = vpop.eup %6096 }
 0x276   :  { %v450_v20 = vsel %vm443_vm2, %v6097_v17, 0.0 }
 0x277   :  { %451 = vadd.xlane.f32.xlu0 %v450_v20 }
 0x28d   :  { %693 = vrot.lane.b32.xlu0 %v6327_v1, %s6246_s19 }
 0x291   :  { %626 = vrot.lane.b32.xlu0 %v6350_v4, %s6246_s19 }
 0x295   :  { %628 = vrot.lane.b32.xlu0 %v6364_v6, %s6246_s19 }
 0x299   :  { %630 = vrot.lane.b32.xlu0 %v6378_v8, %s6246_s19 }
 0x29d   :  { %632 = vrot.lane.b32.xlu0 %v6397_v11, %s6246_s19 }
 0x2a1   :  { %634 = vrot.lane.b32.xlu0 %v6404_v12, %s6246_s19 }
 0x2a5   :  { %636 = vrot.lane.b32.xlu0 %v6434_v18, %s6246_s19 }
 0x2a9   :  { %762 = vrot.lane.b32.xlu0 %v6485_v41, %s6246_s19 }
 0x2ad   :  { %766 = vrot.lane.b32.xlu0 %v6498_v43, %s6246_s19 }
 0x2b1   :  { %770 = vrot.lane.b32.xlu0 %v6512_v45, %s6246_s19 }
 0x2b5   :  { %774 = vrot.lane.b32.xlu0 %v6526_v47, %s6246_s19 }
 0x304   :  { %v452_v24 = vpop.xlane.xlu0 %451 }
 0x305   :  { %6098 = vrcp.f32 %v452_v24 }
 0x30f   :  { %v6099_v25 = vpop.eup %6098 }
 0x310   :  { %v454_v27 = vmul.f32 %v6099_v25, %v6097_v17 }
 0x312   :  { %v455_v28 = vpack.c.bf16 %v454_v27, %v454_v27 }
 0x314   :  { %5316 = vmatmul.mubr.msk.bf16.vlgmr.msra.gmra.mrb[8].mxu1 %vm443_vm2, %v455_v28  ;;  %v4775_v28 = vld [vmem:[%s7964_s11 + $0x1] ss:$0 sm:$0xff] }
 0x315   :  { %5320 = vmatpush3.bf16.xpose.msra.mxu1 %v509_v29  ;;  %5321 = vmatprep.mubr.msk.bf16.mxu1 %vm6245_vm0, %v6244_v0 }
 0x316   :  { %5325 = vmatprep.subr.bf16.mxu1 %v6244_v0 }
 0x31c   :  { %5322 = vmatmul.mubr.msk.bf16.vlgmr.msra.gmra.mrb[12].mxu1 %vm395_vm1, %v503_v31 }
 0x31d   :  { %5326 = vmatpush3.bf16.msra.mxu1 %v570_v32  ;;  %5327 = vmatprep.mubr.msk.bf16.mxu1 %vm6245_vm0, %v6244_v0 }
 0x31e   :  { %5351 = vmatprep.subr.bf16.mxu1 %v6244_v0 }
 0x3e7   :  { %v6588_v1 = vpop.f32.mrb[8].mxu1 }
 0x3e8   :  { %v5317_v4 = vpop.f32.mrb[9].mxu1 }
 0x3e9   :  { %v500_v6 = vpop.f32.mrb[10].mxu1 }
 0x3ea   :  { %v5318_v8 = vpop.f32.mrb[11].mxu1  ;;  %v4776_v6 = vld [vmem:[%s7964_s11 + $0x5] ss:$0 sm:$0xff] }
 0x3ef   :  { %v545_v33 = vpop.f32.mrb[12].mxu1 }
 0x3f0   :  { %v551_v34 = vmul.f32 0.17677669, %v545_v33  ;;  %v5323_v35 = vpop.f32.mrb[13].mxu1 }
 0x3f1   :  { %v548_v36 = vpop.f32.mrb[14].mxu1 }
 0x3f2   :  { %v5324_v37 = vpop.f32.mrb[15].mxu1  ;;  %v552_v38 = vsel %vm443_vm2, %v551_v34, -inf }
 0x3f3   :  { %553 = vmax.xlane.f32.xlu1 %v552_v38 }
 0x404   :  { %695 = vrot.lane.b32.xlu1 %v6333_v2, %s6246_s19  ;;  %v694_v2 = vpop.permute.xlu0 %693 }
 0x480   :  { %v554_v39 = vpop.xlane.xlu1 %553 }
 0x481   :  { %v555_v40 = vsub.f32 %v551_v34, %v554_v39 }
 0x483   :  { %v556_v50 = vmul.f32 1.442695, %v555_v40 }
 0x485   :  { %6100 = vpow2.f32 %v556_v50 }
 0x48f   :  { %v6101_v51 = vpop.eup %6100 }
 0x490   :  { %v558_v52 = vsel %vm443_vm2, %v6101_v51, 0.0 }
 0x491   :  { %559 = vadd.xlane.f32.xlu1 %v558_v52 }
 0x4a2   :  { %624 = vrot.lane.b32.xlu1 %v6343_v3, %s6246_s19  ;;  %v696_v3 = vpop.permute.xlu1 %695 }
 0x4a6   :  { %697 = vrot.lane.b32.xlu1 %v6357_v5, %s6246_s19  ;;  %v627_v5 = vpop.permute.xlu0 %626 }
 0x4aa   :  { %699 = vrot.lane.b32.xlu1 %v6371_v7, %s6246_s19  ;;  %v629_v53 = vpop.permute.xlu0 %628 }
 0x4ae   :  { %701 = vrot.lane.b32.xlu1 %v6385_v9, %s6246_s19  ;;  %v631_v56 = vpop.permute.xlu0 %630 }
 0x4b2   :  { %703 = vrot.lane.b32.xlu1 %v6392_v10, %s6246_s19  ;;  %v633_v61 = vpop.permute.xlu0 %632 }
 0x4b6   :  { %705 = vrot.lane.b32.xlu1 %v6411_v13, %s6246_s19  ;;  %v635_v14 = vpop.permute.xlu0 %634 }
 0x4ba   :  { %707 = vrot.lane.b32.xlu1 %v6441_v19, %s6246_s19  ;;  %v637_v16 = vpop.permute.xlu0 %636 }
 0x4be   :  { %638 = vrot.lane.b32.xlu1 %v6450_v22, %s6246_s19 }
 0x4c2   :  { %764 = vrot.lane.b32.xlu1 %v6491_v42, %s6246_s19 }
 0x4c6   :  { %768 = vrot.lane.b32.xlu1 %v6505_v44, %s6246_s19 }
 0x4ca   :  { %772 = vrot.lane.b32.xlu1 %v6519_v46, %s6246_s19 }
 0x4ce   :  { %776 = vrot.lane.b32.xlu1 %v6533_v48, %s6246_s19 }
 0x51e   :  { %v560_v7 = vpop.xlane.xlu1 %559 }
 0x51f   :  { %6102 = vrcp.f32 %v560_v7 }
 0x522   :  { %v625_v54 = vpop.permute.xlu1 %624 }
 0x523   :  { %5332 = vmatpush3.bf16.msra.mxu0 %v625_v54 }
 0x524   :  { %5333 = vmatprep.subr.bf16.mxu0 %v6244_v0 }
 0x526   :  { %v698_v55 = vpop.permute.xlu1 %697 }
 0x527   :  { %5334 = vmatpush3.bf16.msra.mxu0 %v627_v5 }
 0x528   :  { %5335 = vmatprep.subr.bf16.mxu0 %v6244_v0 }
 0x529   :  { %v6103_v57 = vpop.eup %6102 }
 0x52a   :  { %v562_v58 = vmul.f32 %v6103_v57, %v6101_v51  ;;  %v700_v59 = vpop.permute.xlu1 %699  ;;  %v763_v51 = vpop.permute.xlu0 %762 }
 0x52b   :  { %5336 = vmatpush3.bf16.msra.mxu0 %v629_v53 }
 0x52c   :  { %v563_v60 = vpack.c.bf16 %v562_v58, %v562_v58  ;;  %5337 = vmatprep.subr.bf16.mxu0 %v6244_v0 }
 0x52e   :  { %5328 = vmatmul.mubr.msk.bf16.vlgmr.msra.gmra.mrb[16].mxu1 %vm443_vm2, %v563_v60  ;;  %v702_v62 = vpop.permute.xlu1 %701 }
 0x52f   :  { %5352 = vmatpush3.bf16.msra.mxu1 %v694_v2  ;;  %5338 = vmatpush3.bf16.msra.mxu0 %v631_v56  ;;  %v767_v2 = vpop.permute.xlu0 %766 }
 0x530   :  { %5353 = vmatprep.subr.bf16.mxu1 %v6244_v0  ;;  %5339 = vmatprep.subr.bf16.mxu0 %v6244_v0 }
 0x531   :  { %5367 = vmatprep.mubr.msk.bf16.mxu1 %vm6245_vm0, %v6244_v0 }
 0x532   :  { %v704_v63 = vpop.permute.xlu1 %703 }
 0x533   :  { %5354 = vmatpush3.bf16.msra.mxu1 %v696_v3  ;;  %5340 = vmatpush3.bf16.msra.mxu0 %v633_v61  ;;  %v771_v5 = vpop.permute.xlu0 %770  ;;  %v4777_v61 = vld [vmem:[%s7964_s11 + $0x9] ss:$0 sm:$0xff] }
 0x534   :  { %5355 = vmatprep.subr.bf16.mxu1 %v6244_v0  ;;  %5341 = vmatprep.subr.bf16.mxu0 %v6244_v0 }
 0x536   :  { %v706_v15 = vpop.permute.xlu1 %705 }
 0x537   :  { %5356 = vmatpush3.bf16.msra.mxu1 %v698_v55  ;;  %5342 = vmatpush3.bf16.msra.mxu0 %v635_v14  ;;  %v775_v53 = vpop.permute.xlu0 %774 }
 0x538   :  { %5357 = vmatprep.subr.bf16.mxu1 %v6244_v0  ;;  %5343 = vmatprep.subr.bf16.mxu0 %v6244_v0 }
 0x53a   :  { %v708_v17 = vpop.permute.xlu1 %707 }
 0x53b   :  { %5358 = vmatpush3.bf16.msra.mxu1 %v700_v59  ;;  %5344 = vmatpush3.bf16.msra.mxu0 %v637_v16 }
 0x53c   :  { %5359 = vmatprep.subr.bf16.mxu1 %v6244_v0  ;;  %5345 = vmatprep.subr.bf16.mxu0 %v6244_v0 }
 0x53e   :  { %v639_v20 = vpop.permute.xlu1 %638 }
 0x53f   :  { %5360 = vmatpush3.bf16.msra.mxu1 %v702_v62  ;;  %5346 = vmatpush3.bf16.msra.mxu0 %v639_v20 }
 0x540   :  { %5361 = vmatprep.subr.bf16.mxu1 %v6244_v0  ;;  %5371 = vmatprep.subr.bf16.mxu0 %v6244_v0 }
 0x542   :  { %5348 = vmatmul.mubr.bf16.vlgmr.msra.gmra.mrb[8].mxu0 %v6454_v23  ;;  %v765_v52 = vpop.permute.xlu1 %764 }
 0x543   :  { %5362 = vmatpush3.bf16.msra.mxu1 %v704_v63  ;;  %5387 = vmatprep.mubr.msk.bf16.mxu0 %vm6245_vm0, %v6244_v0 }
 0x544   :  { %5363 = vmatprep.subr.bf16.mxu1 %v6244_v0  ;;  %5372 = vmatpush3.bf16.msra.mxu0 %v763_v51 }
 0x545   :  { %5373 = vmatprep.subr.bf16.mxu0 %v6244_v0 }
 0x546   :  { %v769_v3 = vpop.permute.xlu1 %768 }
 0x547   :  { %5364 = vmatpush3.bf16.msra.mxu1 %v706_v15 }
 0x548   :  { %5365 = vmatprep.subr.bf16.mxu1 %v6244_v0  ;;  %5374 = vmatpush3.bf16.msra.mxu0 %v765_v52 }
 0x549   :  { %5375 = vmatprep.subr.bf16.mxu0 %v6244_v0 }
 0x54a   :  { %v773_v7 = vpop.permute.xlu1 %772 }
 0x54b   :  { %5366 = vmatpush3.bf16.msra.mxu1 %v708_v17 }
 0x54c   :  { %5391 = vmatprep.subr.bf16.mxu1 %v6244_v0  ;;  %5376 = vmatpush3.bf16.msra.mxu0 %v767_v2 }
 0x54d   :  { %5377 = vmatprep.subr.bf16.mxu0 %v6244_v0 }
 0x54e   :  { %5368 = vmatmul.mubr.bf16.vlgmr.msra.gmra.mrb[20].mxu1 %v6454_v23  ;;  %v777_v54 = vpop.permute.xlu1 %776 }
 0x54f   :  { %5393 = vmatprep.mubr.msk.bf16.mxu1 %vm6245_vm0, %v6244_v0 }
 0x550   :  { %5378 = vmatpush3.bf16.msra.mxu0 %v769_v3 }
 0x551   :  { %5379 = vmatprep.subr.bf16.mxu0 %v6244_v0 }
 0x554   :  { %5380 = vmatpush3.bf16.msra.mxu0 %v771_v5 }
 0x555   :  { %5381 = vmatprep.subr.bf16.mxu0 %v6244_v0 }
 0x558   :  { %5382 = vmatpush3.bf16.msra.mxu0 %v773_v7 }
 0x559   :  { %5383 = vmatprep.subr.bf16.mxu0 %v6244_v0 }
 0x55c   :  { %5384 = vmatpush3.bf16.msra.mxu0 %v775_v53 }
 0x55d   :  { %5385 = vmatprep.subr.bf16.mxu0 %v6244_v0 }
 0x560   :  { %5386 = vmatpush3.bf16.msra.mxu0 %v777_v54 }
 0x561   :  { %5415 = vmatprep.subr.bf16.mxu0 %v6244_v0 }
 0x563   :  { %5388 = vmatmul.mubr.bf16.vlgmr.msra.gmra.mrb[12].mxu0 %v6538_v49 }
 0x564   :  { %5419 = vmatprep.mubr.msk.bf16.mxu0 %vm6245_vm0, %v6244_v0 }
 0x601   :  { %v6643_v21 = vpop.f32.mrb[16].mxu1 }
 0x602   :  { %v616_v24 = vpack.c.bf16 %v6643_v21, %v6588_v1  ;;  %v5329_v25 = vpop.f32.mrb[17].mxu1 }
 0x603   :  { %v609_v26 = vpop.f32.mrb[18].mxu1 }
 0x604   :  { %v5330_v27 = vpop.f32.mrb[19].mxu1 }
 0x615   :  { %v682_v29 = vpop.f32.mrb[8].mxu0 }
 0x616   :  { %v5349_v30 = vpop.f32.mrb[9].mxu0  ;;  %v683_v40 = vadd.f32 %v4775_v28, %v682_v29 }
 0x617   :  { %v685_v31 = vpop.f32.mrb[10].mxu0 }
 0x618   :  { %v6650_v32 = vadd.f32 %v4775_v28, %v685_v31  ;;  %v5350_v4 = vpop.f32.mrb[11].mxu0  ;;  %v828_v50 = vpack.c.bf16 %v683_v40, %v683_v40 }
 0x621   :  { %v751_v8 = vpop.f32.mrb[20].mxu1 }
 0x622   :  { %v752_v33 = vadd.f32 %v4776_v6, %v751_v8  ;;  %v5369_v34 = vpop.f32.mrb[21].mxu1 }
 0x623   :  { %v754_v35 = vpop.f32.mrb[22].mxu1 }
 0x624   :  { %v829_v36 = vpack.c.bf16 %v752_v33, %v752_v33  ;;  %v6655_v37 = vadd.f32 %v4776_v6, %v754_v35  ;;  %v5370_v38 = vpop.f32.mrb[23].mxu1 }
 0x626   :  { %v834_v39 = vsel %vm395_vm1, %v829_v36, 0  ;;  %v936_v6 = vpack.c.bf16 %v6655_v37, %v6655_v37  ;;  %v935_v36 = vpack.c.bf16 %v6650_v32, %v6650_v32 }
 0x627   :  { %5392 = vmatpush3.bf16.xpose.msra.mxu1 %v834_v39 }
 0x628   :  { %5397 = vmatprep.subr.bf16.mxu1 %v6244_v0  ;;  %v941_v34 = vsel %vm395_vm1, %v936_v6, 0 }
 0x62e   :  { %5394 = vmatmul.mubr.msk.bf16.vlgmr.msra.gmra.mrb[24].mxu1 %vm395_vm1, %v828_v50 }
 0x62f   :  { %5399 = vmatprep.mubr.msk.bf16.mxu1 %vm6245_vm0, %v6244_v0 }
 0x636   :  { %v820_v62 = vpop.f32.mrb[12].mxu0 }
 0x637   :  { %v821_v63 = vadd.f32 %v4777_v61, %v820_v62  ;;  %v5389_v14 = vpop.f32.mrb[13].mxu0  ;;  %v6019_v62 = vld [vmem:[%s7959_s6 + $0x18] sm:$0xff]  }
 0x638   :  { %v823_v15 = vpop.f32.mrb[14].mxu0  ;;  %v6743_v14 = vld [vmem:[%s7957_s4 + $0x30] ss:$12 sps:$4 sm:$0xff]  }
 0x639   :  { %v824_v16 = vadd.f32 %v4777_v61, %v823_v15  ;;  %v5390_v17 = vpop.f32.mrb[15].mxu0  ;;  %v6725_v61 = vld [vmem:[%s7957_s4 + $0x18] ss:$12 sps:$4 sm:$0xff]  }
 0x63a   :  { %v6751_v15 = vld [vmem:[%s7957_s4 + $0x4c] ss:$12 sps:$4 sm:$0xff]  }
 0x63b   :  { %v827_v20 = vpack.c.bf16 %v824_v16, %v821_v63  ;;  %v6736_v63 = vld [vmem:[%s7957_s4 + $0x34] ss:$12 sps:$4 sm:$0xff]  }
 0x63c   :  { %v6758_v16 = vld [vmem:[%s7957_s4 + $0x48] ss:$12 sps:$4 sm:$0xff]  }
 0x63d   :  { %v893_v30 = vsel %vm459_vm3, %v827_v20, 0  ;;  %v997_v35 = vrot.slane %v827_v20, 4 }
 0x63e   :  { %5398 = vmatpush3.bf16.msra.mxu1 %v893_v30 }
 0x63f   :  { %5403 = vmatprep.subr.bf16.mxu1 %v6244_v0  ;;  %v1002_v37 = vsel %vm459_vm3, %v997_v35, 0 }
 0x701   :  { %v870_v55 = vpop.f32.mrb[24].mxu1 }
 0x702   :  { %v876_v56 = vmul.f32 0.17677669, %v870_v55  ;;  %v5395_v57 = vpop.f32.mrb[25].mxu1 }
 0x703   :  { %v873_v58 = vpop.f32.mrb[26].mxu1  ;;  %v6701_v57 = vld [vmem:[%s7957_s4 + $0x4] ss:$12 sps:$4 sm:$0xff]  }
 0x704   :  { %v5396_v59 = vpop.f32.mrb[27].mxu1  ;;  %v877_v60 = vsel %vm443_vm2, %v876_v56, -inf  ;;  %v6708_v58 = vld [vmem:[%s7957_s4 + $0x1c] ss:$12 sps:$4 sm:$0xff]  }
 0x705   :  { %878 = vmax.xlane.f32.xlu0 %v877_v60  ;;  %v6018_v59 = vld [vmem:[%s7959_s6 + $0x10] sm:$0xff]   ;;  %v6718_v60 = vld [vmem:[%s7957_s4] ss:$12 sps:$4 sm:$0xff]  }
 0x706   :  { %5416 = vmatpush3.bf16.msra.mxu0 %v6018_v59 }
 0x707   :  { %5417 = vmatprep.subr.bf16.mxu0 %v6244_v0 }
 0x70a   :  { %5418 = vmatpush3.bf16.msra.mxu0 %v6019_v62 }
 0x70b   :  { %5431 = vmatprep.subr.bf16.mxu0 %v6244_v0 }
 0x792   :  { %v879_v25 = vpop.xlane.xlu0 %878 }
 0x793   :  { %v880_v26 = vsub.f32 %v876_v56, %v879_v25 }
 0x795   :  { %v881_v27 = vmul.f32 1.442695, %v880_v26 }
 0x797   :  { %6104 = vpow2.f32 %v881_v27 }
 0x7a1   :  { %v6105_v28 = vpop.eup %6104 }
 0x7a2   :  { %v883_v29 = vsel %vm443_vm2, %v6105_v28, 0.0 }
 0x7a3   :  { %884 = vadd.xlane.f32.xlu1 %v883_v29 }
 0x7b4   :  { %1239 = vrot.lane.b32.xlu1 %v6708_v58, %s6247_s28 }
 0x7b8   :  { %1168 = vrot.lane.b32.xlu1 %v6718_v60, %s6247_s28 }
 0x7bc   :  { %1241 = vrot.lane.b32.xlu1 %v6736_v63, %s6247_s28 }
 0x7c0   :  { %1243 = vrot.lane.b32.xlu1 %v6751_v15, %s6247_s28 }
 0x7c4   :  { %1245 = vrot.lane.b32.xlu1 %v6385_v9, %s6247_s28 }
 0x7c8   :  { %1247 = vrot.lane.b32.xlu1 %v6392_v10, %s6247_s28 }
 0x7cc   :  { %1249 = vrot.lane.b32.xlu1 %v6411_v13, %s6247_s28 }
 0x7d0   :  { %1251 = vrot.lane.b32.xlu1 %v6441_v19, %s6247_s28 }
 0x7d4   :  { %1182 = vrot.lane.b32.xlu1 %v6450_v22, %s6247_s28 }
 0x7d8   :  { %1308 = vrot.lane.b32.xlu1 %v6491_v42, %s6247_s28 }
 0x7dc   :  { %1312 = vrot.lane.b32.xlu1 %v6505_v44, %s6247_s28 }
 0x7e0   :  { %1316 = vrot.lane.b32.xlu1 %v6519_v46, %s6247_s28 }
 0x7e4   :  { %1320 = vrot.lane.b32.xlu1 %v6533_v48, %s6247_s28 }
 0x830   :  { %v885_v31 = vpop.xlane.xlu1 %884 }
 0x831   :  { %6106 = vrcp.f32 %v885_v31 }
 0x834   :  { %v1240_v19 = vpop.permute.xlu1 %1239 }
 0x83b   :  { %v6107_v4 = vpop.eup %6106 }
 0x83c   :  { %v887_v8 = vmul.f32 %v6107_v4, %v6105_v28 }
 0x83e   :  { %v888_v33 = vpack.c.bf16 %v887_v8, %v887_v8 }
 0x840   :  { %5400 = vmatmul.mubr.msk.bf16.vlgmr.msra.gmra.mrb[28].mxu1 %vm443_vm2, %v888_v33  ;;  %v4789_v33 = vld [vmem:[%s7964_s11 + $0x6] ss:$0 sm:$0xff] }
 0x841   :  { %5404 = vmatpush3.bf16.xpose.msra.mxu1 %v941_v34  ;;  %5405 = vmatprep.mubr.msk.bf16.mxu1 %vm6245_vm0, %v6244_v0 }
 0x842   :  { %5409 = vmatprep.subr.bf16.mxu1 %v6244_v0 }
 0x848   :  { %5406 = vmatmul.mubr.msk.bf16.vlgmr.msra.gmra.mrb[32].mxu1 %vm395_vm1, %v935_v36 }
 0x849   :  { %5410 = vmatpush3.bf16.msra.mxu1 %v1002_v37  ;;  %5411 = vmatprep.mubr.msk.bf16.mxu1 %vm6245_vm0, %v6244_v0 }
 0x84a   :  { %5423 = vmatprep.subr.bf16.mxu1 %v6244_v0 }
 0x913   :  { %v6694_v38 = vpop.f32.mrb[28].mxu1 }
 0x914   :  { %v5401_v39 = vpop.f32.mrb[29].mxu1 }
 0x915   :  { %v932_v40 = vpop.f32.mrb[30].mxu1 }
 0x916   :  { %v5402_v50 = vpop.f32.mrb[31].mxu1 }
 0x91b   :  { %v977_v51 = vpop.f32.mrb[32].mxu1 }
 0x91c   :  { %v983_v52 = vmul.f32 0.17677669, %v977_v51  ;;  %v5407_v2 = vpop.f32.mrb[33].mxu1 }
 0x91d   :  { %v980_v3 = vpop.f32.mrb[34].mxu1 }
 0x91e   :  { %v5408_v32 = vpop.f32.mrb[35].mxu1  ;;  %v984_v5 = vsel %vm443_vm2, %v983_v52, -inf }
 0x91f   :  { %985 = vmax.xlane.f32.xlu0 %v984_v5 }
 0x9ac   :  { %v986_v7 = vpop.xlane.xlu0 %985 }
 0x9ad   :  { %v987_v53 = vsub.f32 %v983_v52, %v986_v7  ;;  %v4788_v7 = vld [vmem:[%s7964_s11 + $0x2] ss:$0 sm:$0xff] }
 0x9af   :  { %v988_v54 = vmul.f32 1.442695, %v987_v53 }
 0x9b1   :  { %6108 = vpow2.f32 %v988_v54 }
 0x9bb   :  { %v6109_v55 = vpop.eup %6108 }
 0x9bc   :  { %v990_v56 = vsel %vm443_vm2, %v6109_v55, 0.0 }
 0x9bd   :  { %991 = vadd.xlane.f32.xlu0 %v990_v56 }
 0x9d3   :  { %1237 = vrot.lane.b32.xlu0 %v6701_v57, %s6247_s28 }
 0x9d7   :  { %1170 = vrot.lane.b32.xlu0 %v6725_v61, %s6247_s28 }
 0x9db   :  { %1172 = vrot.lane.b32.xlu0 %v6743_v14, %s6247_s28 }
 0x9df   :  { %1174 = vrot.lane.b32.xlu0 %v6758_v16, %s6247_s28 }
 0x9e3   :  { %1176 = vrot.lane.b32.xlu0 %v6397_v11, %s6247_s28 }
 0x9e7   :  { %1178 = vrot.lane.b32.xlu0 %v6404_v12, %s6247_s28  ;;  %v6016_v12 = vld [vmem:[%s7959_s6] sm:$0xff]  }
 0x9eb   :  { %1180 = vrot.lane.b32.xlu0 %v6434_v18, %s6247_s28  ;;  %v6017_v18 = vld [vmem:[%s7959_s6 + $0x8] sm:$0xff]  }
 0x9ef   :  { %1306 = vrot.lane.b32.xlu0 %v6485_v41, %s6247_s28  ;;  %v1169_v41 = vpop.permute.xlu1 %1168 }
 0x9f3   :  { %1310 = vrot.lane.b32.xlu0 %v6498_v43, %s6247_s28  ;;  %v1242_v42 = vpop.permute.xlu1 %1241 }
 0x9f7   :  { %1314 = vrot.lane.b32.xlu0 %v6512_v45, %s6247_s28  ;;  %v1244_v43 = vpop.permute.xlu1 %1243 }
 0x9fb   :  { %1318 = vrot.lane.b32.xlu0 %v6526_v47, %s6247_s28  ;;  %v1246_v44 = vpop.permute.xlu1 %1245 }
 0x9ff   :  { %v1248_v45 = vpop.permute.xlu1 %1247 }
 0xa03   :  { %v1250_v46 = vpop.permute.xlu1 %1249 }
 0xa07   :  { %v1252_v47 = vpop.permute.xlu1 %1251 }
 0xa0b   :  { %v1183_v8 = vpop.permute.xlu1 %1182 }
 0xa4a   :  { %v992_v9 = vpop.xlane.xlu0 %991 }
 0xa4b   :  { %6110 = vrcp.f32 %v992_v9 }
 0xa4e   :  { %v1238_v22 = vpop.permute.xlu0 %1237 }
 0xa52   :  { %v1171_v48 = vpop.permute.xlu0 %1170 }
 0xa55   :  { %v6111_v10 = vpop.eup %6110 }
 0xa56   :  { %v994_v11 = vmul.f32 %v6111_v10, %v6109_v55  ;;  %v1173_v17 = vpop.permute.xlu0 %1172 }
 0xa58   :  { %v995_v13 = vpack.c.bf16 %v994_v11, %v994_v11  ;;  %v1309_v11 = vpop.permute.xlu1 %1308 }
 0xa5a   :  { %5412 = vmatmul.mubr.msk.bf16.vlgmr.msra.gmra.mrb[36].mxu1 %vm443_vm2, %v995_v13  ;;  %v1175_v26 = vpop.permute.xlu0 %1174 }
 0xa5b   :  { %5424 = vmatpush3.bf16.msra.mxu1 %v6016_v12  ;;  %5427 = vmatprep.mubr.msk.bf16.mxu1 %vm6245_vm0, %v6244_v0 }
 0xa5c   :  { %5425 = vmatprep.subr.bf16.mxu1 %v6244_v0  ;;  %v1313_v13 = vpop.permute.xlu1 %1312 }
 0xa5e   :  { %v1177_v31 = vpop.permute.xlu0 %1176 }
 0xa5f   :  { %5426 = vmatpush3.bf16.msra.mxu1 %v6017_v18 }
 0xa60   :  { %5451 = vmatprep.subr.bf16.mxu1 %v6244_v0 }
 0xa62   :  { %5428 = vmatmul.mubr.msk.bf16.vlgmr.msra.gmra.mrb[40].mxu1 %vm395_vm1, %v616_v24  ;;  %v1179_v4 = vpop.permute.xlu0 %1178 }
 0xa63   :  { %5452 = vmatpush3.bf16.msra.mxu1 %v1238_v22  ;;  %5467 = vmatprep.mubr.msk.bf16.mxu1 %vm6245_vm0, %v6244_v0 }
 0xa64   :  { %5453 = vmatprep.subr.bf16.mxu1 %v6244_v0 }
 0xa66   :  { %v1181_v6 = vpop.permute.xlu0 %1180 }
 0xa67   :  { %5454 = vmatpush3.bf16.msra.mxu1 %v1240_v19  ;;  %v1317_v19 = vpop.permute.xlu1 %1316 }
 0xa68   :  { %5455 = vmatprep.subr.bf16.mxu1 %v6244_v0 }
 0xa6a   :  { %v1307_v10 = vpop.permute.xlu0 %1306 }
 0xa6b   :  { %5456 = vmatpush3.bf16.msra.mxu1 %v1242_v42 }
 0xa6c   :  { %5457 = vmatprep.subr.bf16.mxu1 %v6244_v0 }
 0xa6e   :  { %v1311_v12 = vpop.permute.xlu0 %1310 }
 0xa6f   :  { %5458 = vmatpush3.bf16.msra.mxu1 %v1244_v43 }
 0xa70   :  { %5459 = vmatprep.subr.bf16.mxu1 %v6244_v0 }
 0xa72   :  { %v1315_v18 = vpop.permute.xlu0 %1314 }
 0xa73   :  { %5460 = vmatpush3.bf16.msra.mxu1 %v1246_v44 }
 0xa74   :  { %5461 = vmatprep.subr.bf16.mxu1 %v6244_v0 }
 0xa76   :  { %v1319_v22 = vpop.permute.xlu0 %1318 }
 0xa77   :  { %5462 = vmatpush3.bf16.msra.mxu1 %v1248_v45 }
 0xa78   :  { %5463 = vmatprep.subr.bf16.mxu1 %v6244_v0 }
 0xa7b   :  { %5464 = vmatpush3.bf16.msra.mxu1 %v1250_v46 }
 0xa7c   :  { %5465 = vmatprep.subr.bf16.mxu1 %v6244_v0 }
 0xa7f   :  { %5466 = vmatpush3.bf16.msra.mxu1 %v1252_v47 }
 0xa80   :  { %5491 = vmatprep.subr.bf16.mxu1 %v6244_v0 }
 0xa82   :  { %5468 = vmatmul.mubr.bf16.vlgmr.msra.gmra.mrb[44].mxu1 %v6454_v23 }
 0xa83   :  { %5493 = vmatprep.mubr.msk.bf16.mxu1 %vm6245_vm0, %v6244_v0 }
 0xb2d   :  { %v1038_v1 = vpop.f32.mrb[36].mxu1 }
 0xb2e   :  { %v1048_v21 = vpack.c.bf16 %v1038_v1, %v6694_v38  ;;  %v5413_v24 = vpop.f32.mrb[37].mxu1 }
 0xb2f   :  { %v1041_v20 = vpop.f32.mrb[38].mxu1 }
 0xb30   :  { %v5414_v25 = vpop.f32.mrb[39].mxu1  ;;  %5420 = vmatmul.mubr.msk.bf16.vlgmr.msra.gmra.mrb[16].mxu0 %vm395_vm1, %v1048_v21 }
 0xb31   :  { %5432 = vmatpush3.bf16.msra.mxu0 %v1169_v41  ;;  %5447 = vmatprep.mubr.msk.bf16.mxu0 %vm6245_vm0, %v6244_v0  ;;  %v1321_v41 = vpop.permute.xlu1 %1320 }
 0xb32   :  { %5433 = vmatprep.subr.bf16.mxu0 %v6244_v0 }
 0xb35   :  { %5434 = vmatpush3.bf16.msra.mxu0 %v1171_v48  ;;  %v1154_v27 = vpop.f32.mrb[40].mxu1  ;;  %v4790_v48 = vld [vmem:[%s7964_s11 + $0xa] ss:$0 sm:$0xff] }
 0xb36   :  { %v5429_v28 = vpop.f32.mrb[41].mxu1  ;;  %5435 = vmatprep.subr.bf16.mxu0 %v6244_v0 }
 0xb37   :  { %v1157_v29 = vpop.f32.mrb[42].mxu1 }
 0xb38   :  { %v5430_v30 = vpop.f32.mrb[43].mxu1 }
 0xb39   :  { %5436 = vmatpush3.bf16.msra.mxu0 %v1173_v17 }
 0xb3a   :  { %5437 = vmatprep.subr.bf16.mxu0 %v6244_v0 }
 0xb3d   :  { %5438 = vmatpush3.bf16.msra.mxu0 %v1175_v26 }
 0xb3e   :  { %5439 = vmatprep.subr.bf16.mxu0 %v6244_v0 }
 0xb41   :  { %5440 = vmatpush3.bf16.msra.mxu0 %v1177_v31 }
 0xb42   :  { %5441 = vmatprep.subr.bf16.mxu0 %v6244_v0 }
 0xb45   :  { %5442 = vmatpush3.bf16.msra.mxu0 %v1179_v4 }
 0xb46   :  { %5443 = vmatprep.subr.bf16.mxu0 %v6244_v0 }
 0xb49   :  { %5444 = vmatpush3.bf16.msra.mxu0 %v1181_v6 }
 0xb4a   :  { %5445 = vmatprep.subr.bf16.mxu0 %v6244_v0 }
 0xb4d   :  { %5446 = vmatpush3.bf16.msra.mxu0 %v1183_v8 }
 0xb4e   :  { %5471 = vmatprep.subr.bf16.mxu0 %v6244_v0 }
 0xb50   :  { %5448 = vmatmul.mubr.bf16.vlgmr.msra.gmra.mrb[20].mxu0 %v6454_v23 }
 0xb51   :  { %5487 = vmatprep.mubr.msk.bf16.mxu0 %vm6245_vm0, %v6244_v0  ;;  %5472 = vmatpush3.bf16.msra.mxu0 %v1307_v10 }
 0xb52   :  { %5473 = vmatprep.subr.bf16.mxu0 %v6244_v0 }
 0xb55   :  { %v1295_v34 = vpop.f32.mrb[44].mxu1  ;;  %5474 = vmatpush3.bf16.msra.mxu0 %v1309_v11  ;;  %v6020_v11 = vld [vmem:[%s7959_s6 + $0x20] sm:$0xff]  }
 0xb56   :  { %v1296_v35 = vadd.f32 %v4789_v33, %v1295_v34  ;;  %v5469_v36 = vpop.f32.mrb[45].mxu1  ;;  %5475 = vmatprep.subr.bf16.mxu0 %v6244_v0 }
 0xb57   :  { %v1298_v37 = vpop.f32.mrb[46].mxu1 }
 0xb58   :  { %v1373_v38 = vpack.c.bf16 %v1296_v35, %v1296_v35  ;;  %v6840_v39 = vadd.f32 %v4789_v33, %v1298_v37  ;;  %v5470_v40 = vpop.f32.mrb[47].mxu1 }
 0xb59   :  { %5476 = vmatpush3.bf16.msra.mxu0 %v1311_v12  ;;  %v6021_v12 = vld [vmem:[%s7959_s6 + $0x28] sm:$0xff]  }
 0xb5a   :  { %v1378_v50 = vsel %vm395_vm1, %v1373_v38, 0  ;;  %5477 = vmatprep.subr.bf16.mxu0 %v6244_v0  ;;  %v1480_v33 = vpack.c.bf16 %v6840_v39, %v6840_v39 }
 0xb5b   :  { %5492 = vmatpush3.bf16.xpose.msra.mxu1 %v1378_v50 }
 0xb5c   :  { %5497 = vmatprep.subr.bf16.mxu1 %v6244_v0  ;;  %v1485_v36 = vsel %vm395_vm1, %v1480_v33, 0 }
 0xb5d   :  { %5478 = vmatpush3.bf16.msra.mxu0 %v1313_v13  ;;  %v6188_v13 = vld [vmem:[%s7957_s4 + $0xa8] ss:$12 sps:$4 sm:$0xff]  }
 0xb5e   :  { %5479 = vmatprep.subr.bf16.mxu0 %v6244_v0 }
 0xb61   :  { %5480 = vmatpush3.bf16.msra.mxu0 %v1315_v18  ;;  %v6189_v18 = vld [vmem:[%s7957_s4 + $0x38] ss:$12 sps:$4 sm:$0xff]  }
 0xb62   :  { %5481 = vmatprep.subr.bf16.mxu0 %v6244_v0 }
 0xb65   :  { %5482 = vmatpush3.bf16.msra.mxu0 %v1317_v19  ;;  %v6190_v19 = vld [vmem:[%s7957_s4 + $0x20] ss:$12 sps:$4 sm:$0xff]  }
 0xb66   :  { %5483 = vmatprep.subr.bf16.mxu0 %v6244_v0 }
 0xb69   :  { %5484 = vmatpush3.bf16.msra.mxu0 %v1319_v22  ;;  %v6191_v22 = vld [vmem:[%s7957_s4 + $0x68] ss:$12 sps:$4 sm:$0xff]  }
 0xb6a   :  { %5485 = vmatprep.subr.bf16.mxu0 %v6244_v0 }
 0xb6d   :  { %5486 = vmatpush3.bf16.msra.mxu0 %v1321_v41  ;;  %v6192_v41 = vld [vmem:[%s7957_s4 + $0x50] ss:$12 sps:$4 sm:$0xff]  }
 0xb6e   :  { %5515 = vmatprep.subr.bf16.mxu0 %v6244_v0 }
 0xb70   :  { %5488 = vmatmul.mubr.bf16.vlgmr.msra.gmra.mrb[24].mxu0 %v6538_v49 }
 0xb71   :  { %5519 = vmatprep.mubr.msk.bf16.mxu0 %vm6245_vm0, %v6244_v0  ;;  %5516 = vmatpush3.bf16.msra.mxu0 %v6020_v11 }
 0xb72   :  { %5517 = vmatprep.subr.bf16.mxu0 %v6244_v0 }
 0xb75   :  { %5518 = vmatpush3.bf16.msra.mxu0 %v6021_v12 }
 0xb76   :  { %5543 = vmatprep.subr.bf16.mxu0 %v6244_v0 }
 0xc03   :  { %v1098_v51 = vpop.f32.mrb[16].mxu0 }
 0xc04   :  { %v6844_v52 = vadd.f32 %v1154_v27, %v1098_v51  ;;  %v5421_v2 = vpop.f32.mrb[17].mxu0 }
 0xc05   :  { %v1101_v3 = vpop.f32.mrb[18].mxu0 }
 0xc06   :  { %v6846_v32 = vadd.f32 %v1157_v29, %v1101_v3  ;;  %v5422_v5 = vpop.f32.mrb[19].mxu0 }
 0xc23   :  { %v1226_v53 = vpop.f32.mrb[20].mxu0 }
 0xc24   :  { %v1227_v54 = vadd.f32 %v4788_v7, %v1226_v53  ;;  %v5449_v55 = vpop.f32.mrb[21].mxu0 }
 0xc25   :  { %v1229_v56 = vpop.f32.mrb[22].mxu0 }
 0xc26   :  { %v1372_v59 = vpack.c.bf16 %v1227_v54, %v1227_v54  ;;  %v6851_v62 = vadd.f32 %v4788_v7, %v1229_v56  ;;  %v5450_v9 = vpop.f32.mrb[23].mxu0 }
 0xc28   :  { %5494 = vmatmul.mubr.msk.bf16.vlgmr.msra.gmra.mrb[48].mxu1 %vm395_vm1, %v1372_v59  ;;  %v1479_v38 = vpack.c.bf16 %v6851_v62, %v6851_v62 }
 0xc29   :  { %5499 = vmatprep.mubr.msk.bf16.mxu1 %vm6245_vm0, %v6244_v0 }
 0xc43   :  { %v1364_v1 = vpop.f32.mrb[24].mxu0 }
 0xc44   :  { %v1365_v21 = vadd.f32 %v4790_v48, %v1364_v1  ;;  %v5489_v24 = vpop.f32.mrb[25].mxu0 }
 0xc45   :  { %v1367_v17 = vpop.f32.mrb[26].mxu0 }
 0xc46   :  { %v1368_v20 = vadd.f32 %v4790_v48, %v1367_v17  ;;  %v5490_v25 = vpop.f32.mrb[27].mxu0 }
 0xc48   :  { %v1371_v26 = vpack.c.bf16 %v1368_v20, %v1365_v21 }
 0xc4a   :  { %v1437_v4 = vsel %vm459_vm3, %v1371_v26, 0  ;;  %v1541_v37 = vrot.slane %v1371_v26, 4 }
 0xc4b   :  { %5498 = vmatpush3.bf16.msra.mxu1 %v1437_v4 }
 0xc4c   :  { %5503 = vmatprep.subr.bf16.mxu1 %v6244_v0  ;;  %v1546_v39 = vsel %vm459_vm3, %v1541_v37, 0 }
 0xcfb   :  { %v1414_v42 = vpop.f32.mrb[48].mxu1 }
 0xcfc   :  { %v1420_v43 = vmul.f32 0.17677669, %v1414_v42  ;;  %v5495_v44 = vpop.f32.mrb[49].mxu1  ;;  %v6193_v42 = vld [vmem:[%s7957_s4 + $0x98] ss:$12 sps:$4 sm:$0xff]  }
 0xcfd   :  { %v1417_v45 = vpop.f32.mrb[50].mxu1  ;;  %v6195_v44 = vld [vmem:[%s7957_s4 + $0xb0] ss:$12 sps:$4 sm:$0xff]  }
 0xcfe   :  { %v5496_v46 = vpop.f32.mrb[51].mxu1  ;;  %v1421_v47 = vsel %vm443_vm2, %v1420_v43, -inf }
 0xcff   :  { %1422 = vmax.xlane.f32.xlu0 %v1421_v47 }
 0xd8c   :  { %v1423_v27 = vpop.xlane.xlu0 %1422 }
 0xd8d   :  { %v1424_v28 = vsub.f32 %v1420_v43, %v1423_v27  ;;  %v6194_v43 = vld [vmem:[%s7957_s4 + $0x80] ss:$12 sps:$4 sm:$0xff]  }
 0xd8f   :  { %v1425_v29 = vmul.f32 1.442695, %v1424_v28 }
 0xd91   :  { %6112 = vpow2.f32 %v1425_v29 }
 0xd9b   :  { %v6113_v30 = vpop.eup %6112 }
 0xd9c   :  { %v1427_v31 = vsel %vm443_vm2, %v6113_v30, 0.0 }
 0xd9d   :  { %1428 = vadd.xlane.f32.xlu1 %v1427_v31 }
 0xdae   :  { %1729 = vrot.lane.b32.xlu1 %v6708_v58, %s6248_s29  ;;  %v6181_v58 = vld [vmem:[%s7957_s4 + $0x60] ss:$12 sps:$4 sm:$0xff]  }
 0xdb2   :  { %1658 = vrot.lane.b32.xlu1 %v6718_v60, %s6248_s29  ;;  %v6182_v60 = vld [vmem:[%s7957_s4 + $0x7c] ss:$12 sps:$4 sm:$0xff]  }
 0xdb6   :  { %1731 = vrot.lane.b32.xlu1 %v6736_v63, %s6248_s29  ;;  %v6184_v63 = vld [vmem:[%s7957_s4 + $0x94] ss:$12 sps:$4 sm:$0xff]  }
 0xdba   :  { %1733 = vrot.lane.b32.xlu1 %v6751_v15, %s6248_s29  ;;  %v6186_v15 = vld [vmem:[%s7957_s4 + $0xac] ss:$12 sps:$4 sm:$0xff]  }
 0xe2a   :  { %v1429_v6 = vpop.xlane.xlu1 %1428 }
 0xe2b   :  { %6114 = vrcp.f32 %v1429_v6 }
 0xe2e   :  { %v1730_v1 = vpop.permute.xlu1 %1729 }
 0xe32   :  { %v1659_v24 = vpop.permute.xlu1 %1658 }
 0xe35   :  { %v6115_v8 = vpop.eup %6114 }
 0xe36   :  { %v1431_v34 = vmul.f32 %v6115_v8, %v6113_v30  ;;  %v1732_v17 = vpop.permute.xlu1 %1731 }
 0xe38   :  { %v1432_v35 = vpack.c.bf16 %v1431_v34, %v1431_v34 }
 0xe3a   :  { %5500 = vmatmul.mubr.msk.bf16.vlgmr.msra.gmra.mrb[52].mxu1 %vm443_vm2, %v1432_v35  ;;  %v1734_v25 = vpop.permute.xlu1 %1733 }
 0xe3b   :  { %5504 = vmatpush3.bf16.xpose.msra.mxu1 %v1485_v36  ;;  %5505 = vmatprep.mubr.msk.bf16.mxu1 %vm6245_vm0, %v6244_v0 }
 0xe3c   :  { %5509 = vmatprep.subr.bf16.mxu1 %v6244_v0 }
 0xe42   :  { %5506 = vmatmul.mubr.msk.bf16.vlgmr.msra.gmra.mrb[56].mxu1 %vm395_vm1, %v1479_v38 }
 0xe43   :  { %5510 = vmatpush3.bf16.msra.mxu1 %v1546_v39  ;;  %5511 = vmatprep.mubr.msk.bf16.mxu1 %vm6245_vm0, %v6244_v0 }
 0xe44   :  { %5523 = vmatprep.subr.bf16.mxu1 %v6244_v0 }
 0xf0d   :  { %v6888_v40 = vpop.f32.mrb[52].mxu1 }
 0xf0e   :  { %v5501_v50 = vpop.f32.mrb[53].mxu1 }
 0xf0f   :  { %v1476_v51 = vpop.f32.mrb[54].mxu1  ;;  %v4798_v50 = vld [vmem:[%s7964_s11 + $0x3] ss:$0 sm:$0xff] }
 0xf10   :  { %v5502_v2 = vpop.f32.mrb[55].mxu1 }
 0xf15   :  { %v1521_v3 = vpop.f32.mrb[56].mxu1 }
 0xf16   :  { %v1527_v5 = vmul.f32 0.17677669, %v1521_v3  ;;  %v5507_v7 = vpop.f32.mrb[57].mxu1 }
 0xf17   :  { %v1524_v53 = vpop.f32.mrb[58].mxu1 }
 0xf18   :  { %v5508_v54 = vpop.f32.mrb[59].mxu1  ;;  %v1528_v55 = vsel %vm443_vm2, %v1527_v5, -inf }
 0xf19   :  { %1529 = vmax.xlane.f32.xlu0 %v1528_v55 }
 0xfa6   :  { %v1530_v56 = vpop.xlane.xlu0 %1529 }
 0xfa7   :  { %v1531_v59 = vsub.f32 %v1527_v5, %v1530_v56  ;;  %v4799_v56 = vld [vmem:[%s7964_s11 + $0x7] ss:$0 sm:$0xff] }
 0xfa9   :  { %v1532_v62 = vmul.f32 1.442695, %v1531_v59 }
 0xfab   :  { %6116 = vpow2.f32 %v1532_v62 }
 0xfb5   :  { %v6117_v9 = vpop.eup %6116 }
 0xfb6   :  { %v1534_v10 = vsel %vm443_vm2, %v6117_v9, 0.0 }
 0xfb7   :  { %1535 = vadd.xlane.f32.xlu0 %v1534_v10 }
 0xfcd   :  { %1727 = vrot.lane.b32.xlu0 %v6701_v57, %s6248_s29  ;;  %v6180_v57 = vld [vmem:[%s7957_s4 + $0x64] ss:$12 sps:$4 sm:$0xff]  }
 0xfce   :  { %1735 = vrot.lane.b32.xlu1 %v6180_v57, %s6248_s29 }
 0xfd1   :  { %1660 = vrot.lane.b32.xlu0 %v6725_v61, %s6248_s29  ;;  %v6183_v61 = vld [vmem:[%s7957_s4 + $0x78] ss:$12 sps:$4 sm:$0xff]  }
 0xfd2   :  { %1737 = vrot.lane.b32.xlu1 %v6182_v60, %s6248_s29 }
 0xfd5   :  { %1662 = vrot.lane.b32.xlu0 %v6743_v14, %s6248_s29  ;;  %v6185_v14 = vld [vmem:[%s7957_s4 + $0x90] ss:$12 sps:$4 sm:$0xff]  }
 0xfd6   :  { %1739 = vrot.lane.b32.xlu1 %v6184_v63, %s6248_s29 }
 0xfd9   :  { %1664 = vrot.lane.b32.xlu0 %v6758_v16, %s6248_s29  ;;  %v6187_v16 = vld [vmem:[%s7957_s4 + $0x8] ss:$12 sps:$4 sm:$0xff]  }
 0xfda   :  { %1741 = vrot.lane.b32.xlu1 %v6186_v15, %s6248_s29 }
 0xfdd   :  { %1666 = vrot.lane.b32.xlu0 %v6181_v58, %s6248_s29 }
 0xfde   :  { %1672 = vrot.lane.b32.xlu1 %v6188_v13, %s6248_s29 }
 0xfe1   :  { %1668 = vrot.lane.b32.xlu0 %v6183_v61, %s6248_s29 }
 0xfe2   :  { %1798 = vrot.lane.b32.xlu1 %v6190_v19, %s6248_s29 }
 0xfe5   :  { %1670 = vrot.lane.b32.xlu0 %v6185_v14, %s6248_s29 }
 0xfe6   :  { %1802 = vrot.lane.b32.xlu1 %v6192_v41, %s6248_s29 }
 0xfe9   :  { %1796 = vrot.lane.b32.xlu0 %v6187_v16, %s6248_s29 }
 0xfea   :  { %1806 = vrot.lane.b32.xlu1 %v6194_v43, %s6248_s29 }
 0xfed   :  { %1800 = vrot.lane.b32.xlu0 %v6189_v18, %s6248_s29 }
 0xfee   :  { %1810 = vrot.lane.b32.xlu1 %v6195_v44, %s6248_s29 }
 0xff1   :  { %1804 = vrot.lane.b32.xlu0 %v6191_v22, %s6248_s29 }
 0xff5   :  { %1808 = vrot.lane.b32.xlu0 %v6193_v42, %s6248_s29 }
0x1040   :  { %v1736_v27 = vpop.permute.xlu1 %1735 }
0x1044   :  { %v1536_v45 = vpop.xlane.xlu0 %1535  ;;  %v1738_v29 = vpop.permute.xlu1 %1737 }
0x1045   :  { %6118 = vrcp.f32 %v1536_v45  ;;  %v4800_v45 = vld [vmem:[%s7964_s11 + $0xb] ss:$0 sm:$0xff] }
0x1048   :  { %v1728_v21 = vpop.permute.xlu0 %1727  ;;  %v1740_v31 = vpop.permute.xlu1 %1739 }
0x104c   :  { %v1661_v20 = vpop.permute.xlu0 %1660  ;;  %v1742_v6 = vpop.permute.xlu1 %1741 }
0x104f   :  { %v6119_v46 = vpop.eup %6118 }
0x1050   :  { %v1538_v47 = vmul.f32 %v6119_v46, %v6117_v9  ;;  %v1663_v26 = vpop.permute.xlu0 %1662  ;;  %v1673_v33 = vpop.permute.xlu1 %1672 }
0x1052   :  { %v1539_v48 = vpack.c.bf16 %v1538_v47, %v1538_v47 }
0x1054   :  { %5512 = vmatmul.mubr.msk.bf16.vlgmr.msra.gmra.mrb[60].mxu1 %vm443_vm2, %v1539_v48  ;;  %v1665_v28 = vpop.permute.xlu0 %1664  ;;  %v1799_v61 = vpop.permute.xlu1 %1798 }
0x1055   :  { %5539 = vmatprep.mubr.msk.bf16.mxu1 %vm6245_vm0, %v6244_v0  ;;  %5524 = vmatpush3.bf16.msra.mxu1 %v1659_v24 }
0x1056   :  { %5525 = vmatprep.subr.bf16.mxu1 %v6244_v0 }
0x1058   :  { %v1667_v30 = vpop.permute.xlu0 %1666  ;;  %v1803_v14 = vpop.permute.xlu1 %1802 }
0x1059   :  { %5526 = vmatpush3.bf16.msra.mxu1 %v1661_v20 }
0x105a   :  { %5527 = vmatprep.subr.bf16.mxu1 %v6244_v0 }
0x105c   :  { %v1669_v4 = vpop.permute.xlu0 %1668  ;;  %v1807_v16 = vpop.permute.xlu1 %1806 }
0x105d   :  { %5528 = vmatpush3.bf16.msra.mxu1 %v1663_v26 }
0x105e   :  { %5529 = vmatprep.subr.bf16.mxu1 %v6244_v0 }
0x1060   :  { %v1671_v8 = vpop.permute.xlu0 %1670  ;;  %v1811_v18 = vpop.permute.xlu1 %1810 }
0x1061   :  { %5530 = vmatpush3.bf16.msra.mxu1 %v1665_v28 }
0x1062   :  { %5531 = vmatprep.subr.bf16.mxu1 %v6244_v0 }
0x1064   :  { %v1797_v60 = vpop.permute.xlu0 %1796 }
0x1065   :  { %5532 = vmatpush3.bf16.msra.mxu1 %v1667_v30 }
0x1066   :  { %5533 = vmatprep.subr.bf16.mxu1 %v6244_v0 }
0x1068   :  { %v1801_v63 = vpop.permute.xlu0 %1800 }
0x1069   :  { %5534 = vmatpush3.bf16.msra.mxu1 %v1669_v4 }
0x106a   :  { %5535 = vmatprep.subr.bf16.mxu1 %v6244_v0 }
0x106c   :  { %v1805_v15 = vpop.permute.xlu0 %1804 }
0x106d   :  { %5536 = vmatpush3.bf16.msra.mxu1 %v1671_v8 }
0x106e   :  { %5537 = vmatprep.subr.bf16.mxu1 %v6244_v0 }
0x1070   :  { %v1809_v13 = vpop.permute.xlu0 %1808 }
0x1071   :  { %5538 = vmatpush3.bf16.msra.mxu1 %v1673_v33 }
0x1072   :  { %5563 = vmatprep.subr.bf16.mxu1 %v6244_v0 }
0x1074   :  { %5540 = vmatmul.mubr.bf16.vlgmr.msra.gmra.mrb[64].mxu1 %v6454_v23 }
0x1075   :  { %5579 = vmatprep.mubr.msk.bf16.mxu1 %vm6245_vm0, %v6244_v0  ;;  %5564 = vmatpush3.bf16.msra.mxu1 %v1797_v60 }
0x1076   :  { %5565 = vmatprep.subr.bf16.mxu1 %v6244_v0 }
0x1079   :  { %5566 = vmatpush3.bf16.msra.mxu1 %v1799_v61 }
0x107a   :  { %5567 = vmatprep.subr.bf16.mxu1 %v6244_v0 }
0x107d   :  { %5568 = vmatpush3.bf16.msra.mxu1 %v1801_v63 }
0x107e   :  { %5569 = vmatprep.subr.bf16.mxu1 %v6244_v0 }
0x1081   :  { %5570 = vmatpush3.bf16.msra.mxu1 %v1803_v14  ;;  %v4808_v14 = vld [vmem:[%s7965_s12] ss:$0 sm:$0xff] }
0x1082   :  { %5571 = vmatprep.subr.bf16.mxu1 %v6244_v0 }
0x1085   :  { %5572 = vmatpush3.bf16.msra.mxu1 %v1805_v15 }
0x1086   :  { %5573 = vmatprep.subr.bf16.mxu1 %v6244_v0 }
0x1089   :  { %5574 = vmatpush3.bf16.msra.mxu1 %v1807_v16 }
0x108a   :  { %5575 = vmatprep.subr.bf16.mxu1 %v6244_v0 }
0x108d   :  { %5576 = vmatpush3.bf16.msra.mxu1 %v1809_v13 }
0x108e   :  { %5577 = vmatprep.subr.bf16.mxu1 %v6244_v0 }
0x1091   :  { %5578 = vmatpush3.bf16.msra.mxu1 %v1811_v18 }
0x1092   :  { %5607 = vmatprep.subr.bf16.mxu1 %v6244_v0 }
0x1094   :  { %5580 = vmatmul.mubr.bf16.vlgmr.msra.gmra.mrb[68].mxu1 %v6538_v49 }
0x1095   :  { %5611 = vmatprep.mubr.msk.bf16.mxu1 %vm6245_vm0, %v6244_v0 }
0x1127   :  { %v1582_v34 = vpop.f32.mrb[60].mxu1 }
0x1128   :  { %v1592_v35 = vpack.c.bf16 %v1582_v34, %v6888_v40  ;;  %v5513_v36 = vpop.f32.mrb[61].mxu1 }
0x1129   :  { %v1585_v37 = vpop.f32.mrb[62].mxu1 }
0x112a   :  { %v5514_v38 = vpop.f32.mrb[63].mxu1  ;;  %5520 = vmatmul.mubr.msk.bf16.vlgmr.msra.gmra.mrb[28].mxu0 %vm395_vm1, %v1592_v35 }
0x112b   :  { %5544 = vmatpush3.bf16.msra.mxu0 %v1728_v21  ;;  %5559 = vmatprep.mubr.msk.bf16.mxu0 %vm6245_vm0, %v6244_v0 }
0x112c   :  { %5545 = vmatprep.subr.bf16.mxu0 %v6244_v0 }
0x112f   :  { %5546 = vmatpush3.bf16.msra.mxu0 %v1730_v1 }
0x1130   :  { %5547 = vmatprep.subr.bf16.mxu0 %v6244_v0 }
0x1133   :  { %5548 = vmatpush3.bf16.msra.mxu0 %v1732_v17 }
0x1134   :  { %5549 = vmatprep.subr.bf16.mxu0 %v6244_v0 }
0x1137   :  { %5550 = vmatpush3.bf16.msra.mxu0 %v1734_v25 }
0x1138   :  { %5551 = vmatprep.subr.bf16.mxu0 %v6244_v0 }
0x113b   :  { %5552 = vmatpush3.bf16.msra.mxu0 %v1736_v27 }
0x113c   :  { %5553 = vmatprep.subr.bf16.mxu0 %v6244_v0 }
0x113f   :  { %5554 = vmatpush3.bf16.msra.mxu0 %v1738_v29 }
0x1140   :  { %5555 = vmatprep.subr.bf16.mxu0 %v6244_v0 }
0x1143   :  { %5556 = vmatpush3.bf16.msra.mxu0 %v1740_v31 }
0x1144   :  { %5557 = vmatprep.subr.bf16.mxu0 %v6244_v0 }
0x1147   :  { %5558 = vmatpush3.bf16.msra.mxu0 %v1742_v6  ;;  %v1716_v39 = vpop.f32.mrb[64].mxu1 }
0x1148   :  { %5583 = vmatprep.subr.bf16.mxu0 %v6244_v0  ;;  %v5541_v40 = vpop.f32.mrb[65].mxu1  ;;  %v1717_v58 = vadd.f32 %v4798_v50, %v1716_v39 }
0x1149   :  { %v1719_v51 = vpop.f32.mrb[66].mxu1 }
0x114a   :  { %5560 = vmatmul.mubr.bf16.vlgmr.msra.gmra.mrb[32].mxu0 %v6454_v23  ;;  %v7012_v2 = vadd.f32 %v4798_v50, %v1719_v51  ;;  %v5542_v3 = vpop.f32.mrb[67].mxu1 }
0x114b   :  { %5585 = vmatprep.mubr.msk.bf16.mxu0 %vm6245_vm0, %v6244_v0 }
0x114c   :  { %v1969_v34 = vpack.c.bf16 %v7012_v2, %v7012_v2 }
0x1167   :  { %v1854_v46 = vpop.f32.mrb[68].mxu1 }
0x1168   :  { %v1855_v47 = vadd.f32 %v4800_v45, %v1854_v46  ;;  %v5581_v48 = vpop.f32.mrb[69].mxu1  ;;  %v7099_v46 = vld [vmem:[%s7958_s5] ss:$12 sps:$4 sm:$0xff]  }
0x1169   :  { %v1857_v1 = vpop.f32.mrb[70].mxu1  ;;  %v7116_v48 = vld [vmem:[%s7958_s5 + $0x4c] ss:$12 sps:$4 sm:$0xff]  }
0x116a   :  { %v1858_v49 = vadd.f32 %v4800_v45, %v1857_v1  ;;  %v5582_v21 = vpop.f32.mrb[71].mxu1  ;;  %v7123_v1 = vld [vmem:[%s7958_s5 + $0x64] ss:$12 sps:$4 sm:$0xff]  }
0x116c   :  { %v1861_v24 = vpack.c.bf16 %v1858_v49, %v1855_v47  ;;  %v7108_v47 = vld [vmem:[%s7958_s5 + $0x34] ss:$12 sps:$4 sm:$0xff]  }
0x116e   :  { %v1927_v28 = vsel %vm459_vm3, %v1861_v24, 0  ;;  %v2031_v33 = vrot.slane %v1861_v24, 4 }
0x1170   :  { %v2036_v35 = vsel %vm459_vm3, %v2031_v33, 0  ;;  %v7182_v33 = vld [vmem:[%s7954_s1 + $0x8] sm:$0xff] }
0x11fd   :  { %v1642_v5 = vpop.f32.mrb[28].mxu0 }
0x11fe   :  { %v7015_v7 = vadd.f32 %v1642_v5, %v6844_v52  ;;  %v5521_v53 = vpop.f32.mrb[29].mxu0 }
0x11ff   :  { %v1645_v54 = vpop.f32.mrb[30].mxu0 }
0x1200   :  { %v7018_v23 = vadd.f32 %v1645_v54, %v6846_v32  ;;  %v5522_v55 = vpop.f32.mrb[31].mxu0  ;;  %v1862_v32 = vpack.c.bf16 %v1717_v58, %v1717_v58 }
0x121d   :  { %v1785_v59 = vpop.f32.mrb[32].mxu0 }
0x121e   :  { %v1786_v62 = vadd.f32 %v4799_v56, %v1785_v59  ;;  %v5561_v9 = vpop.f32.mrb[33].mxu0 }
0x121f   :  { %v1788_v10 = vpop.f32.mrb[34].mxu0 }
0x1220   :  { %v1863_v11 = vpack.c.bf16 %v1786_v62, %v1786_v62  ;;  %v7023_v12 = vadd.f32 %v4799_v56, %v1788_v10  ;;  %v5562_v57 = vpop.f32.mrb[35].mxu0  ;;  %v6022_v62 = vld [vmem:[%s7959_s6 + $0x30] sm:$0xff]  }
0x1221   :  { %5608 = vmatpush3.bf16.msra.mxu1 %v6022_v62  ;;  %v6023_v57 = vld [vmem:[%s7959_s6 + $0x38] sm:$0xff]  }
0x1222   :  { %v1868_v52 = vsel %vm395_vm1, %v1863_v11, 0  ;;  %v1970_v31 = vpack.c.bf16 %v7023_v12, %v7023_v12  ;;  %5609 = vmatprep.subr.bf16.mxu1 %v6244_v0 }
0x1223   :  { %5584 = vmatpush3.bf16.xpose.msra.mxu0 %v1868_v52 }
0x1224   :  { %5589 = vmatprep.subr.bf16.mxu0 %v6244_v0  ;;  %v1975_v8 = vsel %vm395_vm1, %v1970_v31, 0  ;;  %v7158_v31 = vld [vmem:[%s7958_s5 + $0x94] ss:$12 sps:$4 sm:$0xff]  }
0x1225   :  { %5610 = vmatpush3.bf16.msra.mxu1 %v6023_v57 }
0x122a   :  { %5586 = vmatmul.mubr.msk.bf16.vlgmr.msra.gmra.mrb[36].mxu0 %vm395_vm1, %v1862_v32 }
0x122b   :  { %5591 = vmatprep.mubr.msk.bf16.mxu0 %vm6245_vm0, %v6244_v0  ;;  %5590 = vmatpush3.bf16.msra.mxu0 %v1927_v28  ;;  %v7139_v28 = vld [vmem:[%s7958_s5 + $0x18] ss:$12 sps:$4 sm:$0xff]  }
0x122c   :  { %5595 = vmatprep.subr.bf16.mxu0 %v6244_v0 }
0x12fd   :  { %v1904_v19 = vpop.f32.mrb[36].mxu0 }
0x12fe   :  { %v1910_v22 = vmul.f32 0.17677669, %v1904_v19  ;;  %v5587_v41 = vpop.f32.mrb[37].mxu0 }
0x12ff   :  { %v1907_v42 = vpop.f32.mrb[38].mxu0 }
0x1300   :  { %v5588_v43 = vpop.f32.mrb[39].mxu0  ;;  %v1911_v44 = vsel %vm443_vm2, %v1910_v22, -inf  ;;  %v6196_v42 = vld [vmem:[%s7953_s0] sm:$0xff] }
0x1301   :  { %1912 = vmax.xlane.f32.xlu0 %v1911_v44  ;;  %v6197_v44 = vld [vmem:[%s7953_s0 + $0x8] sm:$0xff] }
0x138e   :  { %v1913_v17 = vpop.xlane.xlu0 %1912 }
0x138f   :  { %v1914_v20 = vsub.f32 %v1910_v22, %v1913_v17 }
0x1391   :  { %v1915_v25 = vmul.f32 1.442695, %v1914_v20 }
0x1393   :  { %6120 = vpow2.f32 %v1915_v25 }
0x139d   :  { %v6121_v26 = vpop.eup %6120 }
0x139e   :  { %v1917_v27 = vsel %vm443_vm2, %v6121_v26, 0.0 }
0x139f   :  { %1918 = vadd.xlane.f32.xlu1 %v1917_v27 }
0x142c   :  { %v1919_v29 = vpop.xlane.xlu1 %1918 }
0x142d   :  { %6122 = vrcp.f32 %v1919_v29  ;;  %v7144_v29 = vld [vmem:[%s7958_s5 + $0x7c] ss:$12 sps:$4 sm:$0xff]  }
0x1437   :  { %v6123_v30 = vpop.eup %6122 }
0x1438   :  { %v1921_v4 = vmul.f32 %v6123_v30, %v6121_v26  ;;  %v7153_v30 = vld [vmem:[%s7958_s5 + $0x30] ss:$12 sps:$4 sm:$0xff]  }
0x143a   :  { %v1922_v6 = vpack.c.bf16 %v1921_v4, %v1921_v4  ;;  %v7167_v4 = vld [vmem:[%s7958_s5 + $0x48] ss:$12 sps:$4 sm:$0xff]  }
0x143c   :  { %5592 = vmatmul.mubr.msk.bf16.vlgmr.msra.gmra.mrb[40].mxu0 %vm443_vm2, %v1922_v6  ;;  %v7172_v6 = vld [vmem:[%s7958_s5 + $0xac] ss:$12 sps:$4 sm:$0xff]  }
0x143d   :  { %5596 = vmatpush3.bf16.xpose.msra.mxu0 %v1975_v8  ;;  %5597 = vmatprep.mubr.msk.bf16.mxu0 %vm6245_vm0, %v6244_v0  ;;  %v7177_v8 = vld [vmem:[%s7954_s1] sm:$0xff] }
0x143e   :  { %5601 = vmatprep.subr.bf16.mxu0 %v6244_v0 }
0x1444   :  { %5598 = vmatmul.mubr.msk.bf16.vlgmr.msra.gmra.mrb[44].mxu0 %vm395_vm1, %v1969_v34  ;;  %v52_v34 = vld [vmem:[%s7955_s2] sm:$0xff] }
0x1445   :  { %5602 = vmatpush3.bf16.msra.mxu0 %v2036_v35  ;;  %5603 = vmatprep.mubr.msk.bf16.mxu0 %vm6245_vm0, %v6244_v0  ;;  %v53_v35 = vld [vmem:[%s7955_s2 + $0x8] sm:$0xff] }
0x1446   :  { %5615 = vmatprep.subr.bf16.mxu0 %v6244_v0 }
0x150f   :  { %v1963_v36 = vpop.f32.mrb[40].mxu0 }
0x1510   :  { %v5593_v37 = vpop.f32.mrb[41].mxu0 }
0x1511   :  { %v1966_v38 = vpop.f32.mrb[42].mxu0  ;;  %v2189_v37 = vadd.f32 %v52_v34, %v7177_v8  ;;  %v4811_v34 = vld [vmem:[%s7964_s11 + $0xc] ss:$0 sm:$0xff] }
0x1512   :  { %v5594_v39 = vpop.f32.mrb[43].mxu0  ;;  %v2190_v38 = vadd.f32 %v53_v35, %v7182_v33 }
0x1513   :  { %v7203_v39 = vld [vmem:[%s7954_s1 + $0x18] sm:$0xff] }
0x1517   :  { %v2011_v40 = vpop.f32.mrb[44].mxu0 }
0x1518   :  { %v2017_v50 = vmul.f32 0.17677669, %v2011_v40  ;;  %v5599_v51 = vpop.f32.mrb[45].mxu0  ;;  %v54_v40 = vld [vmem:[%s7955_s2 + $0x10] sm:$0xff] }
0x1519   :  { %v2014_v3 = vpop.f32.mrb[46].mxu0  ;;  %v7215_v51 = vld [vmem:[%s7958_s5 + $0x60] ss:$12 sps:$4 sm:$0xff]  }
0x151a   :  { %v5600_v5 = vpop.f32.mrb[47].mxu0  ;;  %v2018_v2 = vsel %vm443_vm2, %v2017_v50, -inf }
0x151b   :  { %2019 = vmax.xlane.f32.xlu0 %v2018_v2  ;;  %v7219_v2 = vpack.c.bf16 %v2190_v38, %v2189_v37 }
0x15a8   :  { %v2020_v53 = vpop.xlane.xlu0 %2019 }
0x15a9   :  { %v2021_v54 = vsub.f32 %v2017_v50, %v2020_v53  ;;  %v55_v50 = vld [vmem:[%s7955_s2 + $0x18] sm:$0xff] }
0x15aa   :  { %v2192_v5 = vadd.f32 %v55_v50, %v7203_v39 }
0x15ab   :  { %v2022_v55 = vmul.f32 1.442695, %v2021_v54  ;;  %v7231_v54 = vld [vmem:[%s7958_s5 + $0x78] ss:$12 sps:$4 sm:$0xff]  }
0x15ad   :  { %6124 = vpow2.f32 %v2022_v55  ;;  %v7239_v55 = vld [vmem:[%s7958_s5 + $0x90] ss:$12 sps:$4 sm:$0xff]  }
0x15b7   :  { %v6125_v56 = vpop.eup %6124 }
0x15b8   :  { %v2024_v59 = vsel %vm443_vm2, %v6125_v56, 0.0 }
0x15b9   :  { %2025 = vadd.xlane.f32.xlu0 %v2024_v59 }
0x1646   :  { %v2026_v9 = vpop.xlane.xlu0 %2025 }
0x1647   :  { %6126 = vrcp.f32 %v2026_v9 }
0x1651   :  { %v6127_v10 = vpop.eup %6126 }
0x1652   :  { %v2028_v11 = vmul.f32 %v6127_v10, %v6125_v56  ;;  %v7246_v56 = vld [vmem:[%s7958_s5 + $0xa8] ss:$12 sps:$4 sm:$0xff]  }
0x1654   :  { %v2029_v12 = vpack.c.bf16 %v2028_v11, %v2028_v11 }
0x1656   :  { %5604 = vmatmul.mubr.msk.bf16.vlgmr.msra.gmra.mrb[48].mxu0 %vm443_vm2, %v2029_v12 }
0x1657   :  { %5631 = vmatprep.mubr.msk.bf16.mxu0 %vm6245_vm0, %v6244_v0  ;;  %5616 = vmatpush3.bf16.msra.mxu0 %v7099_v46 }
0x1658   :  { %5617 = vmatprep.subr.bf16.mxu0 %v6244_v0 }
0x165b   :  { %5618 = vmatpush3.bf16.msra.mxu0 %v7139_v28 }
0x165c   :  { %5619 = vmatprep.subr.bf16.mxu0 %v6244_v0 }
0x165f   :  { %5620 = vmatpush3.bf16.msra.mxu0 %v7153_v30 }
0x1660   :  { %5621 = vmatprep.subr.bf16.mxu0 %v6244_v0 }
0x1663   :  { %5622 = vmatpush3.bf16.msra.mxu0 %v7167_v4 }
0x1664   :  { %5623 = vmatprep.subr.bf16.mxu0 %v6244_v0 }
0x1667   :  { %5624 = vmatpush3.bf16.msra.mxu0 %v7215_v51 }
0x1668   :  { %5625 = vmatprep.subr.bf16.mxu0 %v6244_v0 }
0x166b   :  { %5626 = vmatpush3.bf16.msra.mxu0 %v7231_v54 }
0x166c   :  { %5627 = vmatprep.subr.bf16.mxu0 %v6244_v0 }
0x166f   :  { %5628 = vmatpush3.bf16.msra.mxu0 %v7239_v55 }
0x1670   :  { %5629 = vmatprep.subr.bf16.mxu0 %v6244_v0 }
0x1673   :  { %5630 = vmatpush3.bf16.msra.mxu0 %v7246_v56 }
0x1729   :  { %v2072_v52 = vpop.f32.mrb[48].mxu0 }
0x172a   :  { %v2082_v58 = vpack.c.bf16 %v2072_v52, %v1963_v36  ;;  %v5605_v32 = vpop.f32.mrb[49].mxu0  ;;  %v7194_v36 = vld [vmem:[%s7954_s1 + $0x10] sm:$0xff]  ;;  %v4809_v52 = vld [vmem:[%s7965_s12 + $0x3] ss:$0 sm:$0xff] }
0x172b   :  { %v2075_v60 = vpop.f32.mrb[50].mxu0  ;;  %v2191_v3 = vadd.f32 %v54_v40, %v7194_v36 }
0x172c   :  { %v5606_v61 = vpop.f32.mrb[51].mxu0  ;;  %5612 = vmatmul.mubr.msk.bf16.vlgmr.msra.gmra.mrb[72].mxu1 %vm395_vm1, %v2082_v58  ;;  %v4810_v60 = vld [vmem:[%s7965_s12 + $0x4] ss:$0 sm:$0xff] }
0x172d   :  { %v7223_v53 = vpack.c.bf16 %v2192_v5, %v2191_v3  ;;  %5651 = vmatprep.mubr.bf16.mxu1 %v7219_v2 }
0x17ff   :  { %v2132_v63 = vpop.f32.mrb[72].mxu1 }
0x1800   :  { %v2139_v15 = vadd.f32 %v2132_v63, %v7015_v7  ;;  %v5613_v16 = vpop.f32.mrb[73].mxu1  ;;  %v7089_v7 = vld [vmem:[%s7958_s5 + $0x4] ss:$12 sps:$4 sm:$0xff]  }
0x1801   :  { %v2135_v13 = vpop.f32.mrb[74].mxu1  ;;  %5635 = vmatprep.subr.bf16.mxu1 %v7089_v7 }
0x1802   :  { %v2146_v18 = vadd.f32 %v4808_v14, %v2139_v15  ;;  %v2140_v19 = vadd.f32 %v2135_v13, %v7018_v23  ;;  %v5614_v22 = vpop.f32.mrb[75].mxu1  ;;  %v7094_v23 = vld [vmem:[%s7958_s5 + $0x1c] ss:$12 sps:$4 sm:$0xff]   ;;  %5636 = vmatpush3.bf16.msra.mxu1 %v7089_v7  ;;  %v6198_v13 = vld [vmem:[%s7956_s3] sm:$0xff] }
0x1803   :  { %5637 = vmatprep.subr.bf16.mxu1 %v7094_v23 }
0x1804   :  { %v2147_v41 = vadd.f32 %v4808_v14, %v2140_v19  ;;  %v2148_v43 = vadd.f32 %v6196_v42, %v2146_v18  ;;  %v6199_v19 = vld [vmem:[%s7956_s3 + $0x8] sm:$0xff]  ;;  %v4820_v42 = vld [vmem:[%s7964_s11 + $0x10] ss:$0 sm:$0xff] }
0x1806   :  { %2150 = vadd.xlane.f32.xlu0 %v2148_v43  ;;  %v2149_v45 = vadd.f32 %v6197_v44, %v2147_v41  ;;  %5638 = vmatpush3.bf16.msra.mxu1 %v7094_v23 }
0x1807   :  { %5639 = vmatprep.subr.bf16.mxu1 %v7108_v47 }
0x1808   :  { %2152 = vadd.xlane.f32.xlu1 %v2149_v45 }
0x180a   :  { %5640 = vmatpush3.bf16.msra.mxu1 %v7108_v47 }
0x180b   :  { %5641 = vmatprep.subr.bf16.mxu1 %v7116_v48 }
0x180e   :  { %5642 = vmatpush3.bf16.msra.mxu1 %v7116_v48 }
0x180f   :  { %5643 = vmatprep.subr.bf16.mxu1 %v7123_v1 }
0x1812   :  { %5644 = vmatpush3.bf16.msra.mxu1 %v7123_v1 }
0x1813   :  { %5645 = vmatprep.subr.bf16.mxu1 %v7144_v29 }
0x1816   :  { %5646 = vmatpush3.bf16.msra.mxu1 %v7144_v29 }
0x1817   :  { %5647 = vmatprep.subr.bf16.mxu1 %v7158_v31 }
0x181a   :  { %5648 = vmatpush3.bf16.msra.mxu1 %v7158_v31 }
0x181b   :  { %5649 = vmatprep.subr.bf16.mxu1 %v7172_v6 }
0x181e   :  { %5650 = vmatpush3.bf16.msra.mxu1 %v7172_v6 }
0x181f   :  { %5675 = vmatprep.subr.bf16.mxu1 %v6244_v0 }
0x1821   :  { %5652 = vmatmul.mubr.bf16.vlgmr.msra.gmra.mrb[76].mxu1 %v7223_v53 }
0x1822   :  { %5677 = vmatprep.mubr.msk.bf16.mxu1 %vm6245_vm0, %v6244_v0 }
0x1893   :  { %v2151_v49 = vpop.xlane.xlu0 %2150 }
0x1894   :  { %v2155_v21 = vmul.f32 0.0078125, %v2151_v49 }
0x1895   :  { %v2153_v24 = vpop.xlane.xlu1 %2152 }
0x1896   :  { %v2156_v17 = vmul.f32 0.0078125, %v2153_v24  ;;  %v7128_v20 = vsub.f32 %v2148_v43, %v2155_v21 }
0x1898   :  { %v2159_v25 = vmul.f32 %v7128_v20, %v7128_v20  ;;  %v7132_v26 = vsub.f32 %v2149_v45, %v2156_v17 }
0x189a   :  { %2161 = vadd.xlane.f32.xlu0 %v2159_v25  ;;  %v2160_v27 = vmul.f32 %v7132_v26, %v7132_v26 }
0x189c   :  { %2163 = vadd.xlane.f32.xlu1 %v2160_v27 }
0x18f4   :  { %v5653_v43 = vpop.f32.mrb[76].mxu1 }
0x18f5   :  { %v7276_v44 = vadd.f32 %v5653_v43, %v4820_v42  ;;  %v2428_v45 = vpop.f32.mrb[77].mxu1 }
0x18f6   :  { %v2429_v49 = vadd.f32 %v4820_v42, %v2428_v45  ;;  %v5654_v21 = vpop.f32.mrb[78].mxu1 }
0x18f7   :  { %v7278_v24 = vadd.f32 %v5654_v21, %v4820_v42  ;;  %v2431_v17 = vpop.f32.mrb[79].mxu1 }
0x18f9   :  { %v2652_v25 = vpack.c.bf16 %v7278_v24, %v7276_v44 }
0x1927   :  { %v2162_v59 = vpop.xlane.xlu0 %2161 }
0x1928   :  { %v2165_v62 = vmul.f32 0.0078125, %v2162_v59  ;;  %v7295_v59 = vld [vmem:[%s7958_s5 + $0x8] ss:$12 sps:$4 sm:$0xff]  }
0x1929   :  { %v2164_v9 = vpop.xlane.xlu1 %2163  ;;  %5655 = vmatprep.subr.bf16.mxu0 %v7295_v59 }
0x192a   :  { %v2167_v10 = vadd.f32 1e-05, %v2165_v62  ;;  %v2166_v11 = vmul.f32 0.0078125, %v2164_v9  ;;  %v7300_v62 = vld [vmem:[%s7958_s5 + $0x20] ss:$12 sps:$4 sm:$0xff]   ;;  %v7304_v9 = vpack.c.bf16 %v7182_v33, %v7177_v8 }
0x192b   :  { %v7320_v8 = vld [vmem:[%s7958_s5 + $0x50] ss:$12 sps:$4 sm:$0xff]   ;;  %v7327_v33 = vld [vmem:[%s7958_s5 + $0x68] ss:$12 sps:$4 sm:$0xff]  }
0x192c   :  { %6128 = vrsqrt.f32 %v2167_v10  ;;  %v2168_v12 = vadd.f32 1e-05, %v2166_v11  ;;  %v7313_v10 = vld [vmem:[%s7958_s5 + $0x38] ss:$12 sps:$4 sm:$0xff]   ;;  %v7334_v11 = vld [vmem:[%s7958_s5 + $0x80] ss:$12 sps:$4 sm:$0xff]  }
0x192e   :  { %6130 = vrsqrt.f32 %v2168_v12  ;;  %v7341_v12 = vld [vmem:[%s7958_s5 + $0x98] ss:$12 sps:$4 sm:$0xff]  }
0x1936   :  { %v6129_v57 = vpop.eup %6128 }
0x1937   :  { %v2171_v58 = vmul.f32 %v6129_v57, %v7128_v20  ;;  %v2432_v20 = vadd.f32 %v4820_v42, %v2431_v17  ;;  %v7348_v57 = vld [vmem:[%s7958_s5 + $0xb0] ss:$12 sps:$4 sm:$0xff]  }
0x1938   :  { %v6131_v32 = vpop.eup %6130 }
0x1939   :  { %v2172_v61 = vmul.f32 %v6131_v32, %v7132_v26  ;;  %v2178_v63 = vmul.f32 %v4809_v52, %v2171_v58  ;;  %v2547_v26 = vpack.c.bf16 %v2432_v20, %v2429_v49 }
0x193b   :  { %v2179_v14 = vmul.f32 %v4809_v52, %v2172_v61  ;;  %v7258_v15 = vadd.f32 %v4810_v60, %v2178_v63  ;;  %v2552_v27 = vsel %vm395_vm1, %v2547_v26, 0  ;;  %v7354_v52 = vpack.c.bf16 %v7203_v39, %v7194_v36  ;;  %v4829_v36 = vld [vmem:[%s7964_s11 + $0x14] ss:$0 sm:$0xff] }
0x193c   :  { %5676 = vmatpush3.bf16.xpose.msra.mxu1 %v2552_v27 }
0x193d   :  { %v7260_v16 = vadd.f32 %v4810_v60, %v2179_v14  ;;  %v2187_v18 = vadd.f32 %v6198_v13, %v7258_v15  ;;  %5681 = vmatprep.subr.bf16.mxu1 %v6244_v0 }
0x193f   :  { %v2188_v22 = vadd.f32 %v6199_v19, %v7260_v16 }
0x1941   :  { %v7270_v41 = vpack.c.bf16 %v2188_v22, %v2187_v18 }
0x1943   :  { %5632 = vmatmul.mubr.bf16.vlgmr.msra.gmra.mrb[52].mxu0 %v7270_v41 }
0x1944   :  { %5671 = vmatprep.mubr.bf16.mxu0 %v7304_v9  ;;  %5656 = vmatpush3.bf16.msra.mxu0 %v7295_v59 }
0x1945   :  { %5657 = vmatprep.subr.bf16.mxu0 %v7300_v62 }
0x1948   :  { %5658 = vmatpush3.bf16.msra.mxu0 %v7300_v62 }
0x1949   :  { %5659 = vmatprep.subr.bf16.mxu0 %v7313_v10 }
0x194c   :  { %5660 = vmatpush3.bf16.msra.mxu0 %v7313_v10 }
0x194d   :  { %5661 = vmatprep.subr.bf16.mxu0 %v7320_v8 }
0x1950   :  { %5662 = vmatpush3.bf16.msra.mxu0 %v7320_v8 }
0x1951   :  { %5663 = vmatprep.subr.bf16.mxu0 %v7327_v33 }
0x1954   :  { %5664 = vmatpush3.bf16.msra.mxu0 %v7327_v33 }
0x1955   :  { %5665 = vmatprep.subr.bf16.mxu0 %v7334_v11 }
0x1958   :  { %5666 = vmatpush3.bf16.msra.mxu0 %v7334_v11 }
0x1959   :  { %5667 = vmatprep.subr.bf16.mxu0 %v7341_v12 }
0x195c   :  { %5668 = vmatpush3.bf16.msra.mxu0 %v7341_v12 }
0x195d   :  { %5669 = vmatprep.subr.bf16.mxu0 %v7348_v57 }
0x1960   :  { %5670 = vmatpush3.bf16.msra.mxu0 %v7348_v57 }
0x1961   :  { %5699 = vmatprep.subr.bf16.mxu0 %v6244_v0 }
0x1963   :  { %5672 = vmatmul.mubr.bf16.vlgmr.msra.gmra.mrb[56].mxu0 %v7354_v52 }
0x1964   :  { %5715 = vmatprep.mubr.msk.bf16.mxu0 %vm6245_vm0, %v6244_v0 }
0x1a16   :  { %v2335_v35 = vpop.f32.mrb[52].mxu0 }
0x1a17   :  { %v2336_v37 = vadd.f32 %v4811_v34, %v2335_v35  ;;  %v5633_v38 = vpop.f32.mrb[53].mxu0 }
0x1a18   :  { %v2338_v40 = vpop.f32.mrb[54].mxu0 }
0x1a19   :  { %v2546_v50 = vpack.c.bf16 %v2336_v37, %v2336_v37  ;;  %v7287_v3 = vadd.f32 %v4811_v34, %v2338_v40  ;;  %v5634_v5 = vpop.f32.mrb[55].mxu0 }
0x1a1b   :  { %5678 = vmatmul.mubr.msk.bf16.vlgmr.msra.gmra.mrb[80].mxu1 %vm395_vm1, %v2546_v50  ;;  %v2657_v50 = vsel %vm395_vm1, %v2652_v25, 0  ;;  %v2651_v5 = vpack.c.bf16 %v7287_v3, %v7287_v3 }
0x1a1c   :  { %5683 = vmatprep.mubr.msk.bf16.mxu1 %vm6245_vm0, %v6244_v0 }
0x1a36   :  { %v5673_v39 = vpop.f32.mrb[56].mxu0 }
0x1a37   :  { %v2538_v13 = vadd.f32 %v5673_v39, %v4829_v36  ;;  %v2529_v18 = vpop.f32.mrb[57].mxu0 }
0x1a38   :  { %v5674_v19 = vpop.f32.mrb[58].mxu0  ;;  %v2530_v20 = vadd.f32 %v4829_v36, %v2529_v18 }
0x1a39   :  { %v2541_v22 = vadd.f32 %v5674_v19, %v4829_v36  ;;  %v2532_v26 = vpop.f32.mrb[59].mxu0 }
0x1a3a   :  { %v2533_v27 = vadd.f32 %v4829_v36, %v2532_v26 }
0x1a3b   :  { %v2545_v42 = vpack.c.bf16 %v2541_v22, %v2538_v13 }
0x1a3c   :  { %v2544_v34 = vpack.c.bf16 %v2533_v27, %v2530_v20 }
0x1a3e   :  { %5682 = vmatpush3.bf16.msra.mxu1 %v2544_v34 }
0x1a3f   :  { %5687 = vmatprep.subr.bf16.mxu1 %v6244_v0 }
0x1aee   :  { %v2588_v58 = vpop.f32.mrb[80].mxu1 }
0x1aef   :  { %v2594_v32 = vmul.f32 0.17677669, %v2588_v58  ;;  %v5679_v60 = vpop.f32.mrb[81].mxu1 }
0x1af0   :  { %v2591_v61 = vpop.f32.mrb[82].mxu1 }
0x1af1   :  { %v5680_v63 = vpop.f32.mrb[83].mxu1  ;;  %v2596_v14 = vsel %vm2595_vm4, %v2594_v32, -inf }
0x1af2   :  { %2597 = vmax.xlane.f32.xlu0 %v2596_v14 }
0x1b7f   :  { %v2598_v43 = vpop.xlane.xlu0 %2597 }
0x1b80   :  { %v2599_v45 = vsub.f32 %v2594_v32, %v2598_v43 }
0x1b82   :  { %v2600_v49 = vmul.f32 1.442695, %v2599_v45 }
0x1b84   :  { %6132 = vpow2.f32 %v2600_v49 }
0x1b8e   :  { %v6133_v21 = vpop.eup %6132 }
0x1b8f   :  { %v2602_v17 = vsel %vm2595_vm4, %v6133_v21, 0.0 }
0x1b90   :  { %2603 = vadd.xlane.f32.xlu1 %v2602_v17 }
0x1ba1   :  { %2838 = vrot.lane.b32.xlu1 %v7094_v23, %s6246_s19 }
0x1c1d   :  { %v2604_v35 = vpop.xlane.xlu1 %2603 }
0x1c1e   :  { %6134 = vrcp.f32 %v2604_v35 }
0x1c28   :  { %v6135_v37 = vpop.eup %6134 }
0x1c29   :  { %v2606_v38 = vmul.f32 %v6135_v37, %v6133_v21 }
0x1c2b   :  { %v2607_v40 = vpack.c.bf16 %v2606_v38, %v2606_v38 }
0x1c2d   :  { %5684 = vmatmul.mubr.msk.bf16.vlgmr.msra.gmra.mrb[84].mxu1 %vm2595_vm4, %v2607_v40 }
0x1c2e   :  { %5688 = vmatpush3.bf16.xpose.msra.mxu1 %v2657_v50  ;;  %5689 = vmatprep.mubr.msk.bf16.mxu1 %vm6245_vm0, %v6244_v0 }
0x1c2f   :  { %5693 = vmatprep.subr.bf16.mxu1 %v6244_v0 }
0x1c35   :  { %5690 = vmatmul.mubr.msk.bf16.vlgmr.msra.gmra.mrb[88].mxu1 %vm395_vm1, %v2651_v5 }
0x1c36   :  { %5694 = vmatpush3.bf16.msra.mxu1 %v2545_v42  ;;  %5695 = vmatprep.mubr.msk.bf16.mxu1 %vm6245_vm0, %v6244_v0  ;;  %v2839_v42 = vpop.permute.xlu1 %2838 }
0x1d00   :  { %v7382_v58 = vpop.f32.mrb[84].mxu1 }
0x1d01   :  { %v5685_v44 = vpop.f32.mrb[85].mxu1 }
0x1d02   :  { %v2648_v24 = vpop.f32.mrb[86].mxu1 }
0x1d03   :  { %v5686_v25 = vpop.f32.mrb[87].mxu1 }
0x1d08   :  { %v2693_v32 = vpop.f32.mrb[88].mxu1 }
0x1d09   :  { %v2699_v60 = vmul.f32 0.17677669, %v2693_v32  ;;  %v5691_v61 = vpop.f32.mrb[89].mxu1 }
0x1d0a   :  { %v2696_v63 = vpop.f32.mrb[90].mxu1 }
0x1d0b   :  { %v5692_v14 = vpop.f32.mrb[91].mxu1  ;;  %v2700_v36 = vsel %vm2595_vm4, %v2699_v60, -inf }
0x1d0c   :  { %2701 = vmax.xlane.f32.xlu0 %v2700_v36 }
0x1d22   :  { %2836 = vrot.lane.b32.xlu0 %v7089_v7, %s6246_s19 }
0x1d26   :  { %2842 = vrot.lane.b32.xlu0 %v7116_v48, %s6246_s19 }
0x1d2a   :  { %2844 = vrot.lane.b32.xlu0 %v7123_v1, %s6246_s19 }
0x1d2e   :  { %2846 = vrot.lane.b32.xlu0 %v7144_v29, %s6246_s19 }
0x1d32   :  { %2848 = vrot.lane.b32.xlu0 %v7158_v31, %s6246_s19 }
0x1d36   :  { %2850 = vrot.lane.b32.xlu0 %v7172_v6, %s6246_s19 }
0x1d3a   :  { %2779 = vrot.lane.b32.xlu0 %v7239_v55, %s6246_s19 }
0x1d3e   :  { %2913 = vrot.lane.b32.xlu0 %v7295_v59, %s6246_s19 }
0x1d42   :  { %2917 = vrot.lane.b32.xlu0 %v7313_v10, %s6246_s19 }
0x1d46   :  { %2921 = vrot.lane.b32.xlu0 %v7327_v33, %s6246_s19 }
0x1d4a   :  { %2925 = vrot.lane.b32.xlu0 %v7341_v12, %s6246_s19 }
0x1d99   :  { %v2702_v3 = vpop.xlane.xlu0 %2701 }
0x1d9a   :  { %v2703_v39 = vsub.f32 %v2699_v60, %v2702_v3 }
0x1d9c   :  { %v2704_v13 = vmul.f32 1.442695, %v2703_v39  ;;  %v4842_v39 = vld [vmem:[%s7964_s11 + $0xd] ss:$0 sm:$0xff] }
0x1d9d   :  { %v2837_v22 = vpop.permute.xlu0 %2836 }
0x1d9e   :  { %6136 = vpow2.f32 %v2704_v13  ;;  %5719 = vmatprep.subr.bf16.mxu1 %v2837_v22 }
0x1da1   :  { %v2843_v45 = vpop.permute.xlu0 %2842 }
0x1da5   :  { %v2845_v21 = vpop.permute.xlu0 %2844 }
0x1da8   :  { %v6137_v18 = vpop.eup %6136 }
0x1da9   :  { %v2706_v19 = vsel %vm2595_vm4, %v6137_v18, 0.0  ;;  %v2847_v34 = vpop.permute.xlu0 %2846 }
0x1daa   :  { %2707 = vadd.xlane.f32.xlu1 %v2706_v19 }
0x1dad   :  { %v2849_v38 = vpop.permute.xlu0 %2848 }
0x1db1   :  { %v2851_v5 = vpop.permute.xlu0 %2850 }
0x1db5   :  { %v2780_v24 = vpop.permute.xlu0 %2779 }
0x1dbb   :  { %2840 = vrot.lane.b32.xlu1 %v7108_v47, %s6246_s19 }
0x1dbf   :  { %2767 = vrot.lane.b32.xlu1 %v7099_v46, %s6246_s19 }
0x1dc3   :  { %2769 = vrot.lane.b32.xlu1 %v7139_v28, %s6246_s19 }
0x1dc7   :  { %2771 = vrot.lane.b32.xlu1 %v7153_v30, %s6246_s19 }
0x1dcb   :  { %2773 = vrot.lane.b32.xlu1 %v7167_v4, %s6246_s19 }
0x1dcf   :  { %2775 = vrot.lane.b32.xlu1 %v7215_v51, %s6246_s19 }
0x1dd3   :  { %2777 = vrot.lane.b32.xlu1 %v7231_v54, %s6246_s19 }
0x1dd7   :  { %2781 = vrot.lane.b32.xlu1 %v7246_v56, %s6246_s19 }
0x1ddb   :  { %2915 = vrot.lane.b32.xlu1 %v7300_v62, %s6246_s19 }
0x1ddf   :  { %2919 = vrot.lane.b32.xlu1 %v7320_v8, %s6246_s19 }
0x1de3   :  { %2923 = vrot.lane.b32.xlu1 %v7334_v11, %s6246_s19 }
0x1de7   :  { %2927 = vrot.lane.b32.xlu1 %v7348_v57, %s6246_s19 }
0x1e37   :  { %v2708_v43 = vpop.xlane.xlu1 %2707 }
0x1e38   :  { %6138 = vrcp.f32 %v2708_v43 }
0x1e3b   :  { %v2841_v49 = vpop.permute.xlu1 %2840 }
0x1e3f   :  { %v2768_v17 = vpop.permute.xlu1 %2767 }
0x1e40   :  { %5700 = vmatpush3.bf16.msra.mxu0 %v2768_v17 }
0x1e41   :  { %5701 = vmatprep.subr.bf16.mxu0 %v6244_v0 }
0x1e42   :  { %v6139_v20 = vpop.eup %6138 }
0x1e43   :  { %v2710_v26 = vmul.f32 %v6139_v20, %v6137_v18  ;;  %v2770_v27 = vpop.permute.xlu1 %2769 }
0x1e44   :  { %5702 = vmatpush3.bf16.msra.mxu0 %v2770_v27 }
0x1e45   :  { %v2711_v35 = vpack.c.bf16 %v2710_v26, %v2710_v26  ;;  %5703 = vmatprep.subr.bf16.mxu0 %v6244_v0 }
0x1e47   :  { %5696 = vmatmul.mubr.msk.bf16.vlgmr.msra.gmra.mrb[92].mxu1 %vm2595_vm4, %v2711_v35  ;;  %v2772_v37 = vpop.permute.xlu1 %2771 }
0x1e48   :  { %5720 = vmatpush3.bf16.msra.mxu1 %v2837_v22  ;;  %5704 = vmatpush3.bf16.msra.mxu0 %v2772_v37  ;;  %v4843_v22 = vld [vmem:[%s7964_s11 + $0x11] ss:$0 sm:$0xff] }
0x1e49   :  { %5721 = vmatprep.subr.bf16.mxu1 %v2839_v42  ;;  %5705 = vmatprep.subr.bf16.mxu0 %v6244_v0 }
0x1e4a   :  { %5735 = vmatprep.mubr.bf16.mxu1 %v7219_v2 }
0x1e4b   :  { %v2774_v40 = vpop.permute.xlu1 %2773 }
0x1e4c   :  { %5722 = vmatpush3.bf16.msra.mxu1 %v2839_v42  ;;  %5706 = vmatpush3.bf16.msra.mxu0 %v2774_v40  ;;  %v2914_v40 = vpop.permute.xlu0 %2913 }
0x1e4d   :  { %5723 = vmatprep.subr.bf16.mxu1 %v2841_v49  ;;  %5707 = vmatprep.subr.bf16.mxu0 %v6244_v0 }
0x1e4f   :  { %v2776_v50 = vpop.permute.xlu1 %2775 }
0x1e50   :  { %5724 = vmatpush3.bf16.msra.mxu1 %v2841_v49  ;;  %5708 = vmatpush3.bf16.msra.mxu0 %v2776_v50 }
0x1e51   :  { %5725 = vmatprep.subr.bf16.mxu1 %v2843_v45  ;;  %5709 = vmatprep.subr.bf16.mxu0 %v6244_v0 }
0x1e53   :  { %v2778_v44 = vpop.permute.xlu1 %2777 }
0x1e54   :  { %5726 = vmatpush3.bf16.msra.mxu1 %v2843_v45  ;;  %5710 = vmatpush3.bf16.msra.mxu0 %v2778_v44 }
0x1e55   :  { %5727 = vmatprep.subr.bf16.mxu1 %v2845_v21  ;;  %5711 = vmatprep.subr.bf16.mxu0 %v6244_v0 }
0x1e57   :  { %v2782_v25 = vpop.permute.xlu1 %2781 }
0x1e58   :  { %5728 = vmatpush3.bf16.msra.mxu1 %v2845_v21  ;;  %5712 = vmatpush3.bf16.msra.mxu0 %v2780_v24 }
0x1e59   :  { %5729 = vmatprep.subr.bf16.mxu1 %v2847_v34  ;;  %5713 = vmatprep.subr.bf16.mxu0 %v6244_v0 }
0x1e5b   :  { %v2916_v50 = vpop.permute.xlu1 %2915 }
0x1e5c   :  { %5730 = vmatpush3.bf16.msra.mxu1 %v2847_v34  ;;  %5714 = vmatpush3.bf16.msra.mxu0 %v2782_v25 }
0x1e5d   :  { %5731 = vmatprep.subr.bf16.mxu1 %v2849_v38  ;;  %5739 = vmatprep.subr.bf16.mxu0 %v2914_v40 }
0x1e5f   :  { %5716 = vmatmul.mubr.bf16.vlgmr.msra.gmra.mrb[60].mxu0 %v7270_v41  ;;  %v2920_v44 = vpop.permute.xlu1 %2919 }
0x1e60   :  { %5732 = vmatpush3.bf16.msra.mxu1 %v2849_v38  ;;  %5755 = vmatprep.mubr.bf16.mxu0 %v7304_v9 }
0x1e61   :  { %5733 = vmatprep.subr.bf16.mxu1 %v2851_v5  ;;  %5740 = vmatpush3.bf16.msra.mxu0 %v2914_v40 }
0x1e62   :  { %5741 = vmatprep.subr.bf16.mxu0 %v2916_v50 }
0x1e63   :  { %v2924_v25 = vpop.permute.xlu1 %2923 }
0x1e64   :  { %5734 = vmatpush3.bf16.msra.mxu1 %v2851_v5  ;;  %v2918_v5 = vpop.permute.xlu0 %2917 }
0x1e65   :  { %5759 = vmatprep.subr.bf16.mxu1 %v6244_v0  ;;  %5742 = vmatpush3.bf16.msra.mxu0 %v2916_v50 }
0x1e66   :  { %5743 = vmatprep.subr.bf16.mxu0 %v2918_v5 }
0x1e67   :  { %5736 = vmatmul.mubr.bf16.vlgmr.msra.gmra.mrb[96].mxu1 %v7223_v53 }
0x1e68   :  { %5761 = vmatprep.mubr.msk.bf16.mxu1 %vm6245_vm0, %v6244_v0  ;;  %v2922_v24 = vpop.permute.xlu0 %2921 }
0x1e69   :  { %5744 = vmatpush3.bf16.msra.mxu0 %v2918_v5 }
0x1e6a   :  { %5745 = vmatprep.subr.bf16.mxu0 %v2920_v44 }
0x1e6d   :  { %5746 = vmatpush3.bf16.msra.mxu0 %v2920_v44 }
0x1e6e   :  { %5747 = vmatprep.subr.bf16.mxu0 %v2922_v24 }
0x1e71   :  { %5748 = vmatpush3.bf16.msra.mxu0 %v2922_v24 }
0x1e72   :  { %5749 = vmatprep.subr.bf16.mxu0 %v2924_v25 }
0x1e75   :  { %5750 = vmatpush3.bf16.msra.mxu0 %v2924_v25 }
0x1f1a   :  { %v7447_v32 = vpop.f32.mrb[92].mxu1 }
0x1f1b   :  { %v2759_v60 = vpack.c.bf16 %v7447_v32, %v7382_v58  ;;  %v5697_v61 = vpop.f32.mrb[93].mxu1 }
0x1f1c   :  { %v2752_v63 = vpop.f32.mrb[94].mxu1  ;;  %v2926_v61 = vpop.permute.xlu0 %2925 }
0x1f1d   :  { %v5698_v14 = vpop.f32.mrb[95].mxu1  ;;  %5751 = vmatprep.subr.bf16.mxu0 %v2926_v61  ;;  %v2928_v63 = vpop.permute.xlu1 %2927 }
0x1f1e   :  { %5752 = vmatpush3.bf16.msra.mxu0 %v2926_v61 }
0x1f1f   :  { %5753 = vmatprep.subr.bf16.mxu0 %v2928_v63 }
0x1f22   :  { %5754 = vmatpush3.bf16.msra.mxu0 %v2928_v63 }
0x1f23   :  { %5783 = vmatprep.subr.bf16.mxu0 %v6244_v0 }
0x1f25   :  { %5756 = vmatmul.mubr.bf16.vlgmr.msra.gmra.mrb[64].mxu0 %v7354_v52 }
0x1f26   :  { %5787 = vmatprep.mubr.msk.bf16.mxu0 %vm6245_vm0, %v6244_v0 }
0x1f32   :  { %v2825_v36 = vpop.f32.mrb[60].mxu0 }
0x1f33   :  { %v5717_v3 = vpop.f32.mrb[61].mxu0  ;;  %v2826_v37 = vadd.f32 %v4842_v39, %v2825_v36 }
0x1f34   :  { %v2828_v13 = vpop.f32.mrb[62].mxu0 }
0x1f35   :  { %v7454_v18 = vadd.f32 %v4842_v39, %v2828_v13  ;;  %v5718_v19 = vpop.f32.mrb[63].mxu0  ;;  %v2988_v38 = vpack.c.bf16 %v2826_v37, %v2826_v37 }
0x1f3a   :  { %v5737_v42 = vpop.f32.mrb[96].mxu1 }
0x1f3b   :  { %v7459_v43 = vadd.f32 %v5737_v42, %v4843_v22  ;;  %v2894_v45 = vpop.f32.mrb[97].mxu1 }
0x1f3c   :  { %v5738_v49 = vpop.f32.mrb[98].mxu1  ;;  %v2895_v20 = vadd.f32 %v4843_v22, %v2894_v45 }
0x1f3d   :  { %v7461_v21 = vadd.f32 %v5738_v49, %v4843_v22  ;;  %v2897_v17 = vpop.f32.mrb[99].mxu1 }
0x1f3e   :  { %v2898_v26 = vadd.f32 %v4843_v22, %v2897_v17  ;;  %v4844_v22 = vld [vmem:[%s7964_s11 + $0x15] ss:$0 sm:$0xff] }
0x1f3f   :  { %v3093_v27 = vpack.c.bf16 %v7461_v21, %v7459_v43 }
0x1f40   :  { %v2989_v34 = vpack.c.bf16 %v2898_v26, %v2895_v20 }
0x1f42   :  { %v2994_v35 = vsel %vm395_vm1, %v2989_v34, 0 }
0x1f43   :  { %5760 = vmatpush3.bf16.xpose.msra.mxu1 %v2994_v35 }
0x1f44   :  { %5765 = vmatprep.subr.bf16.mxu1 %v6244_v0 }
0x1f4a   :  { %5762 = vmatmul.mubr.msk.bf16.vlgmr.msra.gmra.mrb[100].mxu1 %vm395_vm1, %v2988_v38 }
0x1f4b   :  { %5767 = vmatprep.mubr.msk.bf16.mxu1 %vm6245_vm0, %v6244_v0 }
0x1ff8   :  { %v5757_v42 = vpop.f32.mrb[64].mxu0 }
0x1ff9   :  { %v2980_v45 = vadd.f32 %v5757_v42, %v4844_v22  ;;  %v2971_v49 = vpop.f32.mrb[65].mxu0 }
0x1ffa   :  { %v2972_v17 = vadd.f32 %v4844_v22, %v2971_v49  ;;  %v5758_v20 = vpop.f32.mrb[66].mxu0 }
0x1ffb   :  { %v2983_v26 = vadd.f32 %v5758_v20, %v4844_v22  ;;  %v2974_v34 = vpop.f32.mrb[67].mxu0 }
0x1ffc   :  { %v2975_v35 = vadd.f32 %v4844_v22, %v2974_v34 }
0x1ffd   :  { %v2987_v37 = vpack.c.bf16 %v2983_v26, %v2980_v45 }
0x1ffe   :  { %v2986_v38 = vpack.c.bf16 %v2975_v35, %v2972_v17 }
0x2000   :  { %5766 = vmatpush3.bf16.msra.mxu1 %v2986_v38 }
0x2001   :  { %5771 = vmatprep.subr.bf16.mxu1 %v6244_v0 }
0x201d   :  { %v3030_v14 = vpop.f32.mrb[100].mxu1 }
0x201e   :  { %v3036_v36 = vmul.f32 0.17677669, %v3030_v14  ;;  %v5763_v3 = vpop.f32.mrb[101].mxu1 }
0x201f   :  { %v3033_v39 = vpop.f32.mrb[102].mxu1 }
0x2020   :  { %v5764_v13 = vpop.f32.mrb[103].mxu1  ;;  %v3037_v19 = vsel %vm2595_vm4, %v3036_v36, -inf }
0x2021   :  { %3038 = vmax.xlane.f32.xlu0 %v3037_v19  ;;  %v6050_v19 = vld [vmem:[%s7960_s7 + $0x10] sm:$0xff]  }
0x2022   :  { %5784 = vmatpush3.bf16.msra.mxu0 %v6050_v19 }
0x2023   :  { %5785 = vmatprep.subr.bf16.mxu0 %v6244_v0 }
0x20ae   :  { %v3039_v40 = vpop.xlane.xlu0 %3038 }
0x20af   :  { %v3040_v50 = vsub.f32 %v3036_v36, %v3039_v40 }
0x20b1   :  { %v3041_v5 = vmul.f32 1.442695, %v3040_v50 }
0x20b3   :  { %6140 = vpow2.f32 %v3041_v5 }
0x20bd   :  { %v6141_v44 = vpop.eup %6140 }
0x20be   :  { %v3043_v24 = vsel %vm2595_vm4, %v6141_v44, 0.0 }
0x20bf   :  { %3044 = vadd.xlane.f32.xlu1 %v3043_v24 }
0x20d0   :  { %3391 = vrot.lane.b32.xlu1 %v7094_v23, %s6247_s28 }
0x20d4   :  { %3393 = vrot.lane.b32.xlu1 %v7108_v47, %s6247_s28 }
0x20d8   :  { %3320 = vrot.lane.b32.xlu1 %v7099_v46, %s6247_s28 }
0x20dc   :  { %3322 = vrot.lane.b32.xlu1 %v7139_v28, %s6247_s28 }
0x20e0   :  { %3324 = vrot.lane.b32.xlu1 %v7153_v30, %s6247_s28  ;;  %v3098_v30 = vsel %vm395_vm1, %v3093_v27, 0 }
0x20e4   :  { %3326 = vrot.lane.b32.xlu1 %v7167_v4, %s6247_s28  ;;  %v3092_v4 = vpack.c.bf16 %v7454_v18, %v7454_v18 }
0x20e8   :  { %3328 = vrot.lane.b32.xlu1 %v7215_v51, %s6247_s28 }
0x20ec   :  { %3330 = vrot.lane.b32.xlu1 %v7231_v54, %s6247_s28 }
0x20f0   :  { %3334 = vrot.lane.b32.xlu1 %v7246_v56, %s6247_s28 }
0x20f4   :  { %3468 = vrot.lane.b32.xlu1 %v7300_v62, %s6247_s28 }
0x20f8   :  { %3472 = vrot.lane.b32.xlu1 %v7320_v8, %s6247_s28 }
0x20fc   :  { %3476 = vrot.lane.b32.xlu1 %v7334_v11, %s6247_s28 }
0x2100   :  { %3480 = vrot.lane.b32.xlu1 %v7348_v57, %s6247_s28 }
0x214c   :  { %v3045_v23 = vpop.xlane.xlu1 %3044 }
0x214d   :  { %6142 = vrcp.f32 %v3045_v23 }
0x2157   :  { %v6143_v46 = vpop.eup %6142 }
0x2158   :  { %v3047_v47 = vmul.f32 %v6143_v46, %v6141_v44 }
0x215a   :  { %v3048_v28 = vpack.c.bf16 %v3047_v47, %v3047_v47  ;;  %v4856_v47 = vld [vmem:[%s7964_s11 + $0x12] ss:$0 sm:$0xff] }
0x215c   :  { %5768 = vmatmul.mubr.msk.bf16.vlgmr.msra.gmra.mrb[104].mxu1 %vm2595_vm4, %v3048_v28 }
0x215d   :  { %5772 = vmatpush3.bf16.xpose.msra.mxu1 %v3098_v30  ;;  %5773 = vmatprep.mubr.msk.bf16.mxu1 %vm6245_vm0, %v6244_v0 }
0x215e   :  { %5777 = vmatprep.subr.bf16.mxu1 %v6244_v0 }
0x2164   :  { %5774 = vmatmul.mubr.msk.bf16.vlgmr.msra.gmra.mrb[108].mxu1 %vm395_vm1, %v3092_v4 }
0x2165   :  { %5778 = vmatpush3.bf16.msra.mxu1 %v2987_v37  ;;  %5779 = vmatprep.mubr.msk.bf16.mxu1 %vm6245_vm0, %v6244_v0 }
0x2166   :  { %5791 = vmatprep.subr.bf16.mxu1 %v6244_v0 }
0x222f   :  { %v7520_v51 = vpop.f32.mrb[104].mxu1 }
0x2230   :  { %v5769_v54 = vpop.f32.mrb[105].mxu1 }
0x2231   :  { %v3089_v56 = vpop.f32.mrb[106].mxu1 }
0x2232   :  { %v5770_v43 = vpop.f32.mrb[107].mxu1 }
0x2237   :  { %v3134_v21 = vpop.f32.mrb[108].mxu1 }
0x2238   :  { %v3140_v27 = vmul.f32 0.17677669, %v3134_v21  ;;  %v5775_v25 = vpop.f32.mrb[109].mxu1 }
0x2239   :  { %v3137_v61 = vpop.f32.mrb[110].mxu1 }
0x223a   :  { %v5776_v63 = vpop.f32.mrb[111].mxu1  ;;  %v3141_v18 = vsel %vm2595_vm4, %v3140_v27, -inf }
0x223b   :  { %3142 = vmax.xlane.f32.xlu0 %v3141_v18 }
0x22c8   :  { %v3143_v14 = vpop.xlane.xlu0 %3142 }
0x22c9   :  { %v3144_v36 = vsub.f32 %v3140_v27, %v3143_v14 }
0x22cb   :  { %v3145_v3 = vmul.f32 1.442695, %v3144_v36 }
0x22cd   :  { %6144 = vpow2.f32 %v3145_v3 }
0x22d7   :  { %v6145_v39 = vpop.eup %6144 }
0x22d8   :  { %v3147_v13 = vsel %vm2595_vm4, %v6145_v39, 0.0 }
0x22d9   :  { %3148 = vadd.xlane.f32.xlu0 %v3147_v13  ;;  %v4855_v13 = vld [vmem:[%s7964_s11 + $0xe] ss:$0 sm:$0xff] }
0x22ef   :  { %3389 = vrot.lane.b32.xlu0 %v7089_v7, %s6247_s28  ;;  %v6051_v7 = vld [vmem:[%s7960_s7 + $0x18] sm:$0xff]  }
0x22f0   :  { %5786 = vmatpush3.bf16.msra.mxu0 %v6051_v7 }
0x22f1   :  { %5799 = vmatprep.subr.bf16.mxu0 %v6244_v0 }
0x22f3   :  { %3395 = vrot.lane.b32.xlu0 %v7116_v48, %s6247_s28 }
0x22f7   :  { %3397 = vrot.lane.b32.xlu0 %v7123_v1, %s6247_s28 }
0x22fb   :  { %3399 = vrot.lane.b32.xlu0 %v7144_v29, %s6247_s28 }
0x22ff   :  { %3401 = vrot.lane.b32.xlu0 %v7158_v31, %s6247_s28  ;;  %v6048_v31 = vld [vmem:[%s7960_s7] sm:$0xff]  }
0x2303   :  { %3403 = vrot.lane.b32.xlu0 %v7172_v6, %s6247_s28 }
0x2307   :  { %3332 = vrot.lane.b32.xlu0 %v7239_v55, %s6247_s28  ;;  %v6049_v55 = vld [vmem:[%s7960_s7 + $0x8] sm:$0xff]  }
0x230b   :  { %3466 = vrot.lane.b32.xlu0 %v7295_v59, %s6247_s28 }
0x230f   :  { %3470 = vrot.lane.b32.xlu0 %v7313_v10, %s6247_s28  ;;  %v3392_v10 = vpop.permute.xlu1 %3391 }
0x2313   :  { %3474 = vrot.lane.b32.xlu0 %v7327_v33, %s6247_s28  ;;  %v3394_v33 = vpop.permute.xlu1 %3393 }
0x2317   :  { %3478 = vrot.lane.b32.xlu0 %v7341_v12, %s6247_s28 }
0x2366   :  { %v3149_v48 = vpop.xlane.xlu0 %3148 }
0x2367   :  { %6146 = vrcp.f32 %v3149_v48 }
0x236a   :  { %v3390_v59 = vpop.permute.xlu0 %3389 }
0x236e   :  { %v3396_v12 = vpop.permute.xlu0 %3395 }
0x2371   :  { %v6147_v1 = vpop.eup %6146 }
0x2372   :  { %v3151_v29 = vmul.f32 %v6147_v1, %v6145_v39  ;;  %v3398_v22 = vpop.permute.xlu0 %3397 }
0x2374   :  { %v3152_v6 = vpack.c.bf16 %v3151_v29, %v3151_v29 }
0x2376   :  { %5780 = vmatmul.mubr.msk.bf16.vlgmr.msra.gmra.mrb[112].mxu1 %vm2595_vm4, %v3152_v6  ;;  %v3400_v42 = vpop.permute.xlu0 %3399 }
0x2377   :  { %5792 = vmatpush3.bf16.msra.mxu1 %v6048_v31  ;;  %5795 = vmatprep.mubr.msk.bf16.mxu1 %vm6245_vm0, %v6244_v0 }
0x2378   :  { %5793 = vmatprep.subr.bf16.mxu1 %v6244_v0 }
0x237a   :  { %v3402_v58 = vpop.permute.xlu0 %3401 }
0x237b   :  { %5794 = vmatpush3.bf16.msra.mxu1 %v6049_v55 }
0x237c   :  { %5819 = vmatprep.subr.bf16.mxu1 %v3390_v59 }
0x237e   :  { %5796 = vmatmul.mubr.msk.bf16.vlgmr.msra.gmra.mrb[116].mxu1 %vm395_vm1, %v2759_v60  ;;  %v3404_v32 = vpop.permute.xlu0 %3403  ;;  %v3321_v60 = vpop.permute.xlu1 %3320 }
0x237f   :  { %5820 = vmatpush3.bf16.msra.mxu1 %v3390_v59  ;;  %5835 = vmatprep.mubr.bf16.mxu1 %v7219_v2 }
0x2380   :  { %5821 = vmatprep.subr.bf16.mxu1 %v3392_v10 }
0x2382   :  { %v3323_v45 = vpop.permute.xlu1 %3322  ;;  %v3333_v23 = vpop.permute.xlu0 %3332 }
0x2383   :  { %5822 = vmatpush3.bf16.msra.mxu1 %v3392_v10 }
0x2384   :  { %5823 = vmatprep.subr.bf16.mxu1 %v3394_v33 }
0x2386   :  { %v3325_v35 = vpop.permute.xlu1 %3324  ;;  %v3467_v55 = vpop.permute.xlu0 %3466 }
0x2387   :  { %5824 = vmatpush3.bf16.msra.mxu1 %v3394_v33 }
0x2388   :  { %5825 = vmatprep.subr.bf16.mxu1 %v3396_v12 }
0x238a   :  { %v3327_v40 = vpop.permute.xlu1 %3326  ;;  %v3471_v10 = vpop.permute.xlu0 %3470 }
0x238b   :  { %5826 = vmatpush3.bf16.msra.mxu1 %v3396_v12 }
0x238c   :  { %5827 = vmatprep.subr.bf16.mxu1 %v3398_v22 }
0x238e   :  { %v3329_v44 = vpop.permute.xlu1 %3328  ;;  %v3475_v12 = vpop.permute.xlu0 %3474 }
0x238f   :  { %5828 = vmatpush3.bf16.msra.mxu1 %v3398_v22 }
0x2390   :  { %5829 = vmatprep.subr.bf16.mxu1 %v3400_v42 }
0x2392   :  { %v3331_v24 = vpop.permute.xlu1 %3330 }
0x2393   :  { %5830 = vmatpush3.bf16.msra.mxu1 %v3400_v42  ;;  %v3479_v42 = vpop.permute.xlu0 %3478 }
0x2394   :  { %5831 = vmatprep.subr.bf16.mxu1 %v3402_v58 }
0x2396   :  { %v3335_v46 = vpop.permute.xlu1 %3334 }
0x2397   :  { %5832 = vmatpush3.bf16.msra.mxu1 %v3402_v58 }
0x2398   :  { %5833 = vmatprep.subr.bf16.mxu1 %v3404_v32 }
0x239a   :  { %v3469_v59 = vpop.permute.xlu1 %3468 }
0x239b   :  { %5834 = vmatpush3.bf16.msra.mxu1 %v3404_v32 }
0x239c   :  { %5859 = vmatprep.subr.bf16.mxu1 %v6244_v0 }
0x239e   :  { %5836 = vmatmul.mubr.bf16.vlgmr.msra.gmra.mrb[120].mxu1 %v7223_v53  ;;  %v3473_v33 = vpop.permute.xlu1 %3472 }
0x239f   :  { %5861 = vmatprep.mubr.msk.bf16.mxu1 %vm6245_vm0, %v6244_v0 }
0x23a2   :  { %v3477_v22 = vpop.permute.xlu1 %3476 }
0x23a6   :  { %v3481_v58 = vpop.permute.xlu1 %3480 }
0x2449   :  { %v3190_v49 = vpop.f32.mrb[112].mxu1 }
0x244a   :  { %v3200_v17 = vpack.c.bf16 %v3190_v49, %v7520_v51  ;;  %v5781_v20 = vpop.f32.mrb[113].mxu1 }
0x244b   :  { %v3193_v26 = vpop.f32.mrb[114].mxu1 }
0x244c   :  { %v5782_v34 = vpop.f32.mrb[115].mxu1  ;;  %5788 = vmatmul.mubr.msk.bf16.vlgmr.msra.gmra.mrb[68].mxu0 %vm395_vm1, %v3200_v17  ;;  %v4857_v26 = vld [vmem:[%s7964_s11 + $0x16] ss:$0 sm:$0xff] }
0x244d   :  { %5800 = vmatpush3.bf16.msra.mxu0 %v3321_v60  ;;  %5815 = vmatprep.mubr.msk.bf16.mxu0 %vm6245_vm0, %v6244_v0 }
0x244e   :  { %5801 = vmatprep.subr.bf16.mxu0 %v6244_v0 }
0x2451   :  { %5802 = vmatpush3.bf16.msra.mxu0 %v3323_v45  ;;  %v3306_v37 = vpop.f32.mrb[116].mxu1 }
0x2452   :  { %v5797_v38 = vpop.f32.mrb[117].mxu1  ;;  %5803 = vmatprep.subr.bf16.mxu0 %v6244_v0 }
0x2453   :  { %v3309_v50 = vpop.f32.mrb[118].mxu1 }
0x2454   :  { %v5798_v5 = vpop.f32.mrb[119].mxu1 }
0x2455   :  { %5804 = vmatpush3.bf16.msra.mxu0 %v3325_v35 }
0x2456   :  { %5805 = vmatprep.subr.bf16.mxu0 %v6244_v0 }
0x2459   :  { %5806 = vmatpush3.bf16.msra.mxu0 %v3327_v40 }
0x245a   :  { %5807 = vmatprep.subr.bf16.mxu0 %v6244_v0 }
0x245d   :  { %5808 = vmatpush3.bf16.msra.mxu0 %v3329_v44 }
0x245e   :  { %5809 = vmatprep.subr.bf16.mxu0 %v6244_v0 }
0x2461   :  { %5810 = vmatpush3.bf16.msra.mxu0 %v3331_v24 }
0x2462   :  { %5811 = vmatprep.subr.bf16.mxu0 %v6244_v0 }
0x2465   :  { %5812 = vmatpush3.bf16.msra.mxu0 %v3333_v23 }
0x2466   :  { %5813 = vmatprep.subr.bf16.mxu0 %v6244_v0 }
0x2469   :  { %5814 = vmatpush3.bf16.msra.mxu0 %v3335_v46 }
0x246a   :  { %5839 = vmatprep.subr.bf16.mxu0 %v3467_v55 }
0x246c   :  { %5816 = vmatmul.mubr.bf16.vlgmr.msra.gmra.mrb[72].mxu0 %v7270_v41 }
0x246d   :  { %5855 = vmatprep.mubr.bf16.mxu0 %v7304_v9  ;;  %5840 = vmatpush3.bf16.msra.mxu0 %v3467_v55 }
0x246e   :  { %5841 = vmatprep.subr.bf16.mxu0 %v3469_v59 }
0x2471   :  { %v5837_v28 = vpop.f32.mrb[120].mxu1  ;;  %5842 = vmatpush3.bf16.msra.mxu0 %v3469_v59 }
0x2472   :  { %v7589_v30 = vadd.f32 %v5837_v28, %v4856_v47  ;;  %v3447_v4 = vpop.f32.mrb[121].mxu1  ;;  %5843 = vmatprep.subr.bf16.mxu0 %v3471_v10 }
0x2473   :  { %v3448_v51 = vadd.f32 %v4856_v47, %v3447_v4  ;;  %v5838_v54 = vpop.f32.mrb[122].mxu1 }
0x2474   :  { %v7591_v56 = vadd.f32 %v5838_v54, %v4856_v47  ;;  %v3450_v43 = vpop.f32.mrb[123].mxu1  ;;  %v6200_v54 = vld [vmem:[%s7958_s5 + $0x1c] ss:$12 sps:$4 sm:$0xff]  }
0x2475   :  { %v3451_v21 = vadd.f32 %v4856_v47, %v3450_v43  ;;  %5844 = vmatpush3.bf16.msra.mxu0 %v3471_v10  ;;  %v6201_v43 = vld [vmem:[%s7958_s5 + $0x34] ss:$12 sps:$4 sm:$0xff]  }
0x2476   :  { %v3646_v27 = vpack.c.bf16 %v7591_v56, %v7589_v30  ;;  %5845 = vmatprep.subr.bf16.mxu0 %v3473_v33 }
0x2477   :  { %v3542_v25 = vpack.c.bf16 %v3451_v21, %v3448_v51  ;;  %v6202_v21 = vld [vmem:[%s7958_s5] ss:$12 sps:$4 sm:$0xff]  }
0x2479   :  { %v3547_v61 = vsel %vm395_vm1, %v3542_v25, 0  ;;  %5846 = vmatpush3.bf16.msra.mxu0 %v3473_v33  ;;  %v6203_v25 = vld [vmem:[%s7958_s5 + $0x18] ss:$12 sps:$4 sm:$0xff]  }
0x247a   :  { %5860 = vmatpush3.bf16.xpose.msra.mxu1 %v3547_v61  ;;  %5847 = vmatprep.subr.bf16.mxu0 %v3475_v12  ;;  %v6204_v61 = vld [vmem:[%s7958_s5 + $0x30] ss:$12 sps:$4 sm:$0xff]  }
0x247b   :  { %5865 = vmatprep.subr.bf16.mxu1 %v6244_v0 }
0x247d   :  { %5848 = vmatpush3.bf16.msra.mxu0 %v3475_v12 }
0x247e   :  { %5849 = vmatprep.subr.bf16.mxu0 %v3477_v22 }
0x2481   :  { %5850 = vmatpush3.bf16.msra.mxu0 %v3477_v22 }
0x2482   :  { %5851 = vmatprep.subr.bf16.mxu0 %v3479_v42 }
0x2485   :  { %5852 = vmatpush3.bf16.msra.mxu0 %v3479_v42  ;;  %v6209_v42 = vld [vmem:[%s7958_s5 + $0x4] ss:$12 sps:$4 sm:$0xff]  }
0x2486   :  { %5853 = vmatprep.subr.bf16.mxu0 %v3481_v58 }
0x2489   :  { %5854 = vmatpush3.bf16.msra.mxu0 %v3481_v58  ;;  %v6210_v58 = vld [vmem:[%s7958_s5 + $0x4c] ss:$12 sps:$4 sm:$0xff]  }
0x248a   :  { %5883 = vmatprep.subr.bf16.mxu0 %v6244_v0 }
0x248c   :  { %5856 = vmatmul.mubr.bf16.vlgmr.msra.gmra.mrb[76].mxu0 %v7354_v52 }
0x248d   :  { %5887 = vmatprep.mubr.msk.bf16.mxu0 %vm6245_vm0, %v6244_v0 }
0x251f   :  { %v3250_v63 = vpop.f32.mrb[68].mxu0 }
0x2520   :  { %v7597_v18 = vadd.f32 %v3306_v37, %v3250_v63  ;;  %v5789_v14 = vpop.f32.mrb[69].mxu0  ;;  %v6205_v63 = vld [vmem:[%s7958_s5 + $0x48] ss:$12 sps:$4 sm:$0xff]  }
0x2521   :  { %v3253_v36 = vpop.f32.mrb[70].mxu0  ;;  %v6206_v14 = vld [vmem:[%s7958_s5 + $0x60] ss:$12 sps:$4 sm:$0xff]  }
0x2522   :  { %v7599_v3 = vadd.f32 %v3309_v50, %v3253_v36  ;;  %v5790_v39 = vpop.f32.mrb[71].mxu0  ;;  %v6207_v36 = vld [vmem:[%s7958_s5 + $0x78] ss:$12 sps:$4 sm:$0xff]  }
0x2523   :  { %v6208_v39 = vld [vmem:[%s7958_s5 + $0xa8] ss:$12 sps:$4 sm:$0xff]  }
0x253f   :  { %v3378_v19 = vpop.f32.mrb[72].mxu0 }
0x2540   :  { %v3379_v7 = vadd.f32 %v4855_v13, %v3378_v19  ;;  %v5817_v48 = vpop.f32.mrb[73].mxu0 }
0x2541   :  { %v3381_v1 = vpop.f32.mrb[74].mxu0 }
0x2542   :  { %v3541_v29 = vpack.c.bf16 %v3379_v7, %v3379_v7  ;;  %v7604_v31 = vadd.f32 %v4855_v13, %v3381_v1  ;;  %v5818_v6 = vpop.f32.mrb[75].mxu0 }
0x2544   :  { %5862 = vmatmul.mubr.msk.bf16.vlgmr.msra.gmra.mrb[124].mxu1 %vm395_vm1, %v3541_v29 }
0x2545   :  { %5867 = vmatprep.mubr.msk.bf16.mxu1 %vm6245_vm0, %v6244_v0 }
0x255f   :  { %v5857_v34 = vpop.f32.mrb[76].mxu0 }
0x2560   :  { %v3533_v35 = vadd.f32 %v5857_v34, %v4857_v26  ;;  %v3524_v37 = vpop.f32.mrb[77].mxu0  ;;  %v6218_v34 = vld [vmem:[%s7958_s5 + $0x68] ss:$12 sps:$4 sm:$0xff]  }
0x2561   :  { %v3525_v38 = vadd.f32 %v4857_v26, %v3524_v37  ;;  %v5858_v40 = vpop.f32.mrb[78].mxu0  ;;  %v6219_v37 = vld [vmem:[%s7958_s5 + $0x98] ss:$12 sps:$4 sm:$0xff]  }
0x2562   :  { %v3536_v50 = vadd.f32 %v5858_v40, %v4857_v26  ;;  %v3527_v5 = vpop.f32.mrb[79].mxu0 }
0x2563   :  { %v3528_v44 = vadd.f32 %v4857_v26, %v3527_v5  ;;  %v6217_v26 = vld [vmem:[%s7958_s5 + $0x38] ss:$12 sps:$4 sm:$0xff]  }
0x2564   :  { %v3540_v24 = vpack.c.bf16 %v3536_v50, %v3533_v35  ;;  %v6052_v35 = vld [vmem:[%s7960_s7 + $0x20] sm:$0xff]  }
0x2565   :  { %v3539_v23 = vpack.c.bf16 %v3528_v44, %v3525_v38  ;;  %5884 = vmatpush3.bf16.msra.mxu0 %v6052_v35  ;;  %v6053_v38 = vld [vmem:[%s7960_s7 + $0x28] sm:$0xff]  }
0x2566   :  { %5885 = vmatprep.subr.bf16.mxu0 %v6244_v0 }
0x2567   :  { %5866 = vmatpush3.bf16.msra.mxu1 %v3539_v23 }
0x2568   :  { %5871 = vmatprep.subr.bf16.mxu1 %v6244_v0 }
0x2569   :  { %5886 = vmatpush3.bf16.msra.mxu0 %v6053_v38 }
0x2617   :  { %v3583_v32 = vpop.f32.mrb[124].mxu1 }
0x2618   :  { %v3589_v60 = vmul.f32 0.17677669, %v3583_v32  ;;  %v5863_v45 = vpop.f32.mrb[125].mxu1  ;;  %v6211_v32 = vld [vmem:[%s7958_s5 + $0x64] ss:$12 sps:$4 sm:$0xff]  }
0x2619   :  { %v3586_v49 = vpop.f32.mrb[126].mxu1  ;;  %v6213_v45 = vld [vmem:[%s7958_s5 + $0x94] ss:$12 sps:$4 sm:$0xff]  }
0x261a   :  { %v5864_v17 = vpop.f32.mrb[127].mxu1  ;;  %v3590_v20 = vsel %vm2595_vm4, %v3589_v60, -inf  ;;  %v6214_v49 = vld [vmem:[%s7958_s5 + $0xac] ss:$12 sps:$4 sm:$0xff]  }
0x261b   :  { %3591 = vmax.xlane.f32.xlu0 %v3590_v20  ;;  %v6215_v17 = vld [vmem:[%s7958_s5 + $0x90] ss:$12 sps:$4 sm:$0xff]   ;;  %v6216_v20 = vld [vmem:[%s7958_s5 + $0x8] ss:$12 sps:$4 sm:$0xff]  }
0x26a8   :  { %v3592_v46 = vpop.xlane.xlu0 %3591 }
0x26a9   :  { %v3593_v47 = vsub.f32 %v3589_v60, %v3592_v46  ;;  %v6212_v60 = vld [vmem:[%s7958_s5 + $0x7c] ss:$12 sps:$4 sm:$0xff]  }
0x26ab   :  { %v3594_v28 = vmul.f32 1.442695, %v3593_v47 }
0x26ad   :  { %6148 = vpow2.f32 %v3594_v28 }
0x26b7   :  { %v6149_v4 = vpop.eup %6148 }
0x26b8   :  { %v3596_v51 = vsel %vm2595_vm4, %v6149_v4, 0.0 }
0x26b9   :  { %3597 = vadd.xlane.f32.xlu1 %v3596_v51 }
0x26ca   :  { %3890 = vrot.lane.b32.xlu1 %v6200_v54, %s6248_s29 }
0x26ce   :  { %3892 = vrot.lane.b32.xlu1 %v6201_v43, %s6248_s29 }
0x26d2   :  { %3819 = vrot.lane.b32.xlu1 %v6202_v21, %s6248_s29 }
0x26d6   :  { %3821 = vrot.lane.b32.xlu1 %v6203_v25, %s6248_s29 }
0x26da   :  { %3823 = vrot.lane.b32.xlu1 %v6204_v61, %s6248_s29 }
0x26de   :  { %3825 = vrot.lane.b32.xlu1 %v6205_v63, %s6248_s29 }
0x26e2   :  { %3827 = vrot.lane.b32.xlu1 %v6206_v14, %s6248_s29 }
0x26e6   :  { %3829 = vrot.lane.b32.xlu1 %v6207_v36, %s6248_s29 }
0x26ea   :  { %3833 = vrot.lane.b32.xlu1 %v6208_v39, %s6248_s29 }
0x26ee   :  { %3967 = vrot.lane.b32.xlu1 %v7300_v62, %s6248_s29  ;;  %v3651_v62 = vsel %vm395_vm1, %v3646_v27, 0 }
0x26f2   :  { %3971 = vrot.lane.b32.xlu1 %v7320_v8, %s6248_s29  ;;  %v3645_v8 = vpack.c.bf16 %v7604_v31, %v7604_v31 }
0x26f6   :  { %3975 = vrot.lane.b32.xlu1 %v7334_v11, %s6248_s29 }
0x26fa   :  { %3979 = vrot.lane.b32.xlu1 %v7348_v57, %s6248_s29 }
0x2746   :  { %v3598_v13 = vpop.xlane.xlu1 %3597 }
0x2747   :  { %6150 = vrcp.f32 %v3598_v13 }
0x274a   :  { %v3891_v40 = vpop.permute.xlu1 %3890 }
0x274e   :  { %v3893_v50 = vpop.permute.xlu1 %3892 }
0x2751   :  { %v6151_v19 = vpop.eup %6150 }
0x2752   :  { %v3600_v7 = vmul.f32 %v6151_v19, %v6149_v4  ;;  %v3820_v44 = vpop.permute.xlu1 %3819 }
0x2754   :  { %v3601_v48 = vpack.c.bf16 %v3600_v7, %v3600_v7 }
0x2756   :  { %5868 = vmatmul.mubr.msk.bf16.vlgmr.msra.gmra.mrb[128].mxu1 %vm2595_vm4, %v3601_v48  ;;  %v3822_v46 = vpop.permute.xlu1 %3821 }
0x2757   :  { %5872 = vmatpush3.bf16.xpose.msra.mxu1 %v3651_v62  ;;  %5873 = vmatprep.mubr.msk.bf16.mxu1 %vm6245_vm0, %v6244_v0 }
0x2758   :  { %5877 = vmatprep.subr.bf16.mxu1 %v6244_v0 }
0x275a   :  { %v3824_v54 = vpop.permute.xlu1 %3823 }
0x275e   :  { %5874 = vmatmul.mubr.msk.bf16.vlgmr.msra.gmra.mrb[132].mxu1 %vm395_vm1, %v3645_v8  ;;  %v3826_v21 = vpop.permute.xlu1 %3825 }
0x275f   :  { %5878 = vmatpush3.bf16.msra.mxu1 %v3540_v24  ;;  %5879 = vmatprep.mubr.msk.bf16.mxu1 %vm6245_vm0, %v6244_v0 }
0x2760   :  { %5891 = vmatprep.subr.bf16.mxu1 %v6244_v0 }
0x2762   :  { %v3828_v61 = vpop.permute.xlu1 %3827 }
0x2766   :  { %v3830_v14 = vpop.permute.xlu1 %3829 }
0x276a   :  { %v3834_v39 = vpop.permute.xlu1 %3833 }
0x2829   :  { %v7677_v11 = vpop.f32.mrb[128].mxu1 }
0x282a   :  { %v5869_v57 = vpop.f32.mrb[129].mxu1 }
0x282b   :  { %v3642_v30 = vpop.f32.mrb[130].mxu1 }
0x282c   :  { %v5870_v56 = vpop.f32.mrb[131].mxu1 }
0x2831   :  { %v3687_v27 = vpop.f32.mrb[132].mxu1 }
0x2832   :  { %v3693_v1 = vmul.f32 0.17677669, %v3687_v27  ;;  %v5875_v29 = vpop.f32.mrb[133].mxu1 }
0x2833   :  { %v3690_v6 = vpop.f32.mrb[134].mxu1 }
0x2834   :  { %v5876_v55 = vpop.f32.mrb[135].mxu1  ;;  %v3694_v31 = vsel %vm2595_vm4, %v3693_v1, -inf }
0x2835   :  { %3695 = vmax.xlane.f32.xlu0 %v3694_v31  ;;  %v4866_v55 = vld [vmem:[%s7964_s11 + $0x13] ss:$0 sm:$0xff] }
0x28c2   :  { %v3696_v59 = vpop.xlane.xlu0 %3695 }
0x28c3   :  { %v3697_v10 = vsub.f32 %v3693_v1, %v3696_v59 }
0x28c5   :  { %v3698_v33 = vmul.f32 1.442695, %v3697_v10 }
0x28c7   :  { %6152 = vpow2.f32 %v3698_v33 }
0x28d1   :  { %v6153_v12 = vpop.eup %6152 }
0x28d2   :  { %v3700_v22 = vsel %vm2595_vm4, %v6153_v12, 0.0 }
0x28d3   :  { %3701 = vadd.xlane.f32.xlu0 %v3700_v22 }
0x28e9   :  { %3888 = vrot.lane.b32.xlu0 %v6209_v42, %s6248_s29 }
0x28ed   :  { %3894 = vrot.lane.b32.xlu0 %v6210_v58, %s6248_s29 }
0x28f1   :  { %3896 = vrot.lane.b32.xlu0 %v6211_v32, %s6248_s29 }
0x28f5   :  { %3898 = vrot.lane.b32.xlu0 %v6212_v60, %s6248_s29 }
0x28f9   :  { %3900 = vrot.lane.b32.xlu0 %v6213_v45, %s6248_s29 }
0x28fd   :  { %3902 = vrot.lane.b32.xlu0 %v6214_v49, %s6248_s29  ;;  %v3968_v49 = vpop.permute.xlu1 %3967 }
0x2901   :  { %3831 = vrot.lane.b32.xlu0 %v6215_v17, %s6248_s29 }
0x2905   :  { %3965 = vrot.lane.b32.xlu0 %v6216_v20, %s6248_s29  ;;  %v3972_v20 = vpop.permute.xlu1 %3971 }
0x2909   :  { %3969 = vrot.lane.b32.xlu0 %v6217_v26, %s6248_s29 }
0x290d   :  { %3973 = vrot.lane.b32.xlu0 %v6218_v34, %s6248_s29  ;;  %v3976_v34 = vpop.permute.xlu1 %3975 }
0x2911   :  { %3977 = vrot.lane.b32.xlu0 %v6219_v37, %s6248_s29  ;;  %v3980_v37 = vpop.permute.xlu1 %3979 }
0x2960   :  { %v3702_v5 = vpop.xlane.xlu0 %3701 }
0x2961   :  { %6154 = vrcp.f32 %v3702_v5 }
0x2964   :  { %v3889_v24 = vpop.permute.xlu0 %3888 }
0x2965   :  { %5911 = vmatprep.subr.bf16.mxu0 %v3889_v24 }
0x2968   :  { %v3895_v23 = vpop.permute.xlu0 %3894 }
0x296b   :  { %v6155_v47 = vpop.eup %6154 }
0x296c   :  { %v3704_v28 = vmul.f32 %v6155_v47, %v6153_v12  ;;  %v3897_v51 = vpop.permute.xlu0 %3896 }
0x296e   :  { %v3705_v4 = vpack.c.bf16 %v3704_v28, %v3704_v28 }
0x2970   :  { %5880 = vmatmul.mubr.msk.bf16.vlgmr.msra.gmra.mrb[136].mxu1 %vm2595_vm4, %v3705_v4  ;;  %v3899_v43 = vpop.permute.xlu0 %3898 }
0x2971   :  { %5892 = vmatpush3.bf16.msra.mxu1 %v3820_v44  ;;  %5907 = vmatprep.mubr.msk.bf16.mxu1 %vm6245_vm0, %v6244_v0 }
0x2972   :  { %5893 = vmatprep.subr.bf16.mxu1 %v6244_v0 }
0x2974   :  { %v3901_v25 = vpop.permute.xlu0 %3900 }
0x2975   :  { %5894 = vmatpush3.bf16.msra.mxu1 %v3822_v46 }
0x2976   :  { %5895 = vmatprep.subr.bf16.mxu1 %v6244_v0 }
0x2978   :  { %v3903_v63 = vpop.permute.xlu0 %3902 }
0x2979   :  { %5896 = vmatpush3.bf16.msra.mxu1 %v3824_v54 }
0x297a   :  { %5897 = vmatprep.subr.bf16.mxu1 %v6244_v0 }
0x297c   :  { %v3832_v36 = vpop.permute.xlu0 %3831 }
0x297d   :  { %5898 = vmatpush3.bf16.msra.mxu1 %v3826_v21 }
0x297e   :  { %5899 = vmatprep.subr.bf16.mxu1 %v6244_v0 }
0x2980   :  { %v3966_v45 = vpop.permute.xlu0 %3965 }
0x2981   :  { %5900 = vmatpush3.bf16.msra.mxu1 %v3828_v61 }
0x2982   :  { %5901 = vmatprep.subr.bf16.mxu1 %v6244_v0 }
0x2984   :  { %v3970_v17 = vpop.permute.xlu0 %3969 }
0x2985   :  { %5902 = vmatpush3.bf16.msra.mxu1 %v3830_v14 }
0x2986   :  { %5903 = vmatprep.subr.bf16.mxu1 %v6244_v0 }
0x2988   :  { %v3974_v26 = vpop.permute.xlu0 %3973 }
0x2989   :  { %5904 = vmatpush3.bf16.msra.mxu1 %v3832_v36 }
0x298a   :  { %5905 = vmatprep.subr.bf16.mxu1 %v6244_v0 }
0x298c   :  { %v3978_v35 = vpop.permute.xlu0 %3977 }
0x298d   :  { %5906 = vmatpush3.bf16.msra.mxu1 %v3834_v39 }
0x298e   :  { %5931 = vmatprep.subr.bf16.mxu1 %v3966_v45 }
0x2990   :  { %5908 = vmatmul.mubr.bf16.vlgmr.msra.gmra.mrb[140].mxu1 %v7270_v41 }
0x2991   :  { %5947 = vmatprep.mubr.bf16.mxu1 %v7304_v9  ;;  %5932 = vmatpush3.bf16.msra.mxu1 %v3966_v45 }
0x2992   :  { %5933 = vmatprep.subr.bf16.mxu1 %v3968_v49 }
0x2995   :  { %5934 = vmatpush3.bf16.msra.mxu1 %v3968_v49 }
0x2996   :  { %5935 = vmatprep.subr.bf16.mxu1 %v3970_v17 }
0x2999   :  { %5936 = vmatpush3.bf16.msra.mxu1 %v3970_v17 }
0x299a   :  { %5937 = vmatprep.subr.bf16.mxu1 %v3972_v20 }
0x299d   :  { %5938 = vmatpush3.bf16.msra.mxu1 %v3972_v20  ;;  %v4875_v20 = vld [vmem:[%s7965_s12 + $0x1] ss:$0 sm:$0xff] }
0x299e   :  { %5939 = vmatprep.subr.bf16.mxu1 %v3974_v26 }
0x29a1   :  { %5940 = vmatpush3.bf16.msra.mxu1 %v3974_v26 }
0x29a2   :  { %5941 = vmatprep.subr.bf16.mxu1 %v3976_v34 }
0x29a5   :  { %5942 = vmatpush3.bf16.msra.mxu1 %v3976_v34 }
0x29a6   :  { %5943 = vmatprep.subr.bf16.mxu1 %v3978_v35 }
0x29a9   :  { %5944 = vmatpush3.bf16.msra.mxu1 %v3978_v35 }
0x29aa   :  { %5945 = vmatprep.subr.bf16.mxu1 %v3980_v37 }
0x29ad   :  { %5946 = vmatpush3.bf16.msra.mxu1 %v3980_v37 }
0x29ae   :  { %5975 = vmatprep.subr.bf16.mxu1 %v6244_v0 }
0x29b0   :  { %5948 = vmatmul.mubr.bf16.vlgmr.msra.gmra.mrb[144].mxu1 %v7354_v52 }
0x29b1   :  { %5979 = vmatprep.mubr.msk.bf16.mxu1 %vm6245_vm0, %v6244_v0 }
0x2a43   :  { %v3743_v13 = vpop.f32.mrb[136].mxu1 }
0x2a44   :  { %v3753_v19 = vpack.c.bf16 %v3743_v13, %v7677_v11  ;;  %v5881_v7 = vpop.f32.mrb[137].mxu1 }
0x2a45   :  { %v3746_v48 = vpop.f32.mrb[138].mxu1 }
0x2a46   :  { %v5882_v62 = vpop.f32.mrb[139].mxu1  ;;  %5888 = vmatmul.mubr.msk.bf16.vlgmr.msra.gmra.mrb[80].mxu0 %vm395_vm1, %v3753_v19 }
0x2a47   :  { %5912 = vmatpush3.bf16.msra.mxu0 %v3889_v24  ;;  %5927 = vmatprep.mubr.bf16.mxu0 %v7219_v2  ;;  %v4865_v2 = vld [vmem:[%s7964_s11 + $0xf] ss:$0 sm:$0xff] }
0x2a48   :  { %5913 = vmatprep.subr.bf16.mxu0 %v3891_v40 }
0x2a4b   :  { %5914 = vmatpush3.bf16.msra.mxu0 %v3891_v40 }
0x2a4c   :  { %5915 = vmatprep.subr.bf16.mxu0 %v3893_v50 }
0x2a4f   :  { %5916 = vmatpush3.bf16.msra.mxu0 %v3893_v50 }
0x2a50   :  { %5917 = vmatprep.subr.bf16.mxu0 %v3895_v23 }
0x2a53   :  { %5918 = vmatpush3.bf16.msra.mxu0 %v3895_v23  ;;  %v4867_v23 = vld [vmem:[%s7964_s11 + $0x17] ss:$0 sm:$0xff]  ;;  %s6250_s11 = smov [#allocation2]  }
0x2a54   :  { %5919 = vmatprep.subr.bf16.mxu0 %v3897_v51  ;;  %s4733_s24 = sshll.u32 %s6250_s11, 4  ;;  %s4734_s24 = int_to_ptr.vmem [resolvable:$true] %s4733_s24 }
0x2a55   :  { %s6220_s0 = scalar_lea.vmem %s4734_s24, 256  ;;  %p6225_p1 = scmp.lt.s32.totalorder %s4734_s24, %s4734_s24 }
0x2a56   :  { %p6221_p0 = scmp.ne.s32.totalorder %s4734_s24, %s6220_s0  ;;  %p6226_p2 = scmp.lt.s32.totalorder %s6220_s0, %s6220_s0 }
0x2a57   :  { %5920 = vmatpush3.bf16.msra.mxu0 %v3897_v51 }
0x2a58   :  { %5921 = vmatprep.subr.bf16.mxu0 %v3899_v43  ;;  %p6227_p3 = por %p6226_p2, %p6225_p1 }
0x2a5a   :  { %p6228_p4 = pnand %p6227_p3, %p6221_p0 }
0x2a5b   :  { %5922 = vmatpush3.bf16.msra.mxu0 %v3899_v43 }
0x2a5c   :  { %5923 = vmatprep.subr.bf16.mxu0 %v3901_v25 }
0x2a5f   :  { %5924 = vmatpush3.bf16.msra.mxu0 %v3901_v25 }
0x2a60   :  { %5925 = vmatprep.subr.bf16.mxu0 %v3903_v63 }
0x2a63   :  { %v3877_v41 = vpop.f32.mrb[140].mxu1  ;;  %5926 = vmatpush3.bf16.msra.mxu0 %v3903_v63 }
0x2a64   :  { %v5909_v9 = vpop.f32.mrb[141].mxu1  ;;  %5951 = vmatprep.subr.bf16.mxu0 %v6244_v0  ;;  %v3878_v32 = vadd.f32 %v4865_v2, %v3877_v41 }
0x2a65   :  { %v3880_v8 = vpop.f32.mrb[142].mxu1 }
0x2a66   :  { %v7751_v11 = vadd.f32 %v4865_v2, %v3880_v8  ;;  %v5910_v57 = vpop.f32.mrb[143].mxu1  ;;  %5928 = vmatmul.mubr.bf16.vlgmr.msra.gmra.mrb[84].mxu0 %v7223_v53  ;;  %v4040_v60 = vpack.c.bf16 %v3878_v32, %v3878_v32 }
0x2a67   :  { %5953 = vmatprep.mubr.msk.bf16.mxu0 %vm6245_vm0, %v6244_v0 }
0x2a68   :  { %v4144_v41 = vpack.c.bf16 %v7751_v11, %v7751_v11 }
0x2a83   :  { %v5949_v46 = vpop.f32.mrb[144].mxu1 }
0x2a84   :  { %v4032_v47 = vadd.f32 %v5949_v46, %v4867_v23  ;;  %v4023_v28 = vpop.f32.mrb[145].mxu1 }
0x2a85   :  { %v5950_v4 = vpop.f32.mrb[146].mxu1  ;;  %v4024_v63 = vadd.f32 %v4867_v23, %v4023_v28 }
0x2a86   :  { %v4035_v52 = vadd.f32 %v5950_v4, %v4867_v23  ;;  %v4026_v14 = vpop.f32.mrb[147].mxu1 }
0x2a87   :  { %v4027_v36 = vadd.f32 %v4867_v23, %v4026_v14  ;;  %v6073_v14 = vld [vmem:[%s7961_s8 + $0x54] ss:$8 sps:$4 sm:$0xff]  }
0x2a88   :  { %v4039_v51 = vpack.c.bf16 %v4035_v52, %v4032_v47 }
0x2a89   :  { %v4038_v39 = vpack.c.bf16 %v4027_v36, %v4024_v63  ;;  %v6068_v63 = vld [vmem:[%s7961_s8 + $0x40] ss:$8 sps:$4 sm:$0xff]   ;;  %v6071_v36 = vld [vmem:[%s7961_s8 + $0x50] ss:$8 sps:$4 sm:$0xff]  }
0x2b19   :  { %v3803_v30 = vpop.f32.mrb[80].mxu0 }
0x2b1a   :  { %v7757_v56 = vadd.f32 %v3803_v30, %v7597_v18  ;;  %v5889_v27 = vpop.f32.mrb[81].mxu0 }
0x2b1b   :  { %v3806_v1 = vpop.f32.mrb[82].mxu0 }
0x2b1c   :  { %v7760_v29 = vadd.f32 %v3806_v1, %v7599_v3  ;;  %v5890_v6 = vpop.f32.mrb[83].mxu0 }
0x2b39   :  { %v5929_v31 = vpop.f32.mrb[84].mxu0 }
0x2b3a   :  { %v7765_v59 = vadd.f32 %v5929_v31, %v4866_v55  ;;  %v3946_v53 = vpop.f32.mrb[85].mxu0 }
0x2b3b   :  { %v5930_v10 = vpop.f32.mrb[86].mxu0  ;;  %v3947_v18 = vadd.f32 %v4866_v55, %v3946_v53 }
0x2b3c   :  { %v7767_v33 = vadd.f32 %v5930_v10, %v4866_v55  ;;  %v3949_v12 = vpop.f32.mrb[87].mxu0 }
0x2b3d   :  { %v3950_v22 = vadd.f32 %v4866_v55, %v3949_v12  ;;  %v6054_v12 = vld [vmem:[%s7960_s7 + $0x30] sm:$0xff]  }
0x2b3e   :  { %v4145_v42 = vpack.c.bf16 %v7767_v33, %v7765_v59  ;;  %5976 = vmatpush3.bf16.msra.mxu1 %v6054_v12 }
0x2b3f   :  { %v4041_v3 = vpack.c.bf16 %v3950_v22, %v3947_v18  ;;  %5977 = vmatprep.subr.bf16.mxu1 %v6244_v0 }
0x2b40   :  { %v4150_v62 = vsel %vm395_vm1, %v4145_v42, 0 }
0x2b41   :  { %v4046_v58 = vsel %vm395_vm1, %v4041_v3, 0 }
0x2b42   :  { %5952 = vmatpush3.bf16.xpose.msra.mxu0 %v4046_v58  ;;  %v6055_v58 = vld [vmem:[%s7960_s7 + $0x38] sm:$0xff]  }
0x2b43   :  { %5957 = vmatprep.subr.bf16.mxu0 %v6244_v0  ;;  %5978 = vmatpush3.bf16.msra.mxu1 %v6055_v58 }
0x2b49   :  { %5954 = vmatmul.mubr.msk.bf16.vlgmr.msra.gmra.mrb[88].mxu0 %vm395_vm1, %v4040_v60 }
0x2b4a   :  { %5959 = vmatprep.mubr.msk.bf16.mxu0 %vm6245_vm0, %v6244_v0  ;;  %5958 = vmatpush3.bf16.msra.mxu0 %v4038_v39  ;;  %v6076_v39 = vld [vmem:[%s7961_s8 + $0x64] ss:$8 sps:$4 sm:$0xff]  }
0x2b4b   :  { %5963 = vmatprep.subr.bf16.mxu0 %v6244_v0 }
0x2c1c   :  { %v4082_v38 = vpop.f32.mrb[88].mxu0 }
0x2c1d   :  { %v4088_v40 = vmul.f32 0.17677669, %v4082_v38  ;;  %v5955_v50 = vpop.f32.mrb[89].mxu0 }
0x2c1e   :  { %v4085_v5 = vpop.f32.mrb[90].mxu0 }
0x2c1f   :  { %v5956_v44 = vpop.f32.mrb[91].mxu0  ;;  %v4089_v24 = vsel %vm2595_vm4, %v4088_v40, -inf }
0x2c20   :  { %4090 = vmax.xlane.f32.xlu0 %v4089_v24  ;;  %v6056_v24 = vld [vmem:[%s7961_s8] ss:$8 sps:$4 sm:$0xff]  }
0x2cad   :  { %v4091_v54 = vpop.xlane.xlu0 %4090 }
0x2cae   :  { %v4092_v43 = vsub.f32 %v4088_v40, %v4091_v54  ;;  %v6064_v54 = vld [vmem:[%s7961_s8 + $0x24] ss:$8 sps:$4 sm:$0xff]  }
0x2cb0   :  { %v4093_v21 = vmul.f32 1.442695, %v4092_v43  ;;  %v6062_v43 = vld [vmem:[%s7961_s8 + $0x20] ss:$8 sps:$4 sm:$0xff]  }
0x2cb2   :  { %6156 = vpow2.f32 %v4093_v21  ;;  %v6067_v21 = vld [vmem:[%s7961_s8 + $0x34] ss:$8 sps:$4 sm:$0xff]  }
0x2cbc   :  { %v6157_v25 = vpop.eup %6156 }
0x2cbd   :  { %v4095_v61 = vsel %vm2595_vm4, %v6157_v25, 0.0 }
0x2cbe   :  { %4096 = vadd.xlane.f32.xlu1 %v4095_v61  ;;  %v6070_v61 = vld [vmem:[%s7961_s8 + $0x44] ss:$8 sps:$4 sm:$0xff]  }
0x2d4b   :  { %v4097_v13 = vpop.xlane.xlu1 %4096 }
0x2d4c   :  { %6158 = vrcp.f32 %v4097_v13  ;;  %v6074_v13 = vld [vmem:[%s7961_s8 + $0x60] ss:$8 sps:$4 sm:$0xff]  }
0x2d56   :  { %v6159_v19 = vpop.eup %6158 }
0x2d57   :  { %v4099_v7 = vmul.f32 %v6159_v19, %v6157_v25  ;;  %v6065_v25 = vld [vmem:[%s7961_s8 + $0x30] ss:$8 sps:$4 sm:$0xff]   ;;  %v6079_v19 = vld [vmem:[%s7961_s8 + $0x74] ss:$8 sps:$4 sm:$0xff]  }
0x2d59   :  { %v4100_v48 = vpack.c.bf16 %v4099_v7, %v4099_v7  ;;  %v6077_v7 = vld [vmem:[%s7961_s8 + $0x70] ss:$8 sps:$4 sm:$0xff]  }
0x2d5b   :  { %5960 = vmatmul.mubr.msk.bf16.vlgmr.msra.gmra.mrb[92].mxu0 %vm2595_vm4, %v4100_v48  ;;  %v6249_v48 = vmov 0  }
0x2d5c   :  { %5964 = vmatpush3.bf16.xpose.msra.mxu0 %v4150_v62  ;;  %5965 = vmatprep.mubr.msk.bf16.mxu0 %vm6245_vm0, %v6244_v0  ;;  %v6080_v62 = vld [vmem:[%s7962_s9 + $0x40] sm:$0xff]  }
0x2d5d   :  { %5969 = vmatprep.subr.bf16.mxu0 %v6244_v0  ;;  %5225 = vmatprep.subr.bf16.mxu1 %v6080_v62 }
0x2d63   :  { %5966 = vmatmul.mubr.msk.bf16.vlgmr.msra.gmra.mrb[96].mxu0 %vm395_vm1, %v4144_v41  ;;  %v6081_v41 = vld [vmem:[%s7962_s9] sm:$0xff]  }
0x2d64   :  { %5970 = vmatpush3.bf16.msra.mxu0 %v4039_v51  ;;  %5971 = vmatprep.mubr.msk.bf16.mxu0 %vm6245_vm0, %v6244_v0 }
0x2e2e   :  { %v4138_v9 = vpop.f32.mrb[92].mxu0 }
0x2e2f   :  { %v5961_v2 = vpop.f32.mrb[93].mxu0 }
0x2e30   :  { %v4141_v8 = vpop.f32.mrb[94].mxu0  ;;  %v6083_v2 = vld [vmem:[%s7962_s9 + $0x8] sm:$0xff]  }
0x2e31   :  { %v5962_v57 = vpop.f32.mrb[95].mxu0  ;;  %v6084_v8 = vld [vmem:[%s7962_s9 + $0x50] sm:$0xff]  }
0x2e32   :  { %v6085_v57 = vld [vmem:[%s7962_s9 + $0x10] sm:$0xff]  }
0x2e36   :  { %v4186_v30 = vpop.f32.mrb[96].mxu0 }
0x2e37   :  { %v4192_v27 = vmul.f32 0.17677669, %v4186_v30  ;;  %v5967_v1 = vpop.f32.mrb[97].mxu0  ;;  %v6086_v30 = vld [vmem:[%s7962_s9 + $0x58] sm:$0xff]  }
0x2e38   :  { %v4189_v6 = vpop.f32.mrb[98].mxu0  ;;  %v6088_v1 = vld [vmem:[%s7962_s9 + $0x60] sm:$0xff]  }
0x2e39   :  { %v5968_v55 = vpop.f32.mrb[99].mxu0  ;;  %v4193_v31 = vsel %vm2595_vm4, %v4192_v27, -inf  ;;  %v6089_v6 = vld [vmem:[%s7962_s9 + $0x20] sm:$0xff]  }
0x2e3a   :  { %4194 = vmax.xlane.f32.xlu0 %v4193_v31  ;;  %v6090_v55 = vld [vmem:[%s7962_s9 + $0x68] sm:$0xff]  }
0x2ec7   :  { %v4195_v59 = vpop.xlane.xlu0 %4194 }
0x2ec8   :  { %v4196_v11 = vsub.f32 %v4192_v27, %v4195_v59  ;;  %v6087_v27 = vld [vmem:[%s7962_s9 + $0x18] sm:$0xff]  }
0x2eca   :  { %v4197_v53 = vmul.f32 1.442695, %v4196_v11 }
0x2ecc   :  { %6160 = vpow2.f32 %v4197_v53 }
0x2ed6   :  { %v6161_v10 = vpop.eup %6160 }
0x2ed7   :  { %v4199_v33 = vsel %vm2595_vm4, %v6161_v10, 0.0 }
0x2ed8   :  { %4200 = vadd.xlane.f32.xlu0 %v4199_v33 }
0x2f65   :  { %v4201_v18 = vpop.xlane.xlu0 %4200 }
0x2f66   :  { %6162 = vrcp.f32 %v4201_v18  ;;  %v4876_v18 = vld [vmem:[%s7965_s12 + $0x5] ss:$0 sm:$0xff] }
0x2f70   :  { %v6163_v22 = vpop.eup %6162 }
0x2f71   :  { %v4203_v42 = vmul.f32 %v6163_v22, %v6161_v10 }
0x2f73   :  { %v4204_v3 = vpack.c.bf16 %v4203_v42, %v4203_v42 }
0x2f75   :  { %5972 = vmatmul.mubr.msk.bf16.vlgmr.msra.gmra.mrb[100].mxu0 %vm2595_vm4, %v4204_v3 }
0x2f76   :  { %4497 = vmatprep.mubr.bf16.mxu0 %v6249_v48 }
0x3048   :  { %v4242_v32 = vpop.f32.mrb[100].mxu0 }
0x3049   :  { %v4252_v60 = vpack.c.bf16 %v4242_v32, %v4138_v9  ;;  %v5973_v45 = vpop.f32.mrb[101].mxu0  ;;  %v6082_v9 = vld [vmem:[%s7962_s9 + $0x48] sm:$0xff]   ;;  %v4877_v32 = vld [vmem:[%s7965_s12 + $0x6] ss:$0 sm:$0xff] }
0x304a   :  { %v4245_v49 = vpop.f32.mrb[102].mxu0 }
0x304b   :  { %v5974_v17 = vpop.f32.mrb[103].mxu0  ;;  %5980 = vmatmul.mubr.msk.bf16.vlgmr.msra.gmra.mrb[148].mxu1 %vm395_vm1, %v4252_v60 }
0x304c   :  { %5226 = vmatpush3.bf16.msra.mxu1 %v6081_v41 }
0x304d   :  { %5227 = vmatprep.subr.bf16.mxu1 %v6082_v9 }
0x3050   :  { %5228 = vmatpush3.bf16.msra.mxu1 %v6083_v2 }
0x3051   :  { %5229 = vmatprep.subr.bf16.mxu1 %v6084_v8 }
0x3054   :  { %5230 = vmatpush3.bf16.msra.mxu1 %v6085_v57 }
0x3055   :  { %5231 = vmatprep.subr.bf16.mxu1 %v6086_v30 }
0x3058   :  { %5232 = vmatpush3.bf16.msra.mxu1 %v6087_v27 }
0x3059   :  { %5233 = vmatprep.subr.bf16.mxu1 %v6088_v1 }
0x305c   :  { %5234 = vmatpush3.bf16.msra.mxu1 %v6089_v6 }
0x305d   :  { %5235 = vmatprep.subr.bf16.mxu1 %v6090_v55 }
0x311e   :  { %v4302_v0 = vpop.f32.mrb[148].mxu1 }
0x311f   :  { %v4309_v26 = vadd.f32 %v4302_v0, %v7757_v56  ;;  %v5981_v34 = vpop.f32.mrb[149].mxu1  ;;  %v6058_v56 = vld [vmem:[%s7961_s8 + $0x4] ss:$8 sps:$4 sm:$0xff]  }
0x3120   :  { %v4305_v35 = vpop.f32.mrb[150].mxu1  ;;  %4465 = vmatprep.subr.bf16.mxu0 %v6058_v56  ;;  %v6091_v0 = vld [vmem:[%s7962_s9 + $0x28] sm:$0xff]   ;;  %v6094_v34 = vld [vmem:[%s7962_s9 + $0x78] sm:$0xff]  }
0x3121   :  { %v4316_v37 = vadd.f32 %v4875_v20, %v4309_v26  ;;  %v4310_v38 = vadd.f32 %v4305_v35, %v7760_v29  ;;  %v5982_v40 = vpop.f32.mrb[151].mxu1  ;;  %v6061_v29 = vld [vmem:[%s7961_s8 + $0x14] ss:$8 sps:$4 sm:$0xff]   ;;  %4466 = vmatpush1.bf16.msra.mxu0 %v6056_v24  ;;  %5236 = vmatpush3.bf16.msra.mxu1 %v6091_v0 }
0x3122   :  { %4467 = vmatprep.subr.bf16.mxu0 %v6061_v29  ;;  %v6093_v26 = vld [vmem:[%s7962_s9 + $0x30] sm:$0xff]   ;;  %v6095_v35 = vld [vmem:[%s7962_s9 + $0x38] sm:$0xff]  }
0x3123   :  { %v4317_v50 = vadd.f32 %v4875_v20, %v4310_v38  ;;  %v4318_v5 = vadd.f32 %v4316_v37, %v7258_v15  ;;  %v6059_v15 = vld [vmem:[%s7961_s8 + $0x10] ss:$8 sps:$4 sm:$0xff]   ;;  %v4375_v37 = vlaneseq }
0x3124   :  { %v6092_v20 = vld [vmem:[%s7962_s9 + $0x70] sm:$0xff]  }
0x3125   :  { %4320 = vadd.xlane.f32.xlu0 %v4318_v5  ;;  %v4319_v44 = vadd.f32 %v4317_v50, %v7260_v16  ;;  %4468 = vmatpush1.bf16.msra.mxu0 %v6059_v15  ;;  %v4376_v38 = vshrl.u32 %v4375_v37, 7  ;;  %v4373_v50 = vld [vmem:[%s7963_s10] sm:$0x3] }
0x3126   :  { %4469 = vmatprep.subr.bf16.mxu0 %v6064_v54  ;;  %5237 = vmatprep.subr.bf16.mxu1 %v6092_v20 }
0x3127   :  { %4322 = vadd.xlane.f32.xlu1 %v4319_v44  ;;  %5238 = vmatpush3.bf16.msra.mxu1 %v6093_v26  ;;  %v4377_v40 = vsub.s32 0, %v4376_v38 }
0x3128   :  { %5239 = vmatprep.subr.bf16.mxu1 %v6094_v34 }
0x3129   :  { %4470 = vmatpush1.bf16.msra.mxu0 %v6062_v43 }
0x312a   :  { %4471 = vmatprep.subr.bf16.mxu0 %v6067_v21 }
0x312b   :  { %5240 = vmatpush3.bf16.msra.mxu1 %v6095_v35 }
0x312d   :  { %4472 = vmatpush1.bf16.msra.mxu0 %v6065_v25 }
0x312e   :  { %4473 = vmatprep.subr.bf16.mxu0 %v6070_v61  ;;  %v4894_v61 = vld [vmem:[%s7965_s12 + $0x2] ss:$0 sm:$0xff] }
0x3131   :  { %4474 = vmatpush1.bf16.msra.mxu0 %v6068_v63 }
0x3132   :  { %4475 = vmatprep.subr.bf16.mxu0 %v6073_v14 }
0x3135   :  { %4476 = vmatpush1.bf16.msra.mxu0 %v6071_v36 }
0x3136   :  { %4477 = vmatprep.subr.bf16.mxu0 %v6076_v39 }
0x3139   :  { %4478 = vmatpush1.bf16.msra.mxu0 %v6074_v13 }
0x313a   :  { %4479 = vmatprep.subr.bf16.mxu0 %v6079_v19 }
0x313d   :  { %4480 = vmatpush1.bf16.msra.mxu0 %v6077_v7 }
0x31b2   :  { %v4321_v16 = vpop.xlane.xlu0 %4320 }
0x31b3   :  { %v4324_v23 = vmul.f32 0.0078125, %v4321_v16 }
0x31b4   :  { %v4323_v46 = vpop.xlane.xlu1 %4322 }
0x31b5   :  { %v7829_v47 = vsub.f32 %v4318_v5, %v4324_v23  ;;  %v4325_v28 = vmul.f32 0.0078125, %v4323_v46  ;;  %v4381_v5 = vsub.s32 1, %v4376_v38 }
0x31b7   :  { %v7831_v4 = vsub.f32 %v4319_v44, %v4325_v28  ;;  %v4328_v52 = vmul.f32 %v7829_v47, %v7829_v47  ;;  %v4378_v44 = vrot.slane %v4373_v50, %v4377_v40  ;;  %v4382_v24 = vrot.slane %v4373_v50, %v4381_v5 }
0x31b9   :  { %4330 = vadd.xlane.f32.xlu0 %v4328_v52  ;;  %v4329_v51 = vmul.f32 %v7831_v4, %v7831_v4 }
0x31bb   :  { %4332 = vadd.xlane.f32.xlu1 %v4329_v51 }
0x3246   :  { %v4331_v31 = vpop.xlane.xlu0 %4330 }
0x3247   :  { %v4334_v59 = vmul.f32 0.0078125, %v4331_v31 }
0x3248   :  { %v4333_v11 = vpop.xlane.xlu1 %4332 }
0x3249   :  { %v4336_v53 = vadd.f32 1e-05, %v4334_v59  ;;  %v4335_v10 = vmul.f32 0.0078125, %v4333_v11 }
0x324b   :  { %6164 = vrsqrt.f32 %v4336_v53  ;;  %v4337_v33 = vadd.f32 1e-05, %v4335_v10 }
0x324d   :  { %6166 = vrsqrt.f32 %v4337_v33  ;;  %v4911_v33 = vld [vmem:[%s7965_s12 + $0x7] ss:$0 sm:$0xff] }
0x3255   :  { %v6165_v12 = vpop.eup %6164 }
0x3256   :  { %v4340_v22 = vmul.f32 %v6165_v12, %v7829_v47 }
0x3257   :  { %v6167_v42 = vpop.eup %6166 }
0x3258   :  { %v4341_v3 = vmul.f32 %v6167_v42, %v7831_v4  ;;  %v4347_v58 = vmul.f32 %v4876_v18, %v4340_v22  ;;  %v4912_v22 = vld [vmem:[%s7965_s12 + $0x8] ss:$0 sm:$0xff] }
0x325a   :  { %v4348_v60 = vmul.f32 %v4876_v18, %v4341_v3  ;;  %v4354_v45 = vadd.f32 %v4877_v32, %v4347_v58 }
0x325c   :  { %v4355_v49 = vadd.f32 %v4877_v32, %v4348_v60 }
0x325e   :  { %v4356_v17 = vpack.c.bf16 %v4355_v49, %v4354_v45 }
0x3260   :  { %4498 = vmatmul.mubr.bf16.vlgmr.msra.gmra.mrb[104].mxu0 %v4356_v17 }
0x3333   :  { %v4499_v56 = vpop.f32.mrb[104].mxu0 }
0x3334   :  { %v4500_v29 = vadd.f32 %v4499_v56, %v4378_v44  ;;  %v4501_v15 = vpop.f32.mrb[105].mxu0 }
0x3335   :  { %v4502_v16 = vadd.f32 %v4501_v15, %v4382_v24  ;;  %v4503_v23 = vpop.f32.mrb[106].mxu0 }
0x3336   :  { %v4504_v46 = vadd.f32 %v4503_v23, %v4378_v44  ;;  %v4505_v47 = vpop.f32.mrb[107].mxu0  ;;  %v4508_v4 = vmax.f32 %v4500_v29, 0.0 }
0x3337   :  { %v4506_v28 = vadd.f32 %v4505_v47, %v4382_v24  ;;  %v4509_v51 = vmax.f32 %v4502_v16, 0.0 }
0x3338   :  { %v4510_v52 = vmax.f32 %v4504_v46, 0.0 }
0x3339   :  { %v4511_v54 = vmax.f32 %v4506_v28, 0.0 }
0x333a   :  { %v4512_v43 = vpack.c.bf16 %v4510_v52, %v4508_v4 }
0x333b   :  { %v4513_v21 = vpack.c.bf16 %v4511_v54, %v4509_v51 }
0x333d   :  { %4679 = vmatprep.mubr.bf16.mxu1 %v4513_v21 }
0x333e   :  { %4680 = vmatmul.mubr.bf16.vlgmr.msra.gmra.mrb[152].mxu1 %v4512_v43 }
0x3411   :  { %v5241_v25 = vpop.f32.mrb[152].mxu1 }
0x3412   :  { %v5242_v63 = vpop.f32.mrb[153].mxu1 }
0x3413   :  { %v5243_v14 = vadd.f32 %v5242_v63, %v5241_v25  ;;  %v5244_v36 = vpop.f32.mrb[154].mxu1 }
0x3414   :  { %v5245_v39 = vpop.f32.mrb[155].mxu1 }
0x3415   :  { %v4682_v13 = vadd.f32 %v5243_v14, %v4894_v61  ;;  %v5246_v19 = vadd.f32 %v5245_v39, %v5244_v36 }
0x3417   :  { %v4685_v7 = vadd.f32 %v5246_v19, %v4894_v61  ;;  %v4688_v48 = vadd.f32 %v4682_v13, %v4354_v45 }
0x3419   :  { %4690 = vadd.xlane.f32.xlu0 %v4688_v48  ;;  %v4689_v62 = vadd.f32 %v4685_v7, %v4355_v49 }
0x341b   :  { %4692 = vadd.xlane.f32.xlu1 %v4689_v62 }
0x34a6   :  { %v4691_v41 = vpop.xlane.xlu0 %4690 }
0x34a7   :  { %v4694_v9 = vmul.f32 0.0078125, %v4691_v41 }
0x34a8   :  { %v4693_v2 = vpop.xlane.xlu1 %4692 }
0x34a9   :  { %v4696_v8 = vsub.f32 %v4688_v48, %v4694_v9  ;;  %v4695_v57 = vmul.f32 0.0078125, %v4693_v2 }
0x34ab   :  { %v4697_v30 = vsub.f32 %v4689_v62, %v4695_v57  ;;  %v4698_v27 = vmul.f32 %v4696_v8, %v4696_v8 }
0x34ad   :  { %4700 = vadd.xlane.f32.xlu0 %v4698_v27  ;;  %v4699_v1 = vmul.f32 %v4697_v30, %v4697_v30 }
0x34af   :  { %4702 = vadd.xlane.f32.xlu1 %v4699_v1 }
0x353a   :  { %v4701_v6 = vpop.xlane.xlu0 %4700 }
0x353b   :  { %v4704_v55 = vmul.f32 0.0078125, %v4701_v6 }
0x353c   :  { %v4703_v31 = vpop.xlane.xlu1 %4702 }
0x353d   :  { %v4706_v59 = vadd.f32 1e-05, %v4704_v55  ;;  %v4705_v11 = vmul.f32 0.0078125, %v4703_v31 }
0x353f   :  { %6168 = vrsqrt.f32 %v4706_v59  ;;  %v4707_v53 = vadd.f32 1e-05, %v4705_v11 }
0x3541   :  { %6170 = vrsqrt.f32 %v4707_v53 }
0x3549   :  { %v6169_v10 = vpop.eup %6168 }
0x354a   :  { %v4710_v12 = vmul.f32 %v6169_v10, %v4696_v8 }
0x354b   :  { %v6171_v18 = vpop.eup %6170 }
0x354c   :  { %v4711_v42 = vmul.f32 %v6171_v18, %v4697_v30  ;;  %v4717_v3 = vmul.f32 %v4911_v33, %v4710_v12 }
0x354e   :  { %v4718_v58 = vmul.f32 %v4911_v33, %v4711_v42  ;;  %v4724_v32 = vadd.f32 %v4912_v22, %v4717_v3 }
0x3550   :  { %v4725_v60 = vadd.f32 %v4912_v22, %v4718_v58  ;;  %4726 = vst [vmem:[#allocation2] sm:$0xff] %v4724_v32 }
0x3552   :  { %4727 = vst [vmem:[#allocation2 + $0x8] sm:$0xff] %v4725_v60 }
0x3553   :  { %6231 = shalt.err (!%p6228_p4)
}
0x3554   :  { %s6232_s12 = scalar_lea.hbm %s7966_s13, 256 }
0x3555   :  { %p6233_p5 = scmp.ne.s32.totalorder %s7966_s13, %s6232_s12  ;;  %p6236_p6 = scmp.lt.u32.totalorder %s6232_s12, %s7966_s13 }
0x3557   :  { %p6238_p7 = pnand %p6236_p6, %p6233_p5 }
0x3559   :  { %6241 = shalt.err (!%p6238_p7)
}
0x355a   :  { %s6251_s30 = smov 128   ;;  %s6252_s14 = smov 8  }
0x355b   :  { %4739 = dma.vmem_to_hbm [thread:$0]  %s4734_s24, 256, %s7966_s13, [#allocation3], %s6251_s30, %s6251_s30, %s6252_s14  }
0x355c   :  { %6242 = dma.done.wait [#allocation3], 256  }
0x355d   :  { %6243 = vsyncadd [#allocation3], 4294967040 }
0x355e   :  { %4743 = vsyncpa [#allocation3], 1 }

</bundles_post_ra>
